<compile_context>
chip_gen: v7x
topology: tpu7x:2x2x1
jax: 0.10.0
libtpu: 0.0.40
codegen_flags: <defaults>
</compile_context>

<pallas_src>
import numpy as np

import jax
import jax.numpy as jnp
from jax.experimental import pallas as pl
from jax.experimental.pallas import tpu as pltpu

NRB = 5                      # cfg.nrb implied by Linear(5, 32) in main_module_v0
EPS = 1e-5
OUT_PAD = 128                # final head padded to a full 128-lane store
ROW_ALIGN = 16               # bf16 packs 16 rows / sublane tile: keep slab slices aligned

_SENSE_DHW = (2, 13, 10)                                     # sensing input (D, H, W)
_CONV_PADS = [(1, 1, 1), (1, 1, 1), (1, 1, 1), (0, 1, 1)]    # the 4 Conv3d paddings


# ---------------------------------------------------------------------------
# Static packing layout: 3 bf16 weight slabs (grouped by padded lane width)
# ---------------------------------------------------------------------------
_SLAB_SPECS = (
    (768, (("conv2", 462, 720), ("conv3", 720, 720))),
    (512, (("conv1", 260, 462), ("conv4", 720, 360))),
    (256, (("lsmc", 360, NRB), ("mcq", NRB, NRB),
           ("fc0", 5, 32), ("fc1", 32, 64), ("fc2", 64, 128), ("fc3", 128, 256),
           ("fc4", 256, 128), ("fc5", 128, 32), ("head", 32, OUT_PAD))),
)


def _round_up(x, m):
    return -(-x // m) * m


def _build_layout():
    layout, rows, widths = {}, [], []
    for sid, (width, entries) in enumerate(_SLAB_SPECS):
        off = 0
        for name, r, c in entries:
            assert c <= width
            layout[name] = (sid, off, r, c)
            off += _round_up(r, ROW_ALIGN)
        rows.append(off)
        widths.append(width)
    return layout, tuple(rows), tuple(widths)


_LAYOUT, _SLAB_ROWS, _SLAB_WIDTHS = _build_layout()

_BIAS_ORDER = ("conv1", "conv2", "conv3", "conv4", "mc",
               "fc0", "fc1", "fc2", "fc3", "fc4", "fc5", "head")
_BIAS_ROW = {n: i for i, n in enumerate(_BIAS_ORDER)}
_BIAS_WIDTH = {"conv1": 462, "conv2": 720, "conv3": 720, "conv4": 360, "mc": NRB,
               "fc0": 32, "fc1": 64, "fc2": 128, "fc3": 256, "fc4": 128, "fc5": 32,
               "head": OUT_PAD}
_BIAS_SHAPE = (_round_up(len(_BIAS_ORDER), 8), 768)


# ---------------------------------------------------------------------------
# Single fused Pallas kernel (whole forward pass)
# ---------------------------------------------------------------------------
def _fused_forward_kernel(xs_ref, cqi_ref, w0_ref, w1_ref, w2_ref, b_ref, o_ref):
    slabs = (w0_ref, w1_ref, w2_ref)

    def w(name):                                       # bf16 (rows, cols) weight view
        sid, off, r, c = _LAYOUT[name]
        return slabs[sid][off:off + r, :c]

    def b(name):                                       # (1, cols) f32 bias row
        i = _BIAS_ROW[name]
        return b_ref[i:i + 1, :_BIAS_WIDTH[name]]

    def dot(x, name):                                  # bf16 x bf16 -> f32 MXU matmul
        return jnp.dot(x.astype(jnp.bfloat16), w(name),
                       preferred_element_type=jnp.float32)

    def bn_all(x):                                     # BatchNorm3d(1), training stats
        mu = jnp.mean(x)
        var = jnp.mean(jnp.square(x - mu))
        return (x - mu) * jax.lax.rsqrt(var + EPS)

    def bn_cols(x):                                    # BatchNorm1d, training stats
        mu = jnp.mean(x, axis=0, keepdims=True)
        var = jnp.mean(jnp.square(x - mu), axis=0, keepdims=True)
        return (x - mu) * jax.lax.rsqrt(var + EPS)

    def elu(x):                                        # ELU(alpha=1)
        # TODO(synk): exp(x)-1 (not expm1) — guaranteed Mosaic lowering; the precision
        # loss near 0- is far below the checked tolerance.
        return jnp.where(x > 0.0, x, jnp.exp(jnp.minimum(x, 0.0)) - 1.0)

    # ---- sensing_module_v0: 4 x [Conv3d -> ReLU -> BatchNorm3d], 1 block matmul each
    h = xs_ref[...]                                    # (N, 260) f32
    for name in ("conv1", "conv2", "conv3", "conv4"):
        h = bn_all(jnp.maximum(dot(h, name) + b(name), 0.0))
    # h: (N, 360) == flattened (2, 15, 12) volume

    # ---- linear_sensing_v0 folded exactly into the main-module Conv2d+ReLU ----
    #   relu((h@Wls+bls)@Ms + cqi@Mc + bmc) == relu(h@(Wls@Ms) + cqi@Mc + (bls@Ms+bmc))
    x = jnp.maximum(dot(h, "lsmc") + dot(cqi_ref[...], "mcq") + b("mc"), 0.0)   # (N, 5)

    # ---- main_module_v0 MLP: 6 x [Linear -> ELU -> BatchNorm1d] ----
    for name in ("fc0", "fc1", "fc2", "fc3", "fc4", "fc5"):
        x = bn_cols(elu(dot(x, name) + b(name)))

    # ---- final Linear(32, 10), zero-padded to 128 lanes (unmasked HBM store) ----
    o_ref[...] = (dot(x, "head") + b("head")).astype(o_ref.dtype)


# ---------------------------------------------------------------------------
# One-time host-side weight preparation (conv -> block matrix, fusion, slab packing)
# ---------------------------------------------------------------------------
def _conv3d_block_matrix(w_kdhw, in_dhw, pad):
    """1->1 channel Conv3d as a dense (Din*H*W, Dout*Ho*Wo) matrix, padding folded in."""
    kd, kh, kw = w_kdhw.shape
    D, H, W = in_dhw
    pd, ph, pw = pad
    Do, Ho, Wo = D + 2 * pd - kd + 1, H + 2 * ph - kh + 1, W + 2 * pw - kw + 1
    m = np.zeros((D * H * W, Do * Ho * Wo), np.float32)
    for od in range(Do):
        for oh in range(Ho):
            for ow in range(Wo):
                col = (od * Ho + oh) * Wo + ow
                for dz in range(kd):
                    idd = od - pd + dz
                    if not 0 <= idd < D:
                        continue
                    for dy in range(kh):
                        ih = oh - ph + dy
                        if not 0 <= ih < H:
                            continue
                        for dx in range(kw):
                            iw = ow - pw + dx
                            if 0 <= iw < W:
                                m[(idd * H + ih) * W + iw, col] += w_kdhw[dz, dy, dx]
    return m, (Do, Ho, Wo)


def prepare_operands(params):
    """Kernel-ready packed slabs: 3 bf16 weight slabs + 1 f32 bias slab."""
    p = {k: np.asarray(v, np.float32) for k, v in params.items()}
    mats = {}

    # sensing convs -> one block matrix per layer
    dhw = _SENSE_DHW
    for li in range(1, 5):
        m, dhw = _conv3d_block_matrix(p[f"c{li}_w"][0, 0], dhw, _CONV_PADS[li - 1])
        mats[f"conv{li}"] = m
    assert dhw == (2, 15, 12)

    # main Conv2d(k=(3,2), p=(1,0)) on cat([s, cqi], dim=2): two (5,5) tap maps
    wmc = p["mc_w"][0, 0]                               # (3, 2)
    ms = np.zeros((NRB, NRB), np.float32)               # acts on linear_sensing output
    mc = np.zeros((NRB, NRB), np.float32)               # acts on cqi
    for oh in range(NRB):
        for dy in range(3):
            ih = oh - 1 + dy
            if 0 <= ih < NRB:
                ms[ih, oh] += wmc[dy, 0]
                mc[ih, oh] += wmc[dy, 1]
    mats["lsmc"] = p["ls_w"] @ ms                        # fold linear_sensing into Conv2d
    mats["mcq"] = mc
    b_mc_fold = p["ls_b"] @ ms + p["mc_b"][0]

    # MLP stack; final head zero-padded to 128 output lanes
    for i in range(6):
        mats[f"fc{i}"] = p[f"fc{i}_w"]
    head = np.zeros((32, OUT_PAD), np.float32)
    head[:, :10] = p["fc6_w"]
    mats["head"] = head

    # pack bf16 weight slabs according to the static layout
    slabs = [np.zeros((_SLAB_ROWS[s], _SLAB_WIDTHS[s]), np.float32) for s in range(3)]
    for name, (sid, off, r, c) in _LAYOUT.items():
        assert mats[name].shape == (r, c), name
        slabs[sid][off:off + r, :c] = mats[name]
    slabs = [jnp.asarray(s, jnp.bfloat16) for s in slabs]

    # f32 bias slab: one row per layer (conv biases broadcast across their output width)
    bias = np.zeros(_BIAS_SHAPE, np.float32)
    for li in range(1, 5):
        nm = f"conv{li}"
        bias[_BIAS_ROW[nm], :_BIAS_WIDTH[nm]] = p[f"c{li}_b"][0]
    bias[_BIAS_ROW["mc"], :NRB] = b_mc_fold
    for i in range(6):
        nm = f"fc{i}"
        bias[_BIAS_ROW[nm], :_BIAS_WIDTH[nm]] = p[f"fc{i}_b"]
    bias[_BIAS_ROW["head"], :10] = p["fc6_b"]

    return tuple(slabs) + (jnp.asarray(bias),)


# ---------------------------------------------------------------------------
# Forward (version == 0): reshape inputs, ONE pallas_call, slice the padded head
# ---------------------------------------------------------------------------
def forward_v0(ops, x_cqi, x_sensing):
    if x_cqi.ndim == 3:                                  # torch: flatten(0, 1)
        x_cqi = x_cqi.reshape(-1, x_cqi.shape[-1])
    if x_sensing.ndim == 5:                              # torch: flatten(0, 1)
        x_sensing = x_sensing.reshape((-1,) + x_sensing.shape[2:])
    elif x_sensing.ndim == 3:
        x_sensing = x_sensing[None]

    n = x_sensing.shape[0]
    D, H, W = _SENSE_DHW
    xs = x_sensing.astype(jnp.float32).reshape(n, D * H * W)   # one contiguous (N, 260)
    cqi = x_cqi.astype(jnp.float32)

    operands = (xs, cqi) + tuple(ops)

    macs = sum(r * c for (_s, _o, r, c) in _LAYOUT.values())
    bytes_accessed = int(sum(int(np.prod(o.shape)) * o.dtype.itemsize for o in operands)
                         + n * OUT_PAD * 4)
    cost = pl.CostEstimate(flops=int(2 * macs * n),
                           transcendentals=int(640 * n),
                           bytes_accessed=bytes_accessed)

    out_pad = pl.pallas_call(
        _fused_forward_kernel,
        out_shape=jax.ShapeDtypeStruct((n, OUT_PAD), jnp.float32),
        in_specs=[pl.BlockSpec(memory_space=pltpu.MemorySpace.VMEM)] * len(operands),
        out_specs=pl.BlockSpec(memory_space=pltpu.MemorySpace.VMEM),
        cost_estimate=cost,
    )(*operands)
    return out_pad[:, :10]


# ---------------------------------------------------------------------------
# Deterministic parameter init (PyTorch module shapes, cfg.nrb = 5)
# ---------------------------------------------------------------------------
def init_params(key):
    keys = jax.random.split(key, 26)
    it = iter(keys)

    def winit(shape, fan_in):
        return jax.random.normal(next(it), shape, jnp.float32) / jnp.sqrt(float(fan_in))

    def binit(shape):
        return 0.1 * jax.random.normal(next(it), shape, jnp.float32)

    p = {}
    p["c1_w"] = winit((1, 1, 2, 2, 2), 8);   p["c1_b"] = binit((1,))
    p["c2_w"] = winit((1, 1, 2, 2, 2), 8);   p["c2_b"] = binit((1,))
    p["c3_w"] = winit((1, 1, 3, 3, 3), 27);  p["c3_b"] = binit((1,))
    p["c4_w"] = winit((1, 1, 3, 3, 3), 27);  p["c4_b"] = binit((1,))
    p["ls_w"] = winit((2 * 15 * 12, NRB), 2 * 15 * 12); p["ls_b"] = binit((NRB,))
    p["mc_w"] = winit((1, 1, 3, 2), 6);      p["mc_b"] = binit((1,))
    dims = [(5, 32), (32, 64), (64, 128), (128, 256), (256, 128), (128, 32), (32, 10)]
    for i, (din, dout) in enumerate(dims):
        p[f"fc{i}_w"] = winit((din, dout), din)
        p[f"fc{i}_b"] = binit((dout,))
    return p


# ---------------------------------------------------------------------------
# Independent float64 NumPy reference (explicit pad + shifted-tap convs)
# Matmul weights are bf16-rounded to match the kernel's stored weight precision.
# ---------------------------------------------------------------------------
def _bf16_round(a):
    return np.asarray(
        jnp.asarray(np.asarray(a, np.float32), jnp.bfloat16).astype(jnp.float32),
        np.float64)


def reference_forward_numpy(params, x_cqi, x_sensing):
    p = {k: np.asarray(v, np.float64) for k, v in params.items()}
    for k in list(p):
        if k.endswith("_w"):
            p[k] = _bf16_round(params[k])

    def conv3d(x, w, bias, pad):
        N, _, D, H, W = x.shape
        kd, kh, kw = w.shape[2:]
        pd, ph, pw = pad
        xp = np.pad(x, ((0, 0), (0, 0), (pd, pd), (ph, ph), (pw, pw)))
        Do, Ho, Wo = D + 2 * pd - kd + 1, H + 2 * ph - kh + 1, W + 2 * pw - kw + 1
        y = np.zeros((N, 1, Do, Ho, Wo))
        for dz in range(kd):
            for dy in range(kh):
                for dx in range(kw):
                    y[:, 0] += w[0, 0, dz, dy, dx] * xp[:, 0, dz:dz + Do,
                                                        dy:dy + Ho, dx:dx + Wo]
        return y + bias[0]

    def bn_all(x):
        m = x.mean(); v = ((x - m) ** 2).mean()
        return (x - m) / np.sqrt(v + EPS)

    def bn_cols(x):
        m = x.mean(axis=0, keepdims=True)
        v = ((x - m) ** 2).mean(axis=0, keepdims=True)
        return (x - m) / np.sqrt(v + EPS)

    def elu(x):
        return np.where(x > 0, x, np.expm1(np.minimum(x, 0.0)))

    x = np.asarray(x_sensing, np.float64)[:, None]
    x = bn_all(np.maximum(conv3d(x, p["c1_w"], p["c1_b"], (1, 1, 1)), 0.0))
    x = bn_all(np.maximum(conv3d(x, p["c2_w"], p["c2_b"], (1, 1, 1)), 0.0))
    x = bn_all(np.maximum(conv3d(x, p["c3_w"], p["c3_b"], (1, 1, 1)), 0.0))
    x = bn_all(np.maximum(conv3d(x, p["c4_w"], p["c4_b"], (0, 1, 1)), 0.0))
    n = x.shape[0]
    s = x.reshape(n, 2 * 15 * 12) @ p["ls_w"] + p["ls_b"]
    cqi = np.asarray(x_cqi, np.float64)
    xm = np.stack([s, cqi], axis=2)[:, None]                 # (N,1,5,2)
    xp = np.pad(xm, ((0, 0), (0, 0), (1, 1), (0, 0)))
    w = p["mc_w"]
    y = np.zeros((n, 5))
    for dy in range(3):
        for dx in range(2):
            y += w[0, 0, dy, dx] * xp[:, 0, dy:dy + 5, dx]
    y = np.maximum(y + p["mc_b"][0], 0.0)
    for i in range(6):
        y = bn_cols(elu(y @ p[f"fc{i}_w"] + p[f"fc{i}_b"]))
    return y @ p["fc6_w"] + p["fc6_b"]


# ---------------------------------------------------------------------------
if __name__ == "__main__":
    key = jax.random.PRNGKey(0)
    k_par, k_cqi, k_sen = jax.random.split(key, 3)

    params = init_params(k_par)
    ops = prepare_operands(params)        # weight prep done once, outside the kernel

    # Shapes implied by the module: x_cqi (batch, nrb=5); x_sensing (batch, 2, 13, 10)
    batch = 8                             # >1 so training-mode BatchNorm is defined
    x_cqi = jax.random.normal(k_cqi, (batch, NRB), jnp.float32)
    x_sensing = jax.random.normal(k_sen, (batch, 2, 13, 10), jnp.float32)

    fwd = jax.jit(forward_v0)
    out = jax.block_until_ready(fwd(ops, x_cqi, x_sensing))
    assert out.shape == (batch, 10)

    # Correctness guard against an independent float64 reference (bf16-rounded matmul
    # weights).  Tolerance covers bf16 activation casts / MXU accumulation-order noise
    # amplified through the BatchNorm stack; structural bugs would be O(1) off.
    ref = reference_forward_numpy(params, x_cqi, x_sensing)
    np.testing.assert_allclose(np.asarray(out, np.float64), ref, rtol=3e-2, atol=3e-2)

    print("KERNEL_OK")
</pallas_src>

<mosaic_0001>
module attributes {stable_mosaic.version = 11 : i64} {
  func.func @_fused_forward_kernel(%arg0: memref<8x260xf32, #tpu.memory_space<vmem>>, %arg1: memref<8x5xf32, #tpu.memory_space<vmem>>, %arg2: memref<1184x768xbf16, #tpu.memory_space<vmem>>, %arg3: memref<992x512xbf16, #tpu.memory_space<vmem>>, %arg4: memref<1040x256xbf16, #tpu.memory_space<vmem>>, %arg5: memref<16x768xf32, #tpu.memory_space<vmem>>, %arg6: memref<8x128xf32, #tpu.memory_space<vmem>>) attributes {dimension_semantics = [], scalar_prefetch = 0 : i64, scratch_operands = 0 : i64, tpu.core_type = #tpu.core_type<tc>} {
    %c0 = arith.constant 0 : index
    %c0_0 = arith.constant 0 : index
    %0 = vector.load %arg0[%c0, %c0_0] : memref<8x260xf32, #tpu.memory_space<vmem>>, vector<8x260xf32>
    %1 = arith.truncf %0 : vector<8x260xf32> to vector<8x260xbf16>
    %c0_1 = arith.constant 0 : index
    %c0_2 = arith.constant 0 : index
    %2 = vector.load %arg3[%c0_1, %c0_2] : memref<992x512xbf16, #tpu.memory_space<vmem>>, vector<260x462xbf16>
    %cst = arith.constant dense<0.000000e+00> : vector<8x462xf32>
    %3 = tpu.matmul %1, %2, %cst {dimension_numbers = #tpu.dot_dimension_numbers<[1], [0], [0], [1], [0, 0, 1, 1], [], []>} : vector<8x260xbf16>, vector<260x462xbf16>, vector<8x462xf32> -> vector<8x462xf32>
    %c0_3 = arith.constant 0 : index
    %c0_4 = arith.constant 0 : index
    %4 = vector.load %arg5[%c0_3, %c0_4] : memref<16x768xf32, #tpu.memory_space<vmem>>, vector<1x462xf32>
    %5 = vector.broadcast %4 : vector<1x462xf32> to vector<8x462xf32>
    %6 = arith.addf %3, %5 : vector<8x462xf32>
    %cst_5 = arith.constant 0.000000e+00 : f32
    %7 = vector.broadcast %cst_5 : f32 to vector<8x462xf32>
    %8 = arith.maximumf %6, %7 : vector<8x462xf32>
    %9 = vector.shape_cast %8 : vector<8x462xf32> to vector<1x8x462xf32>
    %cst_6 = arith.constant dense<0.000000e+00> : vector<1xf32>
    %10 = vector.multi_reduction <add>, %9, %cst_6 [1, 2] : vector<1x8x462xf32> to vector<1xf32>
    %11 = vector.shape_cast %10 : vector<1xf32> to vector<1x1x1xf32>
    %12 = vector.extract %11[0, 0, 0] : f32 from vector<1x1x1xf32>
    %cst_7 = arith.constant 3.696000e+03 : f32
    %13 = arith.divf %12, %cst_7 : f32
    %14 = vector.broadcast %13 : f32 to vector<8x462xf32>
    %15 = arith.subf %8, %14 : vector<8x462xf32>
    %16 = arith.mulf %15, %15 : vector<8x462xf32>
    %17 = vector.shape_cast %16 : vector<8x462xf32> to vector<1x8x462xf32>
    %cst_8 = arith.constant dense<0.000000e+00> : vector<1xf32>
    %18 = vector.multi_reduction <add>, %17, %cst_8 [1, 2] : vector<1x8x462xf32> to vector<1xf32>
    %19 = vector.shape_cast %18 : vector<1xf32> to vector<1x1x1xf32>
    %20 = vector.extract %19[0, 0, 0] : f32 from vector<1x1x1xf32>
    %cst_9 = arith.constant 3.696000e+03 : f32
    %21 = arith.divf %20, %cst_9 : f32
    %22 = vector.broadcast %13 : f32 to vector<8x462xf32>
    %23 = arith.subf %8, %22 : vector<8x462xf32>
    %cst_10 = arith.constant 9.99999974E-6 : f32
    %24 = arith.addf %21, %cst_10 : f32
    %25 = math.rsqrt %24 : f32
    %26 = vector.broadcast %25 : f32 to vector<8x462xf32>
    %27 = arith.mulf %23, %26 : vector<8x462xf32>
    %28 = arith.truncf %27 : vector<8x462xf32> to vector<8x462xbf16>
    %c0_11 = arith.constant 0 : index
    %c0_12 = arith.constant 0 : index
    %29 = vector.load %arg2[%c0_11, %c0_12] : memref<1184x768xbf16, #tpu.memory_space<vmem>>, vector<462x720xbf16>
    %cst_13 = arith.constant dense<0.000000e+00> : vector<8x720xf32>
    %30 = tpu.matmul %28, %29, %cst_13 {dimension_numbers = #tpu.dot_dimension_numbers<[1], [0], [0], [1], [0, 0, 1, 1], [], []>} : vector<8x462xbf16>, vector<462x720xbf16>, vector<8x720xf32> -> vector<8x720xf32>
    %c1 = arith.constant 1 : index
    %c0_14 = arith.constant 0 : index
    %31 = vector.load %arg5[%c1, %c0_14] : memref<16x768xf32, #tpu.memory_space<vmem>>, vector<1x720xf32>
    %32 = vector.broadcast %31 : vector<1x720xf32> to vector<8x720xf32>
    %33 = arith.addf %30, %32 : vector<8x720xf32>
    %cst_15 = arith.constant 0.000000e+00 : f32
    %34 = vector.broadcast %cst_15 : f32 to vector<8x720xf32>
    %35 = arith.maximumf %33, %34 : vector<8x720xf32>
    %36 = vector.shape_cast %35 : vector<8x720xf32> to vector<1x8x720xf32>
    %cst_16 = arith.constant dense<0.000000e+00> : vector<1xf32>
    %37 = vector.multi_reduction <add>, %36, %cst_16 [1, 2] : vector<1x8x720xf32> to vector<1xf32>
    %38 = vector.shape_cast %37 : vector<1xf32> to vector<1x1x1xf32>
    %39 = vector.extract %38[0, 0, 0] : f32 from vector<1x1x1xf32>
    %cst_17 = arith.constant 5.760000e+03 : f32
    %40 = arith.divf %39, %cst_17 : f32
    %41 = vector.broadcast %40 : f32 to vector<8x720xf32>
    %42 = arith.subf %35, %41 : vector<8x720xf32>
    %43 = arith.mulf %42, %42 : vector<8x720xf32>
    %44 = vector.shape_cast %43 : vector<8x720xf32> to vector<1x8x720xf32>
    %cst_18 = arith.constant dense<0.000000e+00> : vector<1xf32>
    %45 = vector.multi_reduction <add>, %44, %cst_18 [1, 2] : vector<1x8x720xf32> to vector<1xf32>
    %46 = vector.shape_cast %45 : vector<1xf32> to vector<1x1x1xf32>
    %47 = vector.extract %46[0, 0, 0] : f32 from vector<1x1x1xf32>
    %cst_19 = arith.constant 5.760000e+03 : f32
    %48 = arith.divf %47, %cst_19 : f32
    %49 = vector.broadcast %40 : f32 to vector<8x720xf32>
    %50 = arith.subf %35, %49 : vector<8x720xf32>
    %cst_20 = arith.constant 9.99999974E-6 : f32
    %51 = arith.addf %48, %cst_20 : f32
    %52 = math.rsqrt %51 : f32
    %53 = vector.broadcast %52 : f32 to vector<8x720xf32>
    %54 = arith.mulf %50, %53 : vector<8x720xf32>
    %55 = arith.truncf %54 : vector<8x720xf32> to vector<8x720xbf16>
    %c464 = arith.constant 464 : index
    %c0_21 = arith.constant 0 : index
    %56 = vector.load %arg2[%c464, %c0_21] : memref<1184x768xbf16, #tpu.memory_space<vmem>>, vector<720x720xbf16>
    %cst_22 = arith.constant dense<0.000000e+00> : vector<8x720xf32>
    %57 = tpu.matmul %55, %56, %cst_22 {dimension_numbers = #tpu.dot_dimension_numbers<[1], [0], [0], [1], [0, 0, 1, 1], [], []>} : vector<8x720xbf16>, vector<720x720xbf16>, vector<8x720xf32> -> vector<8x720xf32>
    %c2 = arith.constant 2 : index
    %c0_23 = arith.constant 0 : index
    %58 = vector.load %arg5[%c2, %c0_23] : memref<16x768xf32, #tpu.memory_space<vmem>>, vector<1x720xf32>
    %59 = vector.broadcast %58 : vector<1x720xf32> to vector<8x720xf32>
    %60 = arith.addf %57, %59 : vector<8x720xf32>
    %cst_24 = arith.constant 0.000000e+00 : f32
    %61 = vector.broadcast %cst_24 : f32 to vector<8x720xf32>
    %62 = arith.maximumf %60, %61 : vector<8x720xf32>
    %63 = vector.shape_cast %62 : vector<8x720xf32> to vector<1x8x720xf32>
    %cst_25 = arith.constant dense<0.000000e+00> : vector<1xf32>
    %64 = vector.multi_reduction <add>, %63, %cst_25 [1, 2] : vector<1x8x720xf32> to vector<1xf32>
    %65 = vector.shape_cast %64 : vector<1xf32> to vector<1x1x1xf32>
    %66 = vector.extract %65[0, 0, 0] : f32 from vector<1x1x1xf32>
    %cst_26 = arith.constant 5.760000e+03 : f32
    %67 = arith.divf %66, %cst_26 : f32
    %68 = vector.broadcast %67 : f32 to vector<8x720xf32>
    %69 = arith.subf %62, %68 : vector<8x720xf32>
    %70 = arith.mulf %69, %69 : vector<8x720xf32>
    %71 = vector.shape_cast %70 : vector<8x720xf32> to vector<1x8x720xf32>
    %cst_27 = arith.constant dense<0.000000e+00> : vector<1xf32>
    %72 = vector.multi_reduction <add>, %71, %cst_27 [1, 2] : vector<1x8x720xf32> to vector<1xf32>
    %73 = vector.shape_cast %72 : vector<1xf32> to vector<1x1x1xf32>
    %74 = vector.extract %73[0, 0, 0] : f32 from vector<1x1x1xf32>
    %cst_28 = arith.constant 5.760000e+03 : f32
    %75 = arith.divf %74, %cst_28 : f32
    %76 = vector.broadcast %67 : f32 to vector<8x720xf32>
    %77 = arith.subf %62, %76 : vector<8x720xf32>
    %cst_29 = arith.constant 9.99999974E-6 : f32
    %78 = arith.addf %75, %cst_29 : f32
    %79 = math.rsqrt %78 : f32
    %80 = vector.broadcast %79 : f32 to vector<8x720xf32>
    %81 = arith.mulf %77, %80 : vector<8x720xf32>
    %82 = arith.truncf %81 : vector<8x720xf32> to vector<8x720xbf16>
    %c272 = arith.constant 272 : index
    %c0_30 = arith.constant 0 : index
    %83 = vector.load %arg3[%c272, %c0_30] : memref<992x512xbf16, #tpu.memory_space<vmem>>, vector<720x360xbf16>
    %cst_31 = arith.constant dense<0.000000e+00> : vector<8x360xf32>
    %84 = tpu.matmul %82, %83, %cst_31 {dimension_numbers = #tpu.dot_dimension_numbers<[1], [0], [0], [1], [0, 0, 1, 1], [], []>} : vector<8x720xbf16>, vector<720x360xbf16>, vector<8x360xf32> -> vector<8x360xf32>
    %c3 = arith.constant 3 : index
    %c0_32 = arith.constant 0 : index
    %85 = vector.load %arg5[%c3, %c0_32] : memref<16x768xf32, #tpu.memory_space<vmem>>, vector<1x360xf32>
    %86 = vector.broadcast %85 : vector<1x360xf32> to vector<8x360xf32>
    %87 = arith.addf %84, %86 : vector<8x360xf32>
    %cst_33 = arith.constant 0.000000e+00 : f32
    %88 = vector.broadcast %cst_33 : f32 to vector<8x360xf32>
    %89 = arith.maximumf %87, %88 : vector<8x360xf32>
    %90 = vector.shape_cast %89 : vector<8x360xf32> to vector<1x8x360xf32>
    %cst_34 = arith.constant dense<0.000000e+00> : vector<1xf32>
    %91 = vector.multi_reduction <add>, %90, %cst_34 [1, 2] : vector<1x8x360xf32> to vector<1xf32>
    %92 = vector.shape_cast %91 : vector<1xf32> to vector<1x1x1xf32>
    %93 = vector.extract %92[0, 0, 0] : f32 from vector<1x1x1xf32>
    %cst_35 = arith.constant 2.880000e+03 : f32
    %94 = arith.divf %93, %cst_35 : f32
    %95 = vector.broadcast %94 : f32 to vector<8x360xf32>
    %96 = arith.subf %89, %95 : vector<8x360xf32>
    %97 = arith.mulf %96, %96 : vector<8x360xf32>
    %98 = vector.shape_cast %97 : vector<8x360xf32> to vector<1x8x360xf32>
    %cst_36 = arith.constant dense<0.000000e+00> : vector<1xf32>
    %99 = vector.multi_reduction <add>, %98, %cst_36 [1, 2] : vector<1x8x360xf32> to vector<1xf32>
    %100 = vector.shape_cast %99 : vector<1xf32> to vector<1x1x1xf32>
    %101 = vector.extract %100[0, 0, 0] : f32 from vector<1x1x1xf32>
    %cst_37 = arith.constant 2.880000e+03 : f32
    %102 = arith.divf %101, %cst_37 : f32
    %103 = vector.broadcast %94 : f32 to vector<8x360xf32>
    %104 = arith.subf %89, %103 : vector<8x360xf32>
    %cst_38 = arith.constant 9.99999974E-6 : f32
    %105 = arith.addf %102, %cst_38 : f32
    %106 = math.rsqrt %105 : f32
    %107 = vector.broadcast %106 : f32 to vector<8x360xf32>
    %108 = arith.mulf %104, %107 : vector<8x360xf32>
    %109 = arith.truncf %108 : vector<8x360xf32> to vector<8x360xbf16>
    %c0_39 = arith.constant 0 : index
    %c0_40 = arith.constant 0 : index
    %110 = vector.load %arg4[%c0_39, %c0_40] : memref<1040x256xbf16, #tpu.memory_space<vmem>>, vector<360x5xbf16>
    %cst_41 = arith.constant dense<0.000000e+00> : vector<8x5xf32>
    %111 = tpu.matmul %109, %110, %cst_41 {dimension_numbers = #tpu.dot_dimension_numbers<[1], [0], [0], [1], [0, 0, 1, 1], [], []>} : vector<8x360xbf16>, vector<360x5xbf16>, vector<8x5xf32> -> vector<8x5xf32>
    %c0_42 = arith.constant 0 : index
    %c0_43 = arith.constant 0 : index
    %112 = vector.load %arg1[%c0_42, %c0_43] : memref<8x5xf32, #tpu.memory_space<vmem>>, vector<8x5xf32>
    %113 = arith.truncf %112 : vector<8x5xf32> to vector<8x5xbf16>
    %c368 = arith.constant 368 : index
    %c0_44 = arith.constant 0 : index
    %114 = vector.load %arg4[%c368, %c0_44] : memref<1040x256xbf16, #tpu.memory_space<vmem>>, vector<5x5xbf16>
    %cst_45 = arith.constant dense<0.000000e+00> : vector<8x5xf32>
    %115 = tpu.matmul %113, %114, %cst_45 {dimension_numbers = #tpu.dot_dimension_numbers<[1], [0], [0], [1], [0, 0, 1, 1], [], []>} : vector<8x5xbf16>, vector<5x5xbf16>, vector<8x5xf32> -> vector<8x5xf32>
    %116 = arith.addf %111, %115 : vector<8x5xf32>
    %c4 = arith.constant 4 : index
    %c0_46 = arith.constant 0 : index
    %117 = vector.load %arg5[%c4, %c0_46] : memref<16x768xf32, #tpu.memory_space<vmem>>, vector<1x5xf32>
    %118 = vector.broadcast %117 : vector<1x5xf32> to vector<8x5xf32>
    %119 = arith.addf %116, %118 : vector<8x5xf32>
    %cst_47 = arith.constant 0.000000e+00 : f32
    %120 = vector.broadcast %cst_47 : f32 to vector<8x5xf32>
    %121 = arith.maximumf %119, %120 : vector<8x5xf32>
    %122 = arith.truncf %121 : vector<8x5xf32> to vector<8x5xbf16>
    %c384 = arith.constant 384 : index
    %c0_48 = arith.constant 0 : index
    %123 = vector.load %arg4[%c384, %c0_48] : memref<1040x256xbf16, #tpu.memory_space<vmem>>, vector<5x32xbf16>
    %cst_49 = arith.constant dense<0.000000e+00> : vector<8x32xf32>
    %124 = tpu.matmul %122, %123, %cst_49 {dimension_numbers = #tpu.dot_dimension_numbers<[1], [0], [0], [1], [0, 0, 1, 1], [], []>} : vector<8x5xbf16>, vector<5x32xbf16>, vector<8x32xf32> -> vector<8x32xf32>
    %c5 = arith.constant 5 : index
    %c0_50 = arith.constant 0 : index
    %125 = vector.load %arg5[%c5, %c0_50] : memref<16x768xf32, #tpu.memory_space<vmem>>, vector<1x32xf32>
    %126 = vector.broadcast %125 : vector<1x32xf32> to vector<8x32xf32>
    %127 = arith.addf %124, %126 : vector<8x32xf32>
    %cst_51 = arith.constant 0.000000e+00 : f32
    %128 = vector.broadcast %cst_51 : f32 to vector<8x32xf32>
    %129 = arith.cmpf ogt, %127, %128 : vector<8x32xf32>
    %cst_52 = arith.constant 0.000000e+00 : f32
    %130 = vector.broadcast %cst_52 : f32 to vector<8x32xf32>
    %131 = arith.minimumf %127, %130 : vector<8x32xf32>
    %132 = math.exp %131 : vector<8x32xf32>
    %cst_53 = arith.constant 1.000000e+00 : f32
    %133 = vector.broadcast %cst_53 : f32 to vector<8x32xf32>
    %134 = arith.subf %132, %133 : vector<8x32xf32>
    %135 = arith.select %129, %127, %134 : vector<8x32xi1>, vector<8x32xf32>
    %cst_54 = arith.constant dense<0.000000e+00> : vector<32xf32>
    %136 = vector.multi_reduction <add>, %135, %cst_54 [0] : vector<8x32xf32> to vector<32xf32>
    %137 = vector.shape_cast %136 : vector<32xf32> to vector<1x32xf32>
    %cst_55 = arith.constant 8.000000e+00 : f32
    %138 = vector.broadcast %cst_55 : f32 to vector<1x32xf32>
    %139 = arith.divf %137, %138 : vector<1x32xf32>
    %140 = vector.broadcast %139 : vector<1x32xf32> to vector<8x32xf32>
    %141 = arith.subf %135, %140 : vector<8x32xf32>
    %142 = arith.mulf %141, %141 : vector<8x32xf32>
    %cst_56 = arith.constant dense<0.000000e+00> : vector<32xf32>
    %143 = vector.multi_reduction <add>, %142, %cst_56 [0] : vector<8x32xf32> to vector<32xf32>
    %144 = vector.shape_cast %143 : vector<32xf32> to vector<1x32xf32>
    %cst_57 = arith.constant 8.000000e+00 : f32
    %145 = vector.broadcast %cst_57 : f32 to vector<1x32xf32>
    %146 = arith.divf %144, %145 : vector<1x32xf32>
    %147 = vector.broadcast %139 : vector<1x32xf32> to vector<8x32xf32>
    %148 = arith.subf %135, %147 : vector<8x32xf32>
    %cst_58 = arith.constant 9.99999974E-6 : f32
    %149 = vector.broadcast %cst_58 : f32 to vector<1x32xf32>
    %150 = arith.addf %146, %149 : vector<1x32xf32>
    %151 = math.rsqrt %150 : vector<1x32xf32>
    %152 = vector.broadcast %151 : vector<1x32xf32> to vector<8x32xf32>
    %153 = arith.mulf %148, %152 : vector<8x32xf32>
    %154 = arith.truncf %153 : vector<8x32xf32> to vector<8x32xbf16>
    %c400 = arith.constant 400 : index
    %c0_59 = arith.constant 0 : index
    %155 = vector.load %arg4[%c400, %c0_59] : memref<1040x256xbf16, #tpu.memory_space<vmem>>, vector<32x64xbf16>
    %cst_60 = arith.constant dense<0.000000e+00> : vector<8x64xf32>
    %156 = tpu.matmul %154, %155, %cst_60 {dimension_numbers = #tpu.dot_dimension_numbers<[1], [0], [0], [1], [0, 0, 1, 1], [], []>} : vector<8x32xbf16>, vector<32x64xbf16>, vector<8x64xf32> -> vector<8x64xf32>
    %c6 = arith.constant 6 : index
    %c0_61 = arith.constant 0 : index
    %157 = vector.load %arg5[%c6, %c0_61] : memref<16x768xf32, #tpu.memory_space<vmem>>, vector<1x64xf32>
    %158 = vector.broadcast %157 : vector<1x64xf32> to vector<8x64xf32>
    %159 = arith.addf %156, %158 : vector<8x64xf32>
    %cst_62 = arith.constant 0.000000e+00 : f32
    %160 = vector.broadcast %cst_62 : f32 to vector<8x64xf32>
    %161 = arith.cmpf ogt, %159, %160 : vector<8x64xf32>
    %cst_63 = arith.constant 0.000000e+00 : f32
    %162 = vector.broadcast %cst_63 : f32 to vector<8x64xf32>
    %163 = arith.minimumf %159, %162 : vector<8x64xf32>
    %164 = math.exp %163 : vector<8x64xf32>
    %cst_64 = arith.constant 1.000000e+00 : f32
    %165 = vector.broadcast %cst_64 : f32 to vector<8x64xf32>
    %166 = arith.subf %164, %165 : vector<8x64xf32>
    %167 = arith.select %161, %159, %166 : vector<8x64xi1>, vector<8x64xf32>
    %cst_65 = arith.constant dense<0.000000e+00> : vector<64xf32>
    %168 = vector.multi_reduction <add>, %167, %cst_65 [0] : vector<8x64xf32> to vector<64xf32>
    %169 = vector.shape_cast %168 : vector<64xf32> to vector<1x64xf32>
    %cst_66 = arith.constant 8.000000e+00 : f32
    %170 = vector.broadcast %cst_66 : f32 to vector<1x64xf32>
    %171 = arith.divf %169, %170 : vector<1x64xf32>
    %172 = vector.broadcast %171 : vector<1x64xf32> to vector<8x64xf32>
    %173 = arith.subf %167, %172 : vector<8x64xf32>
    %174 = arith.mulf %173, %173 : vector<8x64xf32>
    %cst_67 = arith.constant dense<0.000000e+00> : vector<64xf32>
    %175 = vector.multi_reduction <add>, %174, %cst_67 [0] : vector<8x64xf32> to vector<64xf32>
    %176 = vector.shape_cast %175 : vector<64xf32> to vector<1x64xf32>
    %cst_68 = arith.constant 8.000000e+00 : f32
    %177 = vector.broadcast %cst_68 : f32 to vector<1x64xf32>
    %178 = arith.divf %176, %177 : vector<1x64xf32>
    %179 = vector.broadcast %171 : vector<1x64xf32> to vector<8x64xf32>
    %180 = arith.subf %167, %179 : vector<8x64xf32>
    %cst_69 = arith.constant 9.99999974E-6 : f32
    %181 = vector.broadcast %cst_69 : f32 to vector<1x64xf32>
    %182 = arith.addf %178, %181 : vector<1x64xf32>
    %183 = math.rsqrt %182 : vector<1x64xf32>
    %184 = vector.broadcast %183 : vector<1x64xf32> to vector<8x64xf32>
    %185 = arith.mulf %180, %184 : vector<8x64xf32>
    %186 = arith.truncf %185 : vector<8x64xf32> to vector<8x64xbf16>
    %c432 = arith.constant 432 : index
    %c0_70 = arith.constant 0 : index
    %187 = vector.load %arg4[%c432, %c0_70] : memref<1040x256xbf16, #tpu.memory_space<vmem>>, vector<64x128xbf16>
    %cst_71 = arith.constant dense<0.000000e+00> : vector<8x128xf32>
    %188 = tpu.matmul %186, %187, %cst_71 {dimension_numbers = #tpu.dot_dimension_numbers<[1], [0], [0], [1], [0, 0, 1, 1], [], []>} : vector<8x64xbf16>, vector<64x128xbf16>, vector<8x128xf32> -> vector<8x128xf32>
    %c7 = arith.constant 7 : index
    %c0_72 = arith.constant 0 : index
    %189 = vector.load %arg5[%c7, %c0_72] : memref<16x768xf32, #tpu.memory_space<vmem>>, vector<1x128xf32>
    %190 = vector.broadcast %189 : vector<1x128xf32> to vector<8x128xf32>
    %191 = arith.addf %188, %190 : vector<8x128xf32>
    %cst_73 = arith.constant 0.000000e+00 : f32
    %192 = vector.broadcast %cst_73 : f32 to vector<8x128xf32>
    %193 = arith.cmpf ogt, %191, %192 : vector<8x128xf32>
    %cst_74 = arith.constant 0.000000e+00 : f32
    %194 = vector.broadcast %cst_74 : f32 to vector<8x128xf32>
    %195 = arith.minimumf %191, %194 : vector<8x128xf32>
    %196 = math.exp %195 : vector<8x128xf32>
    %cst_75 = arith.constant 1.000000e+00 : f32
    %197 = vector.broadcast %cst_75 : f32 to vector<8x128xf32>
    %198 = arith.subf %196, %197 : vector<8x128xf32>
    %199 = arith.select %193, %191, %198 : vector<8x128xi1>, vector<8x128xf32>
    %cst_76 = arith.constant dense<0.000000e+00> : vector<128xf32>
    %200 = vector.multi_reduction <add>, %199, %cst_76 [0] : vector<8x128xf32> to vector<128xf32>
    %201 = vector.shape_cast %200 : vector<128xf32> to vector<1x128xf32>
    %cst_77 = arith.constant 8.000000e+00 : f32
    %202 = vector.broadcast %cst_77 : f32 to vector<1x128xf32>
    %203 = arith.divf %201, %202 : vector<1x128xf32>
    %204 = vector.broadcast %203 : vector<1x128xf32> to vector<8x128xf32>
    %205 = arith.subf %199, %204 : vector<8x128xf32>
    %206 = arith.mulf %205, %205 : vector<8x128xf32>
    %cst_78 = arith.constant dense<0.000000e+00> : vector<128xf32>
    %207 = vector.multi_reduction <add>, %206, %cst_78 [0] : vector<8x128xf32> to vector<128xf32>
    %208 = vector.shape_cast %207 : vector<128xf32> to vector<1x128xf32>
    %cst_79 = arith.constant 8.000000e+00 : f32
    %209 = vector.broadcast %cst_79 : f32 to vector<1x128xf32>
    %210 = arith.divf %208, %209 : vector<1x128xf32>
    %211 = vector.broadcast %203 : vector<1x128xf32> to vector<8x128xf32>
    %212 = arith.subf %199, %211 : vector<8x128xf32>
    %cst_80 = arith.constant 9.99999974E-6 : f32
    %213 = vector.broadcast %cst_80 : f32 to vector<1x128xf32>
    %214 = arith.addf %210, %213 : vector<1x128xf32>
    %215 = math.rsqrt %214 : vector<1x128xf32>
    %216 = vector.broadcast %215 : vector<1x128xf32> to vector<8x128xf32>
    %217 = arith.mulf %212, %216 : vector<8x128xf32>
    %218 = arith.truncf %217 : vector<8x128xf32> to vector<8x128xbf16>
    %c496 = arith.constant 496 : index
    %c0_81 = arith.constant 0 : index
    %219 = vector.load %arg4[%c496, %c0_81] : memref<1040x256xbf16, #tpu.memory_space<vmem>>, vector<128x256xbf16>
    %cst_82 = arith.constant dense<0.000000e+00> : vector<8x256xf32>
    %220 = tpu.matmul %218, %219, %cst_82 {dimension_numbers = #tpu.dot_dimension_numbers<[1], [0], [0], [1], [0, 0, 1, 1], [], []>} : vector<8x128xbf16>, vector<128x256xbf16>, vector<8x256xf32> -> vector<8x256xf32>
    %c8 = arith.constant 8 : index
    %c0_83 = arith.constant 0 : index
    %221 = vector.load %arg5[%c8, %c0_83] : memref<16x768xf32, #tpu.memory_space<vmem>>, vector<1x256xf32>
    %222 = vector.broadcast %221 : vector<1x256xf32> to vector<8x256xf32>
    %223 = arith.addf %220, %222 : vector<8x256xf32>
    %cst_84 = arith.constant 0.000000e+00 : f32
    %224 = vector.broadcast %cst_84 : f32 to vector<8x256xf32>
    %225 = arith.cmpf ogt, %223, %224 : vector<8x256xf32>
    %cst_85 = arith.constant 0.000000e+00 : f32
    %226 = vector.broadcast %cst_85 : f32 to vector<8x256xf32>
    %227 = arith.minimumf %223, %226 : vector<8x256xf32>
    %228 = math.exp %227 : vector<8x256xf32>
    %cst_86 = arith.constant 1.000000e+00 : f32
    %229 = vector.broadcast %cst_86 : f32 to vector<8x256xf32>
    %230 = arith.subf %228, %229 : vector<8x256xf32>
    %231 = arith.select %225, %223, %230 : vector<8x256xi1>, vector<8x256xf32>
    %cst_87 = arith.constant dense<0.000000e+00> : vector<256xf32>
    %232 = vector.multi_reduction <add>, %231, %cst_87 [0] : vector<8x256xf32> to vector<256xf32>
    %233 = vector.shape_cast %232 : vector<256xf32> to vector<1x256xf32>
    %cst_88 = arith.constant 8.000000e+00 : f32
    %234 = vector.broadcast %cst_88 : f32 to vector<1x256xf32>
    %235 = arith.divf %233, %234 : vector<1x256xf32>
    %236 = vector.broadcast %235 : vector<1x256xf32> to vector<8x256xf32>
    %237 = arith.subf %231, %236 : vector<8x256xf32>
    %238 = arith.mulf %237, %237 : vector<8x256xf32>
    %cst_89 = arith.constant dense<0.000000e+00> : vector<256xf32>
    %239 = vector.multi_reduction <add>, %238, %cst_89 [0] : vector<8x256xf32> to vector<256xf32>
    %240 = vector.shape_cast %239 : vector<256xf32> to vector<1x256xf32>
    %cst_90 = arith.constant 8.000000e+00 : f32
    %241 = vector.broadcast %cst_90 : f32 to vector<1x256xf32>
    %242 = arith.divf %240, %241 : vector<1x256xf32>
    %243 = vector.broadcast %235 : vector<1x256xf32> to vector<8x256xf32>
    %244 = arith.subf %231, %243 : vector<8x256xf32>
    %cst_91 = arith.constant 9.99999974E-6 : f32
    %245 = vector.broadcast %cst_91 : f32 to vector<1x256xf32>
    %246 = arith.addf %242, %245 : vector<1x256xf32>
    %247 = math.rsqrt %246 : vector<1x256xf32>
    %248 = vector.broadcast %247 : vector<1x256xf32> to vector<8x256xf32>
    %249 = arith.mulf %244, %248 : vector<8x256xf32>
    %250 = arith.truncf %249 : vector<8x256xf32> to vector<8x256xbf16>
    %c624 = arith.constant 624 : index
    %c0_92 = arith.constant 0 : index
    %251 = vector.load %arg4[%c624, %c0_92] : memref<1040x256xbf16, #tpu.memory_space<vmem>>, vector<256x128xbf16>
    %cst_93 = arith.constant dense<0.000000e+00> : vector<8x128xf32>
    %252 = tpu.matmul %250, %251, %cst_93 {dimension_numbers = #tpu.dot_dimension_numbers<[1], [0], [0], [1], [0, 0, 1, 1], [], []>} : vector<8x256xbf16>, vector<256x128xbf16>, vector<8x128xf32> -> vector<8x128xf32>
    %c9 = arith.constant 9 : index
    %c0_94 = arith.constant 0 : index
    %253 = vector.load %arg5[%c9, %c0_94] : memref<16x768xf32, #tpu.memory_space<vmem>>, vector<1x128xf32>
    %254 = vector.broadcast %253 : vector<1x128xf32> to vector<8x128xf32>
    %255 = arith.addf %252, %254 : vector<8x128xf32>
    %cst_95 = arith.constant 0.000000e+00 : f32
    %256 = vector.broadcast %cst_95 : f32 to vector<8x128xf32>
    %257 = arith.cmpf ogt, %255, %256 : vector<8x128xf32>
    %cst_96 = arith.constant 0.000000e+00 : f32
    %258 = vector.broadcast %cst_96 : f32 to vector<8x128xf32>
    %259 = arith.minimumf %255, %258 : vector<8x128xf32>
    %260 = math.exp %259 : vector<8x128xf32>
    %cst_97 = arith.constant 1.000000e+00 : f32
    %261 = vector.broadcast %cst_97 : f32 to vector<8x128xf32>
    %262 = arith.subf %260, %261 : vector<8x128xf32>
    %263 = arith.select %257, %255, %262 : vector<8x128xi1>, vector<8x128xf32>
    %cst_98 = arith.constant dense<0.000000e+00> : vector<128xf32>
    %264 = vector.multi_reduction <add>, %263, %cst_98 [0] : vector<8x128xf32> to vector<128xf32>
    %265 = vector.shape_cast %264 : vector<128xf32> to vector<1x128xf32>
    %cst_99 = arith.constant 8.000000e+00 : f32
    %266 = vector.broadcast %cst_99 : f32 to vector<1x128xf32>
    %267 = arith.divf %265, %266 : vector<1x128xf32>
    %268 = vector.broadcast %267 : vector<1x128xf32> to vector<8x128xf32>
    %269 = arith.subf %263, %268 : vector<8x128xf32>
    %270 = arith.mulf %269, %269 : vector<8x128xf32>
    %cst_100 = arith.constant dense<0.000000e+00> : vector<128xf32>
    %271 = vector.multi_reduction <add>, %270, %cst_100 [0] : vector<8x128xf32> to vector<128xf32>
    %272 = vector.shape_cast %271 : vector<128xf32> to vector<1x128xf32>
    %cst_101 = arith.constant 8.000000e+00 : f32
    %273 = vector.broadcast %cst_101 : f32 to vector<1x128xf32>
    %274 = arith.divf %272, %273 : vector<1x128xf32>
    %275 = vector.broadcast %267 : vector<1x128xf32> to vector<8x128xf32>
    %276 = arith.subf %263, %275 : vector<8x128xf32>
    %cst_102 = arith.constant 9.99999974E-6 : f32
    %277 = vector.broadcast %cst_102 : f32 to vector<1x128xf32>
    %278 = arith.addf %274, %277 : vector<1x128xf32>
    %279 = math.rsqrt %278 : vector<1x128xf32>
    %280 = vector.broadcast %279 : vector<1x128xf32> to vector<8x128xf32>
    %281 = arith.mulf %276, %280 : vector<8x128xf32>
    %282 = arith.truncf %281 : vector<8x128xf32> to vector<8x128xbf16>
    %c880 = arith.constant 880 : index
    %c0_103 = arith.constant 0 : index
    %283 = vector.load %arg4[%c880, %c0_103] : memref<1040x256xbf16, #tpu.memory_space<vmem>>, vector<128x32xbf16>
    %cst_104 = arith.constant dense<0.000000e+00> : vector<8x32xf32>
    %284 = tpu.matmul %282, %283, %cst_104 {dimension_numbers = #tpu.dot_dimension_numbers<[1], [0], [0], [1], [0, 0, 1, 1], [], []>} : vector<8x128xbf16>, vector<128x32xbf16>, vector<8x32xf32> -> vector<8x32xf32>
    %c10 = arith.constant 10 : index
    %c0_105 = arith.constant 0 : index
    %285 = vector.load %arg5[%c10, %c0_105] : memref<16x768xf32, #tpu.memory_space<vmem>>, vector<1x32xf32>
    %286 = vector.broadcast %285 : vector<1x32xf32> to vector<8x32xf32>
    %287 = arith.addf %284, %286 : vector<8x32xf32>
    %cst_106 = arith.constant 0.000000e+00 : f32
    %288 = vector.broadcast %cst_106 : f32 to vector<8x32xf32>
    %289 = arith.cmpf ogt, %287, %288 : vector<8x32xf32>
    %cst_107 = arith.constant 0.000000e+00 : f32
    %290 = vector.broadcast %cst_107 : f32 to vector<8x32xf32>
    %291 = arith.minimumf %287, %290 : vector<8x32xf32>
    %292 = math.exp %291 : vector<8x32xf32>
    %cst_108 = arith.constant 1.000000e+00 : f32
    %293 = vector.broadcast %cst_108 : f32 to vector<8x32xf32>
    %294 = arith.subf %292, %293 : vector<8x32xf32>
    %295 = arith.select %289, %287, %294 : vector<8x32xi1>, vector<8x32xf32>
    %cst_109 = arith.constant dense<0.000000e+00> : vector<32xf32>
    %296 = vector.multi_reduction <add>, %295, %cst_109 [0] : vector<8x32xf32> to vector<32xf32>
    %297 = vector.shape_cast %296 : vector<32xf32> to vector<1x32xf32>
    %cst_110 = arith.constant 8.000000e+00 : f32
    %298 = vector.broadcast %cst_110 : f32 to vector<1x32xf32>
    %299 = arith.divf %297, %298 : vector<1x32xf32>
    %300 = vector.broadcast %299 : vector<1x32xf32> to vector<8x32xf32>
    %301 = arith.subf %295, %300 : vector<8x32xf32>
    %302 = arith.mulf %301, %301 : vector<8x32xf32>
    %cst_111 = arith.constant dense<0.000000e+00> : vector<32xf32>
    %303 = vector.multi_reduction <add>, %302, %cst_111 [0] : vector<8x32xf32> to vector<32xf32>
    %304 = vector.shape_cast %303 : vector<32xf32> to vector<1x32xf32>
    %cst_112 = arith.constant 8.000000e+00 : f32
    %305 = vector.broadcast %cst_112 : f32 to vector<1x32xf32>
    %306 = arith.divf %304, %305 : vector<1x32xf32>
    %307 = vector.broadcast %299 : vector<1x32xf32> to vector<8x32xf32>
    %308 = arith.subf %295, %307 : vector<8x32xf32>
    %cst_113 = arith.constant 9.99999974E-6 : f32
    %309 = vector.broadcast %cst_113 : f32 to vector<1x32xf32>
    %310 = arith.addf %306, %309 : vector<1x32xf32>
    %311 = math.rsqrt %310 : vector<1x32xf32>
    %312 = vector.broadcast %311 : vector<1x32xf32> to vector<8x32xf32>
    %313 = arith.mulf %308, %312 : vector<8x32xf32>
    %314 = arith.truncf %313 : vector<8x32xf32> to vector<8x32xbf16>
    %c1008 = arith.constant 1008 : index
    %c0_114 = arith.constant 0 : index
    %315 = vector.load %arg4[%c1008, %c0_114] : memref<1040x256xbf16, #tpu.memory_space<vmem>>, vector<32x128xbf16>
    %cst_115 = arith.constant dense<0.000000e+00> : vector<8x128xf32>
    %316 = tpu.matmul %314, %315, %cst_115 {dimension_numbers = #tpu.dot_dimension_numbers<[1], [0], [0], [1], [0, 0, 1, 1], [], []>} : vector<8x32xbf16>, vector<32x128xbf16>, vector<8x128xf32> -> vector<8x128xf32>
    %c11 = arith.constant 11 : index
    %c0_116 = arith.constant 0 : index
    %317 = vector.load %arg5[%c11, %c0_116] : memref<16x768xf32, #tpu.memory_space<vmem>>, vector<1x128xf32>
    %318 = vector.broadcast %317 : vector<1x128xf32> to vector<8x128xf32>
    %319 = arith.addf %316, %318 : vector<8x128xf32>
    %c0_117 = arith.constant 0 : index
    %c0_118 = arith.constant 0 : index
    %320 = vector.load %arg6[%c0_117, %c0_118] : memref<8x128xf32, #tpu.memory_space<vmem>>, vector<8x128xf32>
    tpu.vector_store %arg6[%c0_117, %c0_118], %319 {strides = array<i32>} : memref<8x128xf32, #tpu.memory_space<vmem>>, vector<8x128xf32>,
    return
  }
}

</mosaic_0001>

<bundles_post_ra>
// kernel: forward_v0.1
= control target key start
LH: loop header
LB: loop body
LE: loop exit
PB: predicated region body
PF: predicated region fallthrough
CT: control target
= control target key end

     0   :  { %11 = vsyncpa [#allocation3], 0  ;;  %s9393_s0 = inlined_call_operand.vmem [shape: f32[8,260], index: 0, kind: input, shape index: {}]   ;;  %s9394_s1 = inlined_call_operand.hbm [shape: f32[8,5], index: 1, kind: input, shape index: {}]   ;;  %s9395_s2 = inlined_call_operand.hbm [shape: bf16[1184,768], index: 2, kind: input, shape index: {}]   ;;  %s9396_s3 = inlined_call_operand.hbm [shape: bf16[992,512], index: 3, kind: input, shape index: {}]   ;;  %s9397_s4 = inlined_call_operand.hbm [shape: bf16[1040,256], index: 4, kind: input, shape index: {}]   ;;  %s9398_s5 = inlined_call_operand.hbm [shape: f32[16,768], index: 5, kind: input, shape index: {}]   ;;  %s9399_s6 = inlined_call_operand.hbm [shape: f32[8,128], index: 6, kind: output, shape index: {}]  }
   0x1   :  { %12 = vsyncpa [#allocation6], 0 }
   0x2   :  { %13 = vsyncpa [#allocation9], 0 }
   0x3   :  { %14 = vsyncpa [#allocation4], 0  ;;  %s8940_s21 = smov [#allocation5]   ;;  %s8800_s25 = scalar_lea.hbm %s9395_s2, 56832 }
   0x4   :  { %s32_s22 = sshll.u32 %s8940_s21, 4  ;;  %p8801_p0 = scmp.ne.s32.totalorder %s9395_s2, %s8800_s25  ;;  %s33_s22 = int_to_ptr.vmem [resolvable:$true] %s32_s22 }
   0x5   :  { %p8804_p1 = scmp.lt.u32.totalorder %s8800_s25, %s9395_s2 }
   0x7   :  { %p8806_p2 = pnand %p8804_p1, %p8801_p0 }
   0x9   :  { %8809 = shalt.err (!%p8806_p2)
}
   0xa   :  { %s8810_s30 = scalar_lea.vmem %s33_s22, 56832  ;;  %p8815_p4 = scmp.lt.s32.totalorder %s33_s22, %s33_s22 }
   0xb   :  { %p8811_p3 = scmp.ne.s32.totalorder %s33_s22, %s8810_s30  ;;  %p8816_p5 = scmp.lt.s32.totalorder %s8810_s30, %s8810_s30 }
   0xd   :  { %p8817_p6 = por %p8816_p5, %p8815_p4 }
   0xf   :  { %p8818_p7 = pnand %p8817_p6, %p8811_p3 }
  0x11   :  { %8821 = shalt.err (!%p8818_p7)
}
  0x12   :  { %s8941_s7 = smov 384   ;;  %s8942_s8 = smov 24  }
  0x13   :  { %38 = dma.hbm_to_vmem [thread:$0]  %s9395_s2, 56832, %s33_s22, [#allocation6], %s8941_s7, %s8941_s7, %s8942_s8  }
  0x14   :  { %s8943_s11 = smov [#allocation8]   ;;  %s8822_s15 = scalar_lea.hbm %s9397_s4, 16640 }
  0x15   :  { %s56_s12 = sshll.u32 %s8943_s11, 4  ;;  %p8823_p8 = scmp.ne.s32.totalorder %s9397_s4, %s8822_s15  ;;  %s57_s12 = int_to_ptr.vmem [resolvable:$true] %s56_s12 }
  0x16   :  { %p8826_p9 = scmp.lt.u32.totalorder %s8822_s15, %s9397_s4 }
  0x18   :  { %p8828_p10 = pnand %p8826_p9, %p8823_p8 }
  0x1a   :  { %8831 = shalt.err (!%p8828_p10)
}
  0x1b   :  { %s8832_s20 = scalar_lea.vmem %s57_s12, 16640  ;;  %p8837_p12 = scmp.lt.s32.totalorder %s57_s12, %s57_s12 }
  0x1c   :  { %p8833_p11 = scmp.ne.s32.totalorder %s57_s12, %s8832_s20  ;;  %p8838_p13 = scmp.lt.s32.totalorder %s8832_s20, %s8832_s20 }
  0x1e   :  { %p8839_p0 = por %p8838_p13, %p8837_p12 }
  0x20   :  { %p8840_p1 = pnand %p8839_p0, %p8833_p11 }
  0x22   :  { %8843 = shalt.err (!%p8840_p1)
}
  0x23   :  { %s8944_s2 = smov 128   ;;  %s8945_s21 = smov 8  }
  0x24   :  { %62 = dma.hbm_to_vmem [thread:$0]  %s9397_s4, 16640, %s57_s12, [#allocation9], %s8944_s2, %s8944_s2, %s8945_s21  }
  0x25   :  { %s8946_s24 = smov [#allocation2]   ;;  %s8947_s26 = smov [#allocation7]  }
  0x26   :  { %s23_s25 = sshll.u32 %s8946_s24, 4  ;;  %s44_s27 = sshll.u32 %s8947_s26, 4  ;;  %s24_s25 = int_to_ptr.vmem [resolvable:$true] %s23_s25  ;;  %s9017_s27 = int_to_ptr.vmem [resolvable:$true] %s44_s27 }
  0x27   :  { %s8844_s30 = scalar_lea.hbm %s9394_s1, 128 }
  0x28   :  { %p8845_p2 = scmp.ne.s32.totalorder %s9394_s1, %s8844_s30  ;;  %p8848_p3 = scmp.lt.u32.totalorder %s8844_s30, %s9394_s1 }
  0x2a   :  { %p8850_p4 = pnand %p8848_p3, %p8845_p2 }
  0x2c   :  { %8853 = shalt.err (!%p8850_p4)
}
  0x2d   :  { %s8854_s4 = scalar_lea.vmem %s24_s25, 128  ;;  %p8859_p6 = scmp.lt.s32.totalorder %s24_s25, %s24_s25 }
  0x2e   :  { %p8855_p5 = scmp.ne.s32.totalorder %s24_s25, %s8854_s4  ;;  %p8860_p7 = scmp.lt.s32.totalorder %s8854_s4, %s8854_s4 }
  0x30   :  { %p8861_p8 = por %p8860_p7, %p8859_p6 }
  0x32   :  { %p8862_p9 = pnand %p8861_p8, %p8855_p5 }
  0x34   :  { %8865 = shalt.err (!%p8862_p9)
}
  0x35   :  { %26 = dma.hbm_to_vmem [thread:$0]  %s9394_s1, 128, %s24_s25, [#allocation3]  }
  0x36   :  { %s8866_s15 = scalar_lea.hbm %s9396_s3, 31744 }
  0x37   :  { %p8867_p10 = scmp.ne.s32.totalorder %s9396_s3, %s8866_s15  ;;  %p8870_p11 = scmp.lt.u32.totalorder %s8866_s15, %s9396_s3 }
  0x39   :  { %p8872_p12 = pnand %p8870_p11, %p8867_p10 }
  0x3b   :  { %8875 = shalt.err (!%p8872_p12)
}
  0x3c   :  { %s8876_s20 = scalar_lea.vmem %s9017_s27, 31744  ;;  %p8881_p0 = scmp.lt.s32.totalorder %s9017_s27, %s9017_s27 }
  0x3d   :  { %p8877_p13 = scmp.ne.s32.totalorder %s9017_s27, %s8876_s20  ;;  %p8882_p1 = scmp.lt.s32.totalorder %s8876_s20, %s8876_s20 }
  0x3f   :  { %p8883_p2 = por %p8882_p1, %p8881_p0 }
  0x41   :  { %p8884_p3 = pnand %p8883_p2, %p8877_p13 }
  0x43   :  { %8887 = shalt.err (!%p8884_p3)
}
  0x44   :  { %s8948_s1 = smov 256   ;;  %s8949_s2 = smov 16  }
  0x45   :  { %50 = dma.hbm_to_vmem [thread:$0]  %s9396_s3, 31744, %s9017_s27, [#allocation6], %s8948_s1, %s8948_s1, %s8949_s2  }
  0x46   :  { %s8950_s23 = smov [#allocation10]   ;;  %s8888_s28 = scalar_lea.hbm %s9398_s5, 1536 }
  0x47   :  { %s68_s24 = sshll.u32 %s8950_s23, 4  ;;  %p8889_p4 = scmp.ne.s32.totalorder %s9398_s5, %s8888_s28  ;;  %s69_s24 = int_to_ptr.vmem [resolvable:$true] %s68_s24 }
  0x48   :  { %p8892_p5 = scmp.lt.u32.totalorder %s8888_s28, %s9398_s5 }
  0x4a   :  { %p8894_p6 = pnand %p8892_p5, %p8889_p4 }
  0x4c   :  { %8897 = shalt.err (!%p8894_p6)
}
  0x4d   :  { %s8898_s9 = scalar_lea.vmem %s69_s24, 1536  ;;  %p8903_p8 = scmp.lt.s32.totalorder %s69_s24, %s69_s24 }
  0x4e   :  { %p8899_p7 = scmp.ne.s32.totalorder %s69_s24, %s8898_s9  ;;  %p8904_p9 = scmp.lt.s32.totalorder %s8898_s9, %s8898_s9 }
  0x50   :  { %p8905_p10 = por %p8904_p9, %p8903_p8 }
  0x52   :  { %p8906_p11 = pnand %p8905_p10, %p8899_p7 }
  0x54   :  { %8909 = shalt.err (!%p8906_p11)
}
  0x55   :  { %s8951_s3 = smov 768   ;;  %s8952_s27 = smov 48  }
  0x56   :  { %74 = dma.hbm_to_vmem [thread:$0]  %s9398_s5, 1536, %s69_s24, [#allocation9], %s8951_s3, %s8951_s3, %s8952_s27  }
  0x57   :  { %8932 = dma.done.wait [#allocation3], 128  }
  0x58   :  { %8933 = vsyncadd [#allocation3], 4294967168 }
  0x59   :  { %8934 = dma.done.wait [#allocation6], 88576  }
  0x5a   :  { %8935 = vsyncadd [#allocation6], 4294878720 }
  0x5b   :  { %8936 = dma.done.wait [#allocation9], 18176  }
  0x5c   :  { %8937 = vsyncadd [#allocation9], 4294949120  ;;  %v8953_v0 = vmov 0   ;;  %v7739_v1 = vld [vmem:[#allocation7 + $0x4] ss:$16 sps:$4 sm:$0xff]   ;;  %vm519_vm0 = vcmask 1041408  }
  0x5d   :  { %605 = vmatprep.mubr.bf16.mxu1 %v8953_v0  ;;  %v161_v2 = vld [vmem:[#allocation7 + $0x200] sm:$0x33]  ;;  %532 = vmatprep.subr.bf16.mxu0 %v7739_v1  ;;  %v93_v7 = vld [vmem:[%s9393_s0 + $0x10] sm:$0xff]  ;;  %vm515_vm1 = vcmask 31744   ;;  %vm702_vm2 = vcmask 637952   ;;  %vm1831_vm3 = vcmask 1046528  }
  0x5e   :  { %v7742_v3 = vld [vmem:[#allocation7] ss:$16 sps:$4 sm:$0xff]   ;;  %v6750_v4 = vcombine.high %v161_v2, %v161_v2  ;;  %v6749_v5 = vcombine.low %v161_v2, %v161_v2  ;;  %v7744_v6 = vld [vmem:[#allocation7 + $0x24] ss:$16 sps:$4 sm:$0xff]   ;;  %v7746_v8 = vld [vmem:[#allocation7 + $0x8] ss:$16 sps:$4 sm:$0xff]   ;;  %v9066_v10 = vpack.c.bf16 %v93_v7, %v93_v7 }
  0x5f   :  { %533 = vmatpush1.bf16.msra.mxu0 %v7742_v3  ;;  %v7748_v11 = vld [vmem:[#allocation7 + $0xc] ss:$16 sps:$4 sm:$0xff]   ;;  %v7749_v12 = vld [vmem:[#allocation7 + $0x20] ss:$16 sps:$4 sm:$0xff]   ;;  %v7750_v13 = vld [vmem:[#allocation7 + $0x44] ss:$16 sps:$4 sm:$0xff]  }
  0x60   :  { %6753 = vmatprep.subr.msk.bf16.mxu1 %vm519_vm0, %v6750_v4  ;;  %v521_v9 = vsel %vm519_vm0, %v6749_v5, 0  ;;  %534 = vmatprep.subr.bf16.mxu0 %v7744_v6  ;;  %v7754_v14 = vld [vmem:[#allocation7 + $0x2c] ss:$16 sps:$4 sm:$0xff]   ;;  %v7755_v15 = vld [vmem:[#allocation7 + $0x40] ss:$16 sps:$4 sm:$0xff]   ;;  %vm2106_vm4 = vcmask 654336  }
  0x61   :  { %574 = vmatpush1.bf16.msra.mxu1 %v521_v9  ;;  %v7756_v16 = vld [vmem:[#allocation7 + $0x64] ss:$16 sps:$4 sm:$0xff]   ;;  %v7752_v17 = vld [vmem:[#allocation7 + $0x28] ss:$16 sps:$4 sm:$0xff]   ;;  %v7760_v18 = vld [vmem:[#allocation7 + $0x4c] ss:$16 sps:$4 sm:$0xff]  }
  0x62   :  { %614 = vmatprep.subr.bf16.mxu1 %v7748_v11  ;;  %v7761_v19 = vld [vmem:[#allocation7 + $0x60] ss:$16 sps:$4 sm:$0xff]   ;;  %v7762_v20 = vld [vmem:[#allocation7 + $0x84] ss:$16 sps:$4 sm:$0xff]   ;;  %v7758_v21 = vld [vmem:[#allocation7 + $0x48] ss:$16 sps:$4 sm:$0xff]  }
  0x63   :  { %535 = vmatpush1.bf16.msra.mxu0 %v7749_v12  ;;  %v7766_v22 = vld [vmem:[#allocation7 + $0x6c] ss:$16 sps:$4 sm:$0xff]   ;;  %v7767_v23 = vld [vmem:[#allocation7 + $0x80] ss:$16 sps:$4 sm:$0xff]   ;;  %v7768_v24 = vld [vmem:[#allocation7 + $0xa4] ss:$16 sps:$4 sm:$0xff]  }
  0x64   :  { %6754 = vmatmul.mubr.msk.bf16.vlgmr.msra.gmra.mrb[0].mxu1 %vm515_vm1, %v9066_v10  ;;  %536 = vmatprep.subr.bf16.mxu0 %v7750_v13  ;;  %v7764_v25 = vld [vmem:[#allocation7 + $0x68] ss:$16 sps:$4 sm:$0xff]   ;;  %v7772_v26 = vld [vmem:[#allocation7 + $0x8c] ss:$16 sps:$4 sm:$0xff]   ;;  %v7773_v27 = vld [vmem:[#allocation7 + $0xa0] ss:$16 sps:$4 sm:$0xff]  }
  0x65   :  { %615 = vmatpush1.bf16.msra.mxu1 %v7746_v8  ;;  %v7774_v28 = vld [vmem:[#allocation7 + $0xc4] ss:$16 sps:$4 sm:$0xff]   ;;  %v7770_v29 = vld [vmem:[#allocation7 + $0x88] ss:$16 sps:$4 sm:$0xff]   ;;  %v7778_v30 = vld [vmem:[#allocation7 + $0xac] ss:$16 sps:$4 sm:$0xff]  }
  0x66   :  { %616 = vmatprep.subr.bf16.mxu1 %v7754_v14  ;;  %v7779_v31 = vld [vmem:[#allocation7 + $0xc0] ss:$16 sps:$4 sm:$0xff]   ;;  %v7780_v32 = vld [vmem:[#allocation7 + $0xe4] ss:$16 sps:$4 sm:$0xff]   ;;  %v7776_v33 = vld [vmem:[#allocation7 + $0xa8] ss:$16 sps:$4 sm:$0xff]  }
  0x67   :  { %537 = vmatpush1.bf16.msra.mxu0 %v7755_v15  ;;  %v7784_v34 = vld [vmem:[#allocation7 + $0xcc] ss:$16 sps:$4 sm:$0xff]   ;;  %v7785_v35 = vld [vmem:[#allocation7 + $0xe0] ss:$16 sps:$4 sm:$0xff]   ;;  %v7786_v36 = vld [vmem:[#allocation7 + $0x104] ss:$16 sps:$4 sm:$0xff]  }
  0x68   :  { %538 = vmatprep.subr.bf16.mxu0 %v7756_v16  ;;  %v7782_v37 = vld [vmem:[#allocation7 + $0xc8] ss:$16 sps:$4 sm:$0xff]   ;;  %v7790_v38 = vld [vmem:[#allocation7 + $0xec] ss:$16 sps:$4 sm:$0xff]   ;;  %v7791_v39 = vld [vmem:[#allocation7 + $0x100] ss:$16 sps:$4 sm:$0xff]  }
  0x69   :  { %617 = vmatpush1.bf16.msra.mxu1 %v7752_v17  ;;  %v7792_v40 = vld [vmem:[#allocation7 + $0x124] ss:$16 sps:$4 sm:$0xff]   ;;  %v7788_v41 = vld [vmem:[#allocation7 + $0xe8] ss:$16 sps:$4 sm:$0xff]   ;;  %v7796_v42 = vld [vmem:[#allocation7 + $0x10c] ss:$16 sps:$4 sm:$0xff]  }
  0x6a   :  { %618 = vmatprep.subr.bf16.mxu1 %v7760_v18  ;;  %v7797_v43 = vld [vmem:[#allocation7 + $0x120] ss:$16 sps:$4 sm:$0xff]   ;;  %v7798_v44 = vld [vmem:[#allocation7 + $0x144] ss:$16 sps:$4 sm:$0xff]   ;;  %v7794_v45 = vld [vmem:[#allocation7 + $0x108] ss:$16 sps:$4 sm:$0xff]  }
  0x6b   :  { %539 = vmatpush1.bf16.msra.mxu0 %v7761_v19  ;;  %v7802_v46 = vld [vmem:[#allocation7 + $0x12c] ss:$16 sps:$4 sm:$0xff]   ;;  %v7803_v47 = vld [vmem:[#allocation7 + $0x140] ss:$16 sps:$4 sm:$0xff]   ;;  %v7804_v48 = vld [vmem:[#allocation7 + $0x164] ss:$16 sps:$4 sm:$0xff]  }
  0x6c   :  { %540 = vmatprep.subr.bf16.mxu0 %v7762_v20  ;;  %v7800_v49 = vld [vmem:[#allocation7 + $0x128] ss:$16 sps:$4 sm:$0xff]   ;;  %v7808_v50 = vld [vmem:[#allocation7 + $0x14c] ss:$16 sps:$4 sm:$0xff]   ;;  %v92_v51 = vld [vmem:[%s9393_s0 + $0x8] sm:$0xff]  ;;  %vm5436_vm5 = vcmask 850944  }
  0x6d   :  { %619 = vmatpush1.bf16.msra.mxu1 %v7758_v21  ;;  %v7806_v52 = vld [vmem:[#allocation7 + $0x148] ss:$16 sps:$4 sm:$0xff]   ;;  %v7809_v53 = vld [vmem:[#allocation7 + $0x160] ss:$16 sps:$4 sm:$0xff]   ;;  %v7810_v54 = vld [vmem:[#allocation7 + $0x184] ss:$16 sps:$4 sm:$0xff]   ;;  %v95_v55 = vpack.c.bf16 %v92_v51, %v92_v51  ;;  %v165_v21 = vlaneseq }
  0x6e   :  { %620 = vmatprep.subr.bf16.mxu1 %v7766_v22  ;;  %v7814_v56 = vld [vmem:[#allocation7 + $0x16c] ss:$16 sps:$4 sm:$0xff]   ;;  %v7815_v57 = vld [vmem:[#allocation7 + $0x180] ss:$16 sps:$4 sm:$0xff]   ;;  %v7816_v58 = vld [vmem:[#allocation7 + $0x1a4] ss:$16 sps:$4 sm:$0xff]  }
  0x6f   :  { %541 = vmatpush1.bf16.msra.mxu0 %v7767_v23  ;;  %564 = vmatprep.mubr.bf16.mxu0 %v95_v55  ;;  %v7812_v59 = vld [vmem:[#allocation7 + $0x168] ss:$16 sps:$4 sm:$0xff]   ;;  %v7820_v60 = vld [vmem:[#allocation7 + $0x18c] ss:$16 sps:$4 sm:$0xff]   ;;  %v7821_v61 = vld [vmem:[#allocation7 + $0x1a0] ss:$16 sps:$4 sm:$0xff]  }
  0x70   :  { %542 = vmatprep.subr.bf16.mxu0 %v7768_v24  ;;  %646 = vmatprep.mubr.bf16.mxu1 %v95_v55  ;;  %v7822_v62 = vld [vmem:[#allocation7 + $0x1c4] ss:$16 sps:$4 sm:$0xff]   ;;  %v7818_v63 = vld [vmem:[#allocation7 + $0x188] ss:$16 sps:$4 sm:$0xff]   ;;  %v7826_v1 = vld [vmem:[#allocation7 + $0x1ac] ss:$16 sps:$4 sm:$0xff]  }
  0x71   :  { %621 = vmatpush1.bf16.msra.mxu1 %v7764_v25  ;;  %v7827_v2 = vld [vmem:[#allocation7 + $0x1c0] ss:$16 sps:$4 sm:$0xff]   ;;  %v7828_v3 = vld [vmem:[#allocation7 + $0x1e4] ss:$16 sps:$4 sm:$0xff]   ;;  %v7824_v4 = vld [vmem:[#allocation7 + $0x1a8] ss:$16 sps:$4 sm:$0xff]  }
  0x72   :  { %622 = vmatprep.subr.bf16.mxu1 %v7772_v26  ;;  %v7832_v5 = vld [vmem:[#allocation7 + $0x1cc] ss:$16 sps:$4 sm:$0xff]   ;;  %v7833_v6 = vld [vmem:[#allocation7 + $0x1e0] ss:$16 sps:$4 sm:$0xff]   ;;  %v7830_v8 = vld [vmem:[#allocation7 + $0x1c8] ss:$16 sps:$4 sm:$0xff]  }
  0x73   :  { %543 = vmatpush1.bf16.msra.mxu0 %v7773_v27  ;;  %v91_v7 = vld [vmem:[%s9393_s0] sm:$0xff]  ;;  %v162_v11 = vld [vmem:[#allocation7 + $0x208] sm:$0x33]  ;;  %v9081_v22 = vshrl.u32 %v165_v21, 7  ;;  %vm5536_vm6 = vcmask 1042432   ;;  %vm8956_vm7 = vmmov 0  }
  0x74   :  { %544 = vmatprep.subr.bf16.mxu0 %v7774_v28  ;;  %v7836_v9 = vld [vmem:[#allocation7 + $0x1ec] ss:$16 sps:$4 sm:$0xff]   ;;  %v94_v12 = vpack.c.bf16 %v91_v7, %v91_v7  ;;  %v7834_v13 = vld [vmem:[#allocation7 + $0x1e8] ss:$16 sps:$4 sm:$0xff]   ;;  %v6752_v14 = vcombine.high %v162_v11, %v162_v11  ;;  %v6751_v15 = vcombine.low %v162_v11, %v162_v11  ;;  %vm5532_vm8 = vcmask 39936   ;;  %s8957_s11 = smov [#allocation11]  }
  0x75   :  { %623 = vmatpush1.bf16.msra.mxu1 %v7770_v29  ;;  %v9084_v23 = vsub.s32 0, %v9081_v22  ;;  %v163_v24 = vld [vmem:[#allocation10] ss:$8 sm:$0xf]  ;;  %v9087_v25 = vsub.s32 1, %v9081_v22  ;;  %vm5720_vm9 = vcmask 1043456  }
  0x76   :  { %624 = vmatprep.subr.bf16.mxu1 %v7778_v30  ;;  %v527_v16 = vsel %vm519_vm0, %v6751_v15, 0  ;;  %v7839_v11 = vld [vmem:[#allocation5] ss:$24 sps:$4 sm:$0xff]   ;;  %v7847_v15 = vld [vmem:[#allocation5 + $0x34] ss:$24 sps:$4 sm:$0xff]   ;;  %vm5862_vm10 = vcmask 261120  }
  0x77   :  { %545 = vmatpush1.bf16.msra.mxu0 %v7779_v31  ;;  %v168_v26 = vrot.slane %v163_v24, %v9084_v23  ;;  %v172_v27 = vrot.slane %v163_v24, %v9087_v25  ;;  %v7851_v21 = vld [vmem:[#allocation5 + $0x60] ss:$24 sps:$4 sm:$0xff]   ;;  %vm5952_vm12 = vcmask 523264   ;;  %s6674_s12 = sshll.u32 %s8957_s11, 4  ;;  %s6675_s12 = int_to_ptr.vmem [resolvable:$true] %s6674_s12 }
  0x78   :  { %546 = vmatprep.subr.bf16.mxu0 %v7780_v32  ;;  %s8910_s5 = scalar_lea.vmem %s6675_s12, 128  ;;  %p8915_p13 = scmp.lt.s32.totalorder %s6675_s12, %s6675_s12 }
  0x79   :  { %625 = vmatpush1.bf16.msra.mxu1 %v7776_v33  ;;  %p8911_p12 = scmp.ne.s32.totalorder %s6675_s12, %s8910_s5  ;;  %p8916_p0 = scmp.lt.s32.totalorder %s8910_s5, %s8910_s5 }
  0x7a   :  { %626 = vmatprep.subr.bf16.mxu1 %v7784_v34 }
  0x7b   :  { %547 = vmatpush1.bf16.msra.mxu0 %v7785_v35  ;;  %v9092_v35 = vsub.s32 2, %v9081_v22  ;;  %p8917_p1 = por %p8916_p0, %p8915_p13 }
  0x7c   :  { %548 = vmatprep.subr.bf16.mxu0 %v7786_v36  ;;  %v9095_v36 = vsub.s32 3, %v9081_v22 }
  0x7d   :  { %627 = vmatpush1.bf16.msra.mxu1 %v7782_v37  ;;  %p8918_p2 = pnand %p8917_p1, %p8911_p12 }
  0x7e   :  { %628 = vmatprep.subr.bf16.mxu1 %v7790_v38 }
  0x7f   :  { %549 = vmatpush1.bf16.msra.mxu0 %v7791_v39  ;;  %v176_v39 = vrot.slane %v163_v24, %v9092_v35 }
  0x80   :  { %550 = vmatprep.subr.bf16.mxu0 %v7792_v40  ;;  %v180_v40 = vrot.slane %v163_v24, %v9095_v36  ;;  %v7854_v24 = vld [vmem:[#allocation5 + $0x68] ss:$24 sps:$4 sm:$0xff]  }
  0x81   :  { %629 = vmatpush1.bf16.msra.mxu1 %v7788_v41 }
  0x82   :  { %630 = vmatprep.subr.bf16.mxu1 %v7796_v42 }
  0x83   :  { %551 = vmatpush1.bf16.msra.mxu0 %v7797_v43 }
  0x84   :  { %552 = vmatprep.subr.bf16.mxu0 %v7798_v44 }
  0x85   :  { %631 = vmatpush1.bf16.msra.mxu1 %v7794_v45 }
  0x86   :  { %632 = vmatprep.subr.bf16.mxu1 %v7802_v46 }
  0x87   :  { %553 = vmatpush1.bf16.msra.mxu0 %v7803_v47 }
  0x88   :  { %554 = vmatprep.subr.bf16.mxu0 %v7804_v48 }
  0x89   :  { %633 = vmatpush1.bf16.msra.mxu1 %v7800_v49 }
  0x8a   :  { %634 = vmatprep.subr.bf16.mxu1 %v7808_v50 }
  0x8b   :  { %555 = vmatpush1.bf16.msra.mxu0 %v7809_v53 }
  0x8c   :  { %556 = vmatprep.subr.bf16.mxu0 %v7810_v54 }
  0x8d   :  { %635 = vmatpush1.bf16.msra.mxu1 %v7806_v52 }
  0x8e   :  { %636 = vmatprep.subr.bf16.mxu1 %v7814_v56 }
  0x8f   :  { %557 = vmatpush1.bf16.msra.mxu0 %v7815_v57 }
  0x90   :  { %558 = vmatprep.subr.bf16.mxu0 %v7816_v58 }
  0x91   :  { %637 = vmatpush1.bf16.msra.mxu1 %v7812_v59 }
  0x92   :  { %638 = vmatprep.subr.bf16.mxu1 %v7820_v60 }
  0x93   :  { %559 = vmatpush1.bf16.msra.mxu0 %v7821_v61 }
  0x94   :  { %560 = vmatprep.subr.bf16.mxu0 %v7822_v62 }
  0x95   :  { %639 = vmatpush1.bf16.msra.mxu1 %v7818_v63 }
  0x96   :  { %640 = vmatprep.subr.bf16.mxu1 %v7826_v1 }
  0x97   :  { %561 = vmatpush1.bf16.msra.mxu0 %v7827_v2 }
  0x98   :  { %562 = vmatprep.subr.bf16.mxu0 %v7828_v3 }
  0x99   :  { %641 = vmatpush1.bf16.msra.mxu1 %v7824_v4 }
  0x9a   :  { %642 = vmatprep.subr.bf16.mxu1 %v7832_v5 }
  0x9b   :  { %563 = vmatpush1.bf16.msra.mxu0 %v7833_v6 }
  0x9d   :  { %643 = vmatpush1.bf16.msra.mxu1 %v7830_v8 }
  0x9e   :  { %565 = vmatmul.mubr.bf16.vlgmr.msra.gmra.mrb[0].mxu0 %v94_v12  ;;  %644 = vmatprep.subr.bf16.mxu1 %v7836_v9 }
  0xa1   :  { %645 = vmatpush1.bf16.msra.mxu1 %v7834_v13  ;;  %v7842_v13 = vld [vmem:[#allocation5 + $0x8] ss:$24 sps:$4 sm:$0xff]  }
  0xa2   :  { %6755 = vmatprep.subr.msk.bf16.mxu1 %vm519_vm0, %v6752_v14  ;;  %v7844_v14 = vld [vmem:[#allocation5 + $0xc] ss:$24 sps:$4 sm:$0xff]  }
  0xa4   :  { %647 = vmatmul.mubr.bf16.vlgmr.msra.gmra.mrb[4].mxu1 %v94_v12  ;;  %v7841_v12 = vld [vmem:[#allocation5 + $0x4] ss:$24 sps:$4 sm:$0xff]  }
  0xa5   :  { %656 = vmatpush1.bf16.msra.mxu1 %v527_v16  ;;  %687 = vmatprep.mubr.bf16.mxu1 %v8953_v0  ;;  %v7850_v16 = vld [vmem:[#allocation5 + $0x3c] ss:$24 sps:$4 sm:$0xff]  }
  0xa6   :  { %1850 = vmatprep.subr.bf16.mxu0 %v7841_v12  ;;  %1932 = vmatprep.subr.bf16.mxu1 %v7844_v14  ;;  %v7920_v12 = vld [vmem:[#allocation5 + $0x278] ss:$24 sps:$4 sm:$0xff]   ;;  %v7928_v14 = vld [vmem:[#allocation5 + $0x2ac] ss:$24 sps:$4 sm:$0xff]  }
  0xa7   :  { %1851 = vmatpush1.bf16.msra.mxu0 %v7839_v11  ;;  %v7917_v11 = vld [vmem:[#allocation5 + $0x270] ss:$24 sps:$4 sm:$0xff]  }
  0xa8   :  { %1852 = vmatprep.subr.bf16.mxu0 %v7847_v15  ;;  %v7923_v15 = vld [vmem:[#allocation5 + $0x2a0] ss:$24 sps:$4 sm:$0xff]  }
  0xb0   :  { %6756 = vmatmul.mubr.msk.bf16.vlgmr.msra.gmra.mrb[4].mxu1 %vm515_vm1, %v9066_v10 }
  0xb1   :  { %1933 = vmatpush1.bf16.msra.mxu1 %v7842_v13  ;;  %v7925_v13 = vld [vmem:[#allocation5 + $0x2a4] ss:$24 sps:$4 sm:$0xff]  }
  0xb2   :  { %1934 = vmatprep.subr.bf16.mxu1 %v7850_v16  ;;  %v7926_v16 = vld [vmem:[#allocation5 + $0x2a8] ss:$24 sps:$4 sm:$0xff]  }
 0x137   :  { %v607_v17 = vpop.f32.mrb[0].mxu1 }
 0x138   :  { %v609_v18 = vpop.f32.mrb[1].mxu1 }
 0x139   :  { %v611_v19 = vpop.f32.mrb[2].mxu1 }
 0x13a   :  { %v612_v20 = vpop.f32.mrb[3].mxu1  ;;  %v7853_v19 = vld [vmem:[#allocation5 + $0x64] ss:$24 sps:$4 sm:$0xff]  }
 0x13b   :  { %v7856_v20 = vld [vmem:[#allocation5 + $0x6c] ss:$24 sps:$4 sm:$0xff]  }
 0x171   :  { %v566_v28 = vpop.f32.mrb[0].mxu0 }
 0x172   :  { %v567_v10 = vadd.f32 %v566_v28, %v168_v26  ;;  %v568_v29 = vpop.f32.mrb[1].mxu0  ;;  %v7857_v26 = vld [vmem:[#allocation5 + $0x90] ss:$24 sps:$4 sm:$0xff]  }
 0x173   :  { %v569_v30 = vadd.f32 %v568_v29, %v172_v27  ;;  %v570_v31 = vpop.f32.mrb[2].mxu0  ;;  %v7859_v27 = vld [vmem:[#allocation5 + $0x94] ss:$24 sps:$4 sm:$0xff]   ;;  %v7860_v28 = vld [vmem:[#allocation5 + $0x98] ss:$24 sps:$4 sm:$0xff]  }
 0x174   :  { %v608_v32 = vadd.f32 %v607_v17, %v567_v10  ;;  %v571_v33 = vpop.f32.mrb[3].mxu0  ;;  %v7845_v17 = vld [vmem:[#allocation5 + $0x30] ss:$24 sps:$4 sm:$0xff]   ;;  %v7862_v10 = vld [vmem:[#allocation5 + $0x9c] ss:$24 sps:$4 sm:$0xff]  }
 0x175   :  { %v610_v34 = vadd.f32 %v609_v18, %v569_v30  ;;  %v7848_v18 = vld [vmem:[#allocation5 + $0x38] ss:$24 sps:$4 sm:$0xff]   ;;  %1853 = vmatpush1.bf16.msra.mxu0 %v7845_v17  ;;  %v7865_v29 = vld [vmem:[#allocation5 + $0xc4] ss:$24 sps:$4 sm:$0xff]   ;;  %v7871_v33 = vld [vmem:[#allocation5 + $0xf4] ss:$24 sps:$4 sm:$0xff]  }
 0x176   :  { %v696_v37 = vmax.f32 %v608_v32, 0.0  ;;  %1935 = vmatpush1.bf16.msra.mxu1 %v7848_v18  ;;  %1854 = vmatprep.subr.bf16.mxu0 %v7853_v19  ;;  %v7868_v30 = vld [vmem:[#allocation5 + $0xcc] ss:$24 sps:$4 sm:$0xff]   ;;  %v7863_v31 = vld [vmem:[#allocation5 + $0xc0] ss:$24 sps:$4 sm:$0xff]  }
 0x177   :  { %v697_v38 = vmax.f32 %v610_v34, 0.0  ;;  %1936 = vmatprep.subr.bf16.mxu1 %v7856_v20  ;;  %v7866_v32 = vld [vmem:[#allocation5 + $0xc8] ss:$24 sps:$4 sm:$0xff]   ;;  %v7874_v34 = vld [vmem:[#allocation5 + $0xfc] ss:$24 sps:$4 sm:$0xff]  }
 0x178   :  { %v7931_v18 = vld [vmem:[#allocation5 + $0x2d4] ss:$24 sps:$4 sm:$0xff]  }
 0x179   :  { %v700_v48 = vadd.f32 %v697_v38, %v696_v37  ;;  %1855 = vmatpush1.bf16.msra.mxu0 %v7851_v21  ;;  %v7934_v19 = vld [vmem:[#allocation5 + $0x2dc] ss:$24 sps:$4 sm:$0xff]   ;;  %v7929_v21 = vld [vmem:[#allocation5 + $0x2d0] ss:$24 sps:$4 sm:$0xff]  }
 0x17a   :  { %1937 = vmatpush1.bf16.msra.mxu1 %v7854_v24  ;;  %1856 = vmatprep.subr.bf16.mxu0 %v7859_v27  ;;  %v7932_v24 = vld [vmem:[#allocation5 + $0x2d8] ss:$24 sps:$4 sm:$0xff]   ;;  %v7937_v27 = vld [vmem:[#allocation5 + $0x304] ss:$24 sps:$4 sm:$0xff]  }
 0x17b   :  { %1938 = vmatprep.subr.bf16.mxu1 %v7862_v10 }
 0x17d   :  { %1857 = vmatpush1.bf16.msra.mxu0 %v7857_v26 }
 0x17e   :  { %1939 = vmatpush1.bf16.msra.mxu1 %v7860_v28  ;;  %1858 = vmatprep.subr.bf16.mxu0 %v7865_v29  ;;  %v7940_v28 = vld [vmem:[#allocation5 + $0x30c] ss:$24 sps:$4 sm:$0xff]  }
 0x17f   :  { %1940 = vmatprep.subr.bf16.mxu1 %v7868_v30 }
 0x181   :  { %1859 = vmatpush1.bf16.msra.mxu0 %v7863_v31 }
 0x182   :  { %1941 = vmatpush1.bf16.msra.mxu1 %v7866_v32  ;;  %1860 = vmatprep.subr.bf16.mxu0 %v7871_v33 }
 0x183   :  { %v689_v41 = vpop.f32.mrb[4].mxu1  ;;  %1942 = vmatprep.subr.bf16.mxu1 %v7874_v34 }
 0x184   :  { %v7633_v42 = vadd.f32 %v689_v41, %v176_v39  ;;  %v691_v43 = vpop.f32.mrb[5].mxu1  ;;  %v7877_v39 = vld [vmem:[#allocation5 + $0x124] ss:$24 sps:$4 sm:$0xff]   ;;  %v7875_v41 = vld [vmem:[#allocation5 + $0x120] ss:$24 sps:$4 sm:$0xff]  }
 0x185   :  { %v7634_v44 = vadd.f32 %v691_v43, %v180_v40  ;;  %v693_v45 = vpop.f32.mrb[6].mxu1  ;;  %v7880_v40 = vld [vmem:[#allocation5 + $0x12c] ss:$24 sps:$4 sm:$0xff]  }
 0x186   :  { %v698_v46 = vmax.f32 %v7633_v42, 0.0  ;;  %v694_v47 = vpop.f32.mrb[7].mxu1  ;;  %v7878_v42 = vld [vmem:[#allocation5 + $0x128] ss:$24 sps:$4 sm:$0xff]   ;;  %v7883_v43 = vld [vmem:[#allocation5 + $0x154] ss:$24 sps:$4 sm:$0xff]  }
 0x187   :  { %v699_v49 = vmax.f32 %v7634_v44, 0.0  ;;  %v7886_v44 = vld [vmem:[#allocation5 + $0x15c] ss:$24 sps:$4 sm:$0xff]   ;;  %v7881_v45 = vld [vmem:[#allocation5 + $0x150] ss:$24 sps:$4 sm:$0xff]  }
 0x188   :  { %v701_v50 = vadd.f32 %v700_v48, %v698_v46  ;;  %v7889_v47 = vld [vmem:[#allocation5 + $0x184] ss:$24 sps:$4 sm:$0xff]  }
 0x189   :  { %v703_v51 = vsel %vm702_vm2, %v699_v49, 0.0  ;;  %v7892_v48 = vld [vmem:[#allocation5 + $0x18c] ss:$24 sps:$4 sm:$0xff]  }
 0x18a   :  { %v704_v52 = vadd.f32 %v703_v51, %v701_v50  ;;  %v7890_v50 = vld [vmem:[#allocation5 + $0x188] ss:$24 sps:$4 sm:$0xff]   ;;  %v7895_v51 = vld [vmem:[#allocation5 + $0x1b4] ss:$24 sps:$4 sm:$0xff]  }
 0x18c   :  { %705 = vadd.xlane.f32.xlu0 %v704_v52  ;;  %v7898_v52 = vld [vmem:[#allocation5 + $0x1bc] ss:$24 sps:$4 sm:$0xff]  }
 0x219   :  { %v706_v53 = vpop.xlane.xlu0 %705 }
 0x21a   :  { %v707_v54 = vrot.slane %v706_v53, 4 }
 0x21c   :  { %v708_v55 = vadd.f32 %v707_v54, %v706_v53  ;;  %v7893_v53 = vld [vmem:[#allocation5 + $0x1b0] ss:$24 sps:$4 sm:$0xff]  }
 0x21d   :  { %v7896_v54 = vld [vmem:[#allocation5 + $0x1b8] ss:$24 sps:$4 sm:$0xff]  }
 0x21e   :  { %v709_v56 = vrot.slane %v708_v55, 2 }
 0x220   :  { %v710_v57 = vadd.f32 %v709_v56, %v708_v55  ;;  %v7901_v55 = vld [vmem:[#allocation5 + $0x1e4] ss:$24 sps:$4 sm:$0xff]  }
 0x221   :  { %v7904_v56 = vld [vmem:[#allocation5 + $0x1ec] ss:$24 sps:$4 sm:$0xff]  }
 0x222   :  { %v711_v58 = vrot.slane %v710_v57, 1 }
 0x224   :  { %v712_v59 = vadd.f32 %v711_v58, %v710_v57  ;;  %v7899_v57 = vld [vmem:[#allocation5 + $0x1e0] ss:$24 sps:$4 sm:$0xff]  }
 0x225   :  { %v7902_v58 = vld [vmem:[#allocation5 + $0x1e8] ss:$24 sps:$4 sm:$0xff]  }
 0x226   :  { %7697 = vpush %v712_v59  ;;  %v7907_v59 = vld [vmem:[#allocation5 + $0x214] ss:$24 sps:$4 sm:$0xff]  }
 0x257   :  { %s7698_s0 = spop %7697 }
 0x258   :  { %s716_s16 = smul.f32 0.00027056277, %s7698_s0 }
 0x25a   :  { %v717_v60 = vstv %s716_s16 }
 0x25b   :  { %v9100_v61 = vsub.f32 %v696_v37, %v717_v60  ;;  %v9102_v62 = vsub.f32 %v697_v38, %v717_v60  ;;  %v9104_v63 = vsub.f32 %v698_v46, %v717_v60  ;;  %v9106_v1 = vsub.f32 %v699_v49, %v717_v60  ;;  %v7869_v37 = vld [vmem:[#allocation5 + $0xf0] ss:$24 sps:$4 sm:$0xff]   ;;  %v7887_v49 = vld [vmem:[#allocation5 + $0x180] ss:$24 sps:$4 sm:$0xff]   ;;  %v7910_v60 = vld [vmem:[#allocation5 + $0x21c] ss:$24 sps:$4 sm:$0xff]  }
 0x25c   :  { %v7872_v38 = vld [vmem:[#allocation5 + $0xf8] ss:$24 sps:$4 sm:$0xff]   ;;  %1861 = vmatpush1.bf16.msra.mxu0 %v7869_v37 }
 0x25d   :  { %v722_v2 = vmul.f32 %v9100_v61, %v9100_v61  ;;  %v723_v3 = vmul.f32 %v9102_v62, %v9102_v62  ;;  %v725_v4 = vmul.f32 %v9106_v1, %v9106_v1  ;;  %v724_v5 = vmul.f32 %v9104_v63, %v9104_v63  ;;  %1943 = vmatpush1.bf16.msra.mxu1 %v7872_v38  ;;  %v7884_v46 = vld [vmem:[#allocation5 + $0x158] ss:$24 sps:$4 sm:$0xff]  }
 0x25e   :  { %1862 = vmatprep.subr.bf16.mxu0 %v7877_v39  ;;  %1944 = vmatprep.subr.bf16.mxu1 %v7880_v40 }
 0x25f   :  { %v726_v6 = vadd.f32 %v723_v3, %v722_v2  ;;  %v728_v8 = vsel %vm702_vm2, %v725_v4, 0.0  ;;  %v7905_v2 = vld [vmem:[#allocation5 + $0x210] ss:$24 sps:$4 sm:$0xff]   ;;  %v7913_v4 = vld [vmem:[#allocation5 + $0x244] ss:$24 sps:$4 sm:$0xff]  }
 0x260   :  { %1863 = vmatpush1.bf16.msra.mxu0 %v7875_v41  ;;  %v7908_v3 = vld [vmem:[#allocation5 + $0x218] ss:$24 sps:$4 sm:$0xff]  }
 0x261   :  { %v727_v7 = vadd.f32 %v726_v6, %v724_v5  ;;  %1945 = vmatpush1.bf16.msra.mxu1 %v7878_v42  ;;  %1864 = vmatprep.subr.bf16.mxu0 %v7883_v43  ;;  %v7916_v5 = vld [vmem:[#allocation5 + $0x24c] ss:$24 sps:$4 sm:$0xff]   ;;  %v7911_v6 = vld [vmem:[#allocation5 + $0x240] ss:$24 sps:$4 sm:$0xff]  }
 0x262   :  { %1946 = vmatprep.subr.bf16.mxu1 %v7886_v44  ;;  %v7935_v42 = vld [vmem:[#allocation5 + $0x300] ss:$24 sps:$4 sm:$0xff]   ;;  %v7943_v44 = vld [vmem:[#allocation5 + $0x334] ss:$24 sps:$4 sm:$0xff]  }
 0x263   :  { %v729_v9 = vadd.f32 %v728_v8, %v727_v7  ;;  %v7914_v7 = vld [vmem:[#allocation5 + $0x248] ss:$24 sps:$4 sm:$0xff]   ;;  %v7919_v8 = vld [vmem:[#allocation5 + $0x274] ss:$24 sps:$4 sm:$0xff]  }
 0x264   :  { %1865 = vmatpush1.bf16.msra.mxu0 %v7881_v45  ;;  %v7938_v43 = vld [vmem:[#allocation5 + $0x308] ss:$24 sps:$4 sm:$0xff]   ;;  %v7946_v45 = vld [vmem:[#allocation5 + $0x33c] ss:$24 sps:$4 sm:$0xff]  }
 0x265   :  { %730 = vadd.xlane.f32.xlu0 %v729_v9  ;;  %1947 = vmatpush1.bf16.msra.mxu1 %v7884_v46  ;;  %v7922_v9 = vld [vmem:[#allocation5 + $0x27c] ss:$24 sps:$4 sm:$0xff]  }
 0x266   :  { %1866 = vmatprep.subr.bf16.mxu0 %v7889_v47  ;;  %1948 = vmatprep.subr.bf16.mxu1 %v7892_v48  ;;  %v7952_v47 = vld [vmem:[#allocation5 + $0x36c] ss:$24 sps:$4 sm:$0xff]   ;;  %v7947_v48 = vld [vmem:[#allocation5 + $0x360] ss:$24 sps:$4 sm:$0xff]  }
 0x268   :  { %1867 = vmatpush1.bf16.msra.mxu0 %v7887_v49  ;;  %v7950_v49 = vld [vmem:[#allocation5 + $0x368] ss:$24 sps:$4 sm:$0xff]  }
 0x269   :  { %1949 = vmatpush1.bf16.msra.mxu1 %v7890_v50  ;;  %1868 = vmatprep.subr.bf16.mxu0 %v7895_v51  ;;  %v7955_v50 = vld [vmem:[#allocation5 + $0x394] ss:$24 sps:$4 sm:$0xff]  }
 0x26a   :  { %1950 = vmatprep.subr.bf16.mxu1 %v7898_v52  ;;  %v7958_v51 = vld [vmem:[#allocation5 + $0x39c] ss:$24 sps:$4 sm:$0xff]   ;;  %v7953_v52 = vld [vmem:[#allocation5 + $0x390] ss:$24 sps:$4 sm:$0xff]  }
 0x26c   :  { %1869 = vmatpush1.bf16.msra.mxu0 %v7893_v53  ;;  %v7956_v53 = vld [vmem:[#allocation5 + $0x398] ss:$24 sps:$4 sm:$0xff]  }
 0x26d   :  { %1951 = vmatpush1.bf16.msra.mxu1 %v7896_v54  ;;  %1870 = vmatprep.subr.bf16.mxu0 %v7901_v55  ;;  %v7961_v54 = vld [vmem:[#allocation5 + $0x3c4] ss:$24 sps:$4 sm:$0xff]  }
 0x26e   :  { %1952 = vmatprep.subr.bf16.mxu1 %v7904_v56  ;;  %v7964_v55 = vld [vmem:[#allocation5 + $0x3cc] ss:$24 sps:$4 sm:$0xff]   ;;  %v7959_v56 = vld [vmem:[#allocation5 + $0x3c0] ss:$24 sps:$4 sm:$0xff]  }
 0x270   :  { %1871 = vmatpush1.bf16.msra.mxu0 %v7899_v57  ;;  %v7962_v57 = vld [vmem:[#allocation5 + $0x3c8] ss:$24 sps:$4 sm:$0xff]  }
 0x271   :  { %1953 = vmatpush1.bf16.msra.mxu1 %v7902_v58  ;;  %1872 = vmatprep.subr.bf16.mxu0 %v7907_v59  ;;  %v7967_v58 = vld [vmem:[#allocation5 + $0x3f4] ss:$24 sps:$4 sm:$0xff]  }
 0x272   :  { %1954 = vmatprep.subr.bf16.mxu1 %v7910_v60  ;;  %v7970_v59 = vld [vmem:[#allocation5 + $0x3fc] ss:$24 sps:$4 sm:$0xff]   ;;  %v7965_v60 = vld [vmem:[#allocation5 + $0x3f0] ss:$24 sps:$4 sm:$0xff]  }
 0x274   :  { %1873 = vmatpush1.bf16.msra.mxu0 %v7905_v2  ;;  %v7968_v2 = vld [vmem:[#allocation5 + $0x3f8] ss:$24 sps:$4 sm:$0xff]  }
 0x275   :  { %1955 = vmatpush1.bf16.msra.mxu1 %v7908_v3  ;;  %1874 = vmatprep.subr.bf16.mxu0 %v7913_v4  ;;  %v7973_v3 = vld [vmem:[#allocation5 + $0x424] ss:$24 sps:$4 sm:$0xff]  }
 0x276   :  { %1956 = vmatprep.subr.bf16.mxu1 %v7916_v5  ;;  %v7976_v4 = vld [vmem:[#allocation5 + $0x42c] ss:$24 sps:$4 sm:$0xff]   ;;  %v7971_v5 = vld [vmem:[#allocation5 + $0x420] ss:$24 sps:$4 sm:$0xff]  }
 0x278   :  { %1875 = vmatpush1.bf16.msra.mxu0 %v7911_v6  ;;  %v7974_v6 = vld [vmem:[#allocation5 + $0x428] ss:$24 sps:$4 sm:$0xff]  }
 0x279   :  { %1957 = vmatpush1.bf16.msra.mxu1 %v7914_v7  ;;  %1876 = vmatprep.subr.bf16.mxu0 %v7919_v8  ;;  %v7979_v7 = vld [vmem:[#allocation5 + $0x454] ss:$24 sps:$4 sm:$0xff]  }
 0x27a   :  { %1958 = vmatprep.subr.bf16.mxu1 %v7922_v9  ;;  %v7982_v8 = vld [vmem:[#allocation5 + $0x45c] ss:$24 sps:$4 sm:$0xff]   ;;  %v7977_v9 = vld [vmem:[#allocation5 + $0x450] ss:$24 sps:$4 sm:$0xff]  }
 0x27c   :  { %1877 = vmatpush1.bf16.msra.mxu0 %v7917_v11  ;;  %v7980_v11 = vld [vmem:[#allocation5 + $0x458] ss:$24 sps:$4 sm:$0xff]  }
 0x27d   :  { %1959 = vmatpush1.bf16.msra.mxu1 %v7920_v12  ;;  %1878 = vmatprep.subr.bf16.mxu0 %v7925_v13  ;;  %v7985_v12 = vld [vmem:[#allocation5 + $0x484] ss:$24 sps:$4 sm:$0xff]  }
 0x27e   :  { %1960 = vmatprep.subr.bf16.mxu1 %v7928_v14  ;;  %v7988_v13 = vld [vmem:[#allocation5 + $0x48c] ss:$24 sps:$4 sm:$0xff]   ;;  %v7983_v14 = vld [vmem:[#allocation5 + $0x480] ss:$24 sps:$4 sm:$0xff]  }
 0x280   :  { %1879 = vmatpush1.bf16.msra.mxu0 %v7923_v15  ;;  %v7986_v15 = vld [vmem:[#allocation5 + $0x488] ss:$24 sps:$4 sm:$0xff]  }
 0x281   :  { %1961 = vmatpush1.bf16.msra.mxu1 %v7926_v16  ;;  %1880 = vmatprep.subr.bf16.mxu0 %v7931_v18  ;;  %v7991_v16 = vld [vmem:[#allocation5 + $0x4b4] ss:$24 sps:$4 sm:$0xff]   ;;  %v7989_v18 = vld [vmem:[#allocation5 + $0x4b0] ss:$24 sps:$4 sm:$0xff]  }
 0x282   :  { %1962 = vmatprep.subr.bf16.mxu1 %v7934_v19  ;;  %v7992_v19 = vld [vmem:[#allocation5 + $0x4b8] ss:$24 sps:$4 sm:$0xff]  }
 0x284   :  { %1881 = vmatpush1.bf16.msra.mxu0 %v7929_v21  ;;  %v8000_v21 = vld [vmem:[#allocation5 + $0x4ec] ss:$24 sps:$4 sm:$0xff]  }
 0x285   :  { %1963 = vmatpush1.bf16.msra.mxu1 %v7932_v24  ;;  %1891 = vmatprep.subr.bf16.mxu0 %v7937_v27  ;;  %v7995_v24 = vld [vmem:[#allocation5 + $0x4e0] ss:$24 sps:$4 sm:$0xff]   ;;  %v8003_v27 = vld [vmem:[#allocation5 + $0x514] ss:$24 sps:$4 sm:$0xff]  }
 0x286   :  { %1973 = vmatprep.subr.bf16.mxu1 %v7940_v28  ;;  %v8006_v28 = vld [vmem:[#allocation5 + $0x51c] ss:$24 sps:$4 sm:$0xff]  }
 0x2f2   :  { %v731_v17 = vpop.xlane.xlu0 %730 }
 0x2f3   :  { %v732_v20 = vrot.slane %v731_v17, 4 }
 0x2f5   :  { %v733_v26 = vadd.f32 %v732_v20, %v731_v17  ;;  %v7994_v17 = vld [vmem:[#allocation5 + $0x4bc] ss:$24 sps:$4 sm:$0xff]  }
 0x2f6   :  { %v7997_v20 = vld [vmem:[#allocation5 + $0x4e4] ss:$24 sps:$4 sm:$0xff]  }
 0x2f7   :  { %v734_v10 = vrot.slane %v733_v26, 2 }
 0x2f9   :  { %v735_v29 = vadd.f32 %v734_v10, %v733_v26  ;;  %v7998_v26 = vld [vmem:[#allocation5 + $0x4e8] ss:$24 sps:$4 sm:$0xff]  }
 0x2fa   :  { %v8001_v10 = vld [vmem:[#allocation5 + $0x510] ss:$24 sps:$4 sm:$0xff]  }
 0x2fb   :  { %v736_v30 = vrot.slane %v735_v29, 1 }
 0x2fd   :  { %v737_v31 = vadd.f32 %v736_v30, %v735_v29  ;;  %v8004_v29 = vld [vmem:[#allocation5 + $0x518] ss:$24 sps:$4 sm:$0xff]   ;;  %v8007_v30 = vld [vmem:[#allocation5 + $0x544] ss:$24 sps:$4 sm:$0x7f]  }
 0x2ff   :  { %7699 = vpush %v737_v31  ;;  %v8009_v31 = vld [vmem:[#allocation5 + $0x54c] ss:$24 sps:$4 sm:$0x7f]  }
 0x330   :  { %s7700_s17 = spop %7699 }
 0x331   :  { %s741_s18 = smul.f32 0.00027056277, %s7700_s17 }
 0x333   :  { %s742_s19 = sadd.f32 1e-05, %s741_s18 }
 0x335   :  { %v743_v32 = vstv %s742_s19 }
 0x336   :  { %8764 = vrsqrt.f32 %v743_v32  ;;  %v8011_v32 = vld [vmem:[#allocation5 + $0x540] ss:$24 sps:$4 sm:$0x7f]  }
 0x340   :  { %v8765_v33 = vpop.eup %8764 }
 0x341   :  { %7701 = vpush %v8765_v33  ;;  %v8012_v33 = vld [vmem:[#allocation5 + $0x548] ss:$24 sps:$4 sm:$0x7f]  }
 0x372   :  { %s7702_s20 = spop %7701 }
 0x373   :  { %v9117_v34 = vstv %s7702_s20 }
 0x374   :  { %v747_v37 = vmul.f32 %v9117_v34, %v9100_v61  ;;  %v748_v38 = vmul.f32 %v9117_v34, %v9102_v62  ;;  %v750_v39 = vmul.f32 %v9117_v34, %v9106_v1  ;;  %v7941_v61 = vld [vmem:[#allocation5 + $0x330] ss:$24 sps:$4 sm:$0xff]   ;;  %v7949_v1 = vld [vmem:[#allocation5 + $0x364] ss:$24 sps:$4 sm:$0xff]  }
 0x375   :  { %v7944_v62 = vld [vmem:[#allocation5 + $0x338] ss:$24 sps:$4 sm:$0xff]  }
 0x376   :  { %v9125_v40 = vpack.c.bf16 %v747_v37, %v747_v37  ;;  %v9127_v41 = vpack.c.bf16 %v748_v38, %v748_v38  ;;  %v9131_v46 = vpack.c.bf16 %v750_v39, %v750_v39  ;;  %v749_v37 = vmul.f32 %v9117_v34, %v9104_v63  ;;  %v8016_v63 = vld [vmem:[#allocation5 + $0x40] ss:$24 sps:$4 sm:$0xff]   ;;  %v8021_v34 = vld [vmem:[#allocation5 + $0x74] ss:$24 sps:$4 sm:$0xff]  }
 0x377   :  { %v1833_v38 = vsel %vm1831_vm3, %v8011_v32, 0  ;;  %v1839_v39 = vsel %vm1831_vm3, %v8012_v33, 0  ;;  %v8093_v32 = vld [vmem:[#allocation5 + $0x4f4] ss:$24 sps:$4 sm:$0xff]   ;;  %v8091_v33 = vld [vmem:[#allocation5 + $0x4f0] ss:$24 sps:$4 sm:$0xff]  }
 0x378   :  { %1882 = vmatprep.mubr.bf16.mxu0 %v9127_v41  ;;  %1964 = vmatprep.mubr.bf16.mxu1 %v9127_v41 }
 0x379   :  { %1883 = vmatmul.mubr.bf16.vlgmr.msra.gmra.mrb[4].mxu0 %v9125_v40  ;;  %1965 = vmatmul.mubr.bf16.vlgmr.msra.gmra.mrb[8].mxu1 %v9125_v40 }
 0x37a   :  { %1892 = vmatpush1.bf16.msra.mxu0 %v7935_v42  ;;  %1974 = vmatpush1.bf16.msra.mxu1 %v7938_v43  ;;  %v8015_v42 = vld [vmem:[#allocation5 + $0x14] ss:$24 sps:$4 sm:$0xff]   ;;  %v8013_v43 = vld [vmem:[#allocation5 + $0x10] ss:$24 sps:$4 sm:$0xff]  }
 0x37b   :  { %6932 = vmatprep.mubr.msk.bf16.mxu0 %vm702_vm2, %v9131_v46  ;;  %6934 = vmatprep.mubr.msk.bf16.mxu1 %vm702_vm2, %v9131_v46 }
 0x37c   :  { %1893 = vmatprep.subr.bf16.mxu0 %v7943_v44  ;;  %1975 = vmatprep.subr.bf16.mxu1 %v7946_v45  ;;  %v9145_v44 = vpack.c.bf16 %v749_v37, %v749_v37  ;;  %v8018_v45 = vld [vmem:[#allocation5 + $0x44] ss:$24 sps:$4 sm:$0xff]  }
 0x37d   :  { %v8096_v37 = vld [vmem:[#allocation5 + $0x524] ss:$24 sps:$4 sm:$0xff]  }
 0x37e   :  { %1894 = vmatpush1.bf16.msra.mxu0 %v7941_v61  ;;  %1976 = vmatpush1.bf16.msra.mxu1 %v7944_v62  ;;  %v8019_v61 = vld [vmem:[#allocation5 + $0x70] ss:$24 sps:$4 sm:$0xff]   ;;  %v8024_v62 = vld [vmem:[#allocation5 + $0xa4] ss:$24 sps:$4 sm:$0xff]  }
 0x37f   :  { %1895 = vmatprep.subr.bf16.mxu0 %v7949_v1  ;;  %1977 = vmatprep.subr.bf16.mxu1 %v7952_v47  ;;  %v8022_v1 = vld [vmem:[#allocation5 + $0xa0] ss:$24 sps:$4 sm:$0xff]   ;;  %v8027_v47 = vld [vmem:[#allocation5 + $0xd4] ss:$24 sps:$4 sm:$0xff]  }
 0x382   :  { %1896 = vmatpush1.bf16.msra.mxu0 %v7947_v48  ;;  %1978 = vmatpush1.bf16.msra.mxu1 %v7950_v49  ;;  %v8025_v48 = vld [vmem:[#allocation5 + $0xd0] ss:$24 sps:$4 sm:$0xff]   ;;  %v8030_v49 = vld [vmem:[#allocation5 + $0x104] ss:$24 sps:$4 sm:$0xff]  }
 0x383   :  { %1897 = vmatprep.subr.bf16.mxu0 %v7955_v50  ;;  %1979 = vmatprep.subr.bf16.mxu1 %v7958_v51  ;;  %v8028_v50 = vld [vmem:[#allocation5 + $0x100] ss:$24 sps:$4 sm:$0xff]   ;;  %v8033_v51 = vld [vmem:[#allocation5 + $0x134] ss:$24 sps:$4 sm:$0xff]  }
 0x386   :  { %1898 = vmatpush1.bf16.msra.mxu0 %v7953_v52  ;;  %1980 = vmatpush1.bf16.msra.mxu1 %v7956_v53  ;;  %v8036_v52 = vld [vmem:[#allocation5 + $0x164] ss:$24 sps:$4 sm:$0xff]   ;;  %v8034_v53 = vld [vmem:[#allocation5 + $0x160] ss:$24 sps:$4 sm:$0xff]  }
 0x387   :  { %1899 = vmatprep.subr.bf16.mxu0 %v7961_v54  ;;  %1981 = vmatprep.subr.bf16.mxu1 %v7964_v55  ;;  %v8039_v54 = vld [vmem:[#allocation5 + $0x194] ss:$24 sps:$4 sm:$0xff]   ;;  %v8037_v55 = vld [vmem:[#allocation5 + $0x190] ss:$24 sps:$4 sm:$0xff]  }
 0x38a   :  { %1900 = vmatpush1.bf16.msra.mxu0 %v7959_v56  ;;  %1982 = vmatpush1.bf16.msra.mxu1 %v7962_v57  ;;  %v8042_v56 = vld [vmem:[#allocation5 + $0x1c4] ss:$24 sps:$4 sm:$0xff]   ;;  %v8040_v57 = vld [vmem:[#allocation5 + $0x1c0] ss:$24 sps:$4 sm:$0xff]  }
 0x38b   :  { %1901 = vmatprep.subr.bf16.mxu0 %v7967_v58  ;;  %1983 = vmatprep.subr.bf16.mxu1 %v7970_v59  ;;  %v8045_v58 = vld [vmem:[#allocation5 + $0x1f4] ss:$24 sps:$4 sm:$0xff]   ;;  %v8043_v59 = vld [vmem:[#allocation5 + $0x1f0] ss:$24 sps:$4 sm:$0xff]  }
 0x38e   :  { %1902 = vmatpush1.bf16.msra.mxu0 %v7965_v60  ;;  %1984 = vmatpush1.bf16.msra.mxu1 %v7968_v2  ;;  %v8048_v60 = vld [vmem:[#allocation5 + $0x224] ss:$24 sps:$4 sm:$0xff]   ;;  %v8046_v2 = vld [vmem:[#allocation5 + $0x220] ss:$24 sps:$4 sm:$0xff]  }
 0x38f   :  { %1903 = vmatprep.subr.bf16.mxu0 %v7973_v3  ;;  %1985 = vmatprep.subr.bf16.mxu1 %v7976_v4  ;;  %v8051_v3 = vld [vmem:[#allocation5 + $0x254] ss:$24 sps:$4 sm:$0xff]   ;;  %v8049_v4 = vld [vmem:[#allocation5 + $0x250] ss:$24 sps:$4 sm:$0xff]  }
 0x392   :  { %1904 = vmatpush1.bf16.msra.mxu0 %v7971_v5  ;;  %1986 = vmatpush1.bf16.msra.mxu1 %v7974_v6  ;;  %v8054_v5 = vld [vmem:[#allocation5 + $0x284] ss:$24 sps:$4 sm:$0xff]   ;;  %v8052_v6 = vld [vmem:[#allocation5 + $0x280] ss:$24 sps:$4 sm:$0xff]  }
 0x393   :  { %1905 = vmatprep.subr.bf16.mxu0 %v7979_v7  ;;  %1987 = vmatprep.subr.bf16.mxu1 %v7982_v8  ;;  %v8057_v7 = vld [vmem:[#allocation5 + $0x2b4] ss:$24 sps:$4 sm:$0xff]   ;;  %v8055_v8 = vld [vmem:[#allocation5 + $0x2b0] ss:$24 sps:$4 sm:$0xff]  }
 0x396   :  { %1906 = vmatpush1.bf16.msra.mxu0 %v7977_v9  ;;  %1988 = vmatpush1.bf16.msra.mxu1 %v7980_v11  ;;  %v8060_v9 = vld [vmem:[#allocation5 + $0x2e4] ss:$24 sps:$4 sm:$0xff]   ;;  %v8058_v11 = vld [vmem:[#allocation5 + $0x2e0] ss:$24 sps:$4 sm:$0xff]  }
 0x397   :  { %1907 = vmatprep.subr.bf16.mxu0 %v7985_v12  ;;  %1989 = vmatprep.subr.bf16.mxu1 %v7988_v13  ;;  %v8063_v12 = vld [vmem:[#allocation5 + $0x314] ss:$24 sps:$4 sm:$0xff]   ;;  %v8061_v13 = vld [vmem:[#allocation5 + $0x310] ss:$24 sps:$4 sm:$0xff]  }
 0x39a   :  { %1908 = vmatpush1.bf16.msra.mxu0 %v7983_v14  ;;  %1990 = vmatpush1.bf16.msra.mxu1 %v7986_v15  ;;  %v8066_v14 = vld [vmem:[#allocation5 + $0x344] ss:$24 sps:$4 sm:$0xff]   ;;  %v8064_v15 = vld [vmem:[#allocation5 + $0x340] ss:$24 sps:$4 sm:$0xff]  }
 0x39b   :  { %1909 = vmatprep.subr.bf16.mxu0 %v7991_v16  ;;  %1991 = vmatprep.subr.bf16.mxu1 %v7994_v17  ;;  %v8069_v16 = vld [vmem:[#allocation5 + $0x374] ss:$24 sps:$4 sm:$0xff]   ;;  %v8067_v17 = vld [vmem:[#allocation5 + $0x370] ss:$24 sps:$4 sm:$0xff]  }
 0x39e   :  { %1910 = vmatpush1.bf16.msra.mxu0 %v7989_v18  ;;  %1992 = vmatpush1.bf16.msra.mxu1 %v7992_v19  ;;  %v8072_v18 = vld [vmem:[#allocation5 + $0x3a4] ss:$24 sps:$4 sm:$0xff]   ;;  %v8070_v19 = vld [vmem:[#allocation5 + $0x3a0] ss:$24 sps:$4 sm:$0xff]  }
 0x39f   :  { %1911 = vmatprep.subr.bf16.mxu0 %v7997_v20  ;;  %1993 = vmatprep.subr.bf16.mxu1 %v8000_v21  ;;  %v8075_v20 = vld [vmem:[#allocation5 + $0x3d4] ss:$24 sps:$4 sm:$0xff]   ;;  %v8073_v21 = vld [vmem:[#allocation5 + $0x3d0] ss:$24 sps:$4 sm:$0xff]  }
 0x3a2   :  { %1912 = vmatpush1.bf16.msra.mxu0 %v7995_v24  ;;  %1994 = vmatpush1.bf16.msra.mxu1 %v7998_v26  ;;  %v8078_v24 = vld [vmem:[#allocation5 + $0x404] ss:$24 sps:$4 sm:$0xff]   ;;  %v8081_v26 = vld [vmem:[#allocation5 + $0x434] ss:$24 sps:$4 sm:$0xff]  }
 0x3a3   :  { %1913 = vmatprep.subr.bf16.mxu0 %v8003_v27  ;;  %1995 = vmatprep.subr.bf16.mxu1 %v8006_v28  ;;  %v8084_v27 = vld [vmem:[#allocation5 + $0x464] ss:$24 sps:$4 sm:$0xff]   ;;  %v8082_v28 = vld [vmem:[#allocation5 + $0x460] ss:$24 sps:$4 sm:$0xff]  }
 0x3a6   :  { %1914 = vmatpush1.bf16.msra.mxu0 %v8001_v10  ;;  %1996 = vmatpush1.bf16.msra.mxu1 %v8004_v29  ;;  %v8087_v10 = vld [vmem:[#allocation5 + $0x494] ss:$24 sps:$4 sm:$0xff]   ;;  %v8085_v29 = vld [vmem:[#allocation5 + $0x490] ss:$24 sps:$4 sm:$0xff]  }
 0x3a7   :  { %6931 = vmatprep.subr.msk.bf16.mxu0 %vm1831_vm3, %v8007_v30  ;;  %6933 = vmatprep.subr.msk.bf16.mxu1 %vm1831_vm3, %v8009_v31  ;;  %v8090_v30 = vld [vmem:[#allocation5 + $0x4c4] ss:$24 sps:$4 sm:$0xff]   ;;  %v8088_v31 = vld [vmem:[#allocation5 + $0x4c0] ss:$24 sps:$4 sm:$0xff]  }
 0x3aa   :  { %1916 = vmatpush1.bf16.msra.mxu0 %v1833_v38  ;;  %1998 = vmatpush1.bf16.msra.mxu1 %v1839_v39  ;;  %v8094_v38 = vld [vmem:[#allocation5 + $0x520] ss:$24 sps:$4 sm:$0xff]   ;;  %v8097_v39 = vld [vmem:[#allocation5 + $0x554] ss:$24 sps:$4 sm:$0x7f]  }
 0x3ab   :  { %2014 = vmatprep.subr.bf16.mxu0 %v8015_v42  ;;  %v8099_v42 = vld [vmem:[#allocation5 + $0x550] ss:$24 sps:$4 sm:$0x7f]  }
 0x3ad   :  { %1924 = vmatmul.mubr.bf16.vlgmr.msra.gmra.mrb[4].mxu0 %v9145_v44  ;;  %2006 = vmatmul.mubr.bf16.vlgmr.msra.gmra.mrb[8].mxu1 %v9145_v44 }
 0x3ae   :  { %2015 = vmatpush1.bf16.msra.mxu0 %v8013_v43  ;;  %2046 = vmatprep.mubr.bf16.mxu0 %v9127_v41  ;;  %v8031_v41 = vld [vmem:[#allocation5 + $0x130] ss:$24 sps:$4 sm:$0xff]   ;;  %v1845_v43 = vsel %vm1831_vm3, %v8099_v42, 0 }
 0x3af   :  { %2016 = vmatprep.subr.bf16.mxu0 %v8018_v45 }
 0x3b2   :  { %2017 = vmatpush1.bf16.msra.mxu0 %v8016_v63 }
 0x3b3   :  { %2018 = vmatprep.subr.bf16.mxu0 %v8021_v34 }
 0x3b6   :  { %2019 = vmatpush1.bf16.msra.mxu0 %v8019_v61 }
 0x3b7   :  { %2020 = vmatprep.subr.bf16.mxu0 %v8024_v62 }
 0x3ba   :  { %2021 = vmatpush1.bf16.msra.mxu0 %v8022_v1 }
 0x3bb   :  { %2022 = vmatprep.subr.bf16.mxu0 %v8027_v47 }
 0x3be   :  { %2023 = vmatpush1.bf16.msra.mxu0 %v8025_v48 }
 0x3bf   :  { %2024 = vmatprep.subr.bf16.mxu0 %v8030_v49  ;;  %v930_v49 = vld [vmem:[#allocation10 + $0x1] ss:$8 sm:$0xf] }
 0x3c2   :  { %2025 = vmatpush1.bf16.msra.mxu0 %v8028_v50  ;;  %v931_v50 = vld [vmem:[#allocation10 + $0x1] ss:$8 sm:$0x30] }
 0x3c3   :  { %2026 = vmatprep.subr.bf16.mxu0 %v8033_v51  ;;  %v932_v51 = vor.u32 %v931_v50, %v930_v49  ;;  %v8100_v50 = vld [vmem:[#allocation5 + $0x570] ss:$24 sps:$4 sm:$0xff]  }
 0x3c6   :  { %2027 = vmatpush1.bf16.msra.mxu0 %v8031_v41  ;;  %v937_v41 = vrot.slane %v932_v51, %v9084_v23 }
 0x3c7   :  { %2028 = vmatprep.subr.bf16.mxu0 %v8036_v52  ;;  %v941_v52 = vrot.slane %v932_v51, %v9087_v25 }
 0x3ca   :  { %2029 = vmatpush1.bf16.msra.mxu0 %v8034_v53 }
 0x3cb   :  { %2030 = vmatprep.subr.bf16.mxu0 %v8039_v54 }
 0x3ce   :  { %2031 = vmatpush1.bf16.msra.mxu0 %v8037_v55  ;;  %v945_v55 = vrot.slane %v932_v51, %v9092_v35 }
 0x3cf   :  { %2032 = vmatprep.subr.bf16.mxu0 %v8042_v56 }
 0x3d2   :  { %2033 = vmatpush1.bf16.msra.mxu0 %v8040_v57 }
 0x3d3   :  { %2034 = vmatprep.subr.bf16.mxu0 %v8045_v58  ;;  %v949_v58 = vrot.slane %v932_v51, %v9095_v36 }
 0x3d6   :  { %2035 = vmatpush1.bf16.msra.mxu0 %v8043_v59  ;;  %v952_v59 = vsub.s32 4, %v9081_v22 }
 0x3d7   :  { %2036 = vmatprep.subr.bf16.mxu0 %v8048_v60  ;;  %v956_v60 = vsub.s32 5, %v9081_v22 }
 0x3da   :  { %2037 = vmatpush1.bf16.msra.mxu0 %v8046_v2 }
 0x3db   :  { %2038 = vmatprep.subr.bf16.mxu0 %v8051_v3 }
 0x3de   :  { %2039 = vmatpush1.bf16.msra.mxu0 %v8049_v4 }
 0x3df   :  { %2040 = vmatprep.subr.bf16.mxu0 %v8054_v5  ;;  %v953_v5 = vrot.slane %v932_v51, %v952_v59 }
 0x3e2   :  { %2041 = vmatpush1.bf16.msra.mxu0 %v8052_v6  ;;  %v957_v6 = vrot.slane %v932_v51, %v956_v60  ;;  %v8102_v51 = vld [vmem:[#allocation5 + $0x574] ss:$24 sps:$4 sm:$0xff]  }
 0x3e3   :  { %2042 = vmatprep.subr.bf16.mxu0 %v8057_v7  ;;  %3827 = vmatprep.subr.bf16.mxu1 %v8102_v51  ;;  %v8175_v51 = vld [vmem:[#allocation5 + $0x7b8] ss:$24 sps:$4 sm:$0xff]  }
 0x3e4   :  { %3828 = vmatpush1.bf16.msra.mxu1 %v8100_v50  ;;  %v8172_v50 = vld [vmem:[#allocation5 + $0x7b0] ss:$24 sps:$4 sm:$0xff]  }
 0x3e6   :  { %2043 = vmatpush1.bf16.msra.mxu0 %v8055_v8 }
 0x3e7   :  { %2044 = vmatprep.subr.bf16.mxu0 %v8060_v9 }
 0x3ea   :  { %2045 = vmatpush1.bf16.msra.mxu0 %v8058_v11 }
 0x3eb   :  { %2055 = vmatprep.subr.bf16.mxu0 %v8063_v12 }
 0x3ed   :  { %2047 = vmatmul.mubr.bf16.vlgmr.msra.gmra.mrb[8].mxu0 %v9125_v40  ;;  %v8076_v40 = vld [vmem:[#allocation5 + $0x400] ss:$24 sps:$4 sm:$0xff]  }
 0x3ee   :  { %2056 = vmatpush1.bf16.msra.mxu0 %v8061_v13  ;;  %6936 = vmatprep.mubr.msk.bf16.mxu0 %vm702_vm2, %v9131_v46  ;;  %v8079_v46 = vld [vmem:[#allocation5 + $0x430] ss:$24 sps:$4 sm:$0xff]  }
 0x3ef   :  { %2057 = vmatprep.subr.bf16.mxu0 %v8066_v14 }
 0x3f2   :  { %2058 = vmatpush1.bf16.msra.mxu0 %v8064_v15 }
 0x3f3   :  { %2059 = vmatprep.subr.bf16.mxu0 %v8069_v16 }
 0x3f6   :  { %2060 = vmatpush1.bf16.msra.mxu0 %v8067_v17 }
 0x3f7   :  { %2061 = vmatprep.subr.bf16.mxu0 %v8072_v18 }
 0x3fa   :  { %2062 = vmatpush1.bf16.msra.mxu0 %v8070_v19 }
 0x3fb   :  { %2063 = vmatprep.subr.bf16.mxu0 %v8075_v20 }
 0x3fe   :  { %2064 = vmatpush1.bf16.msra.mxu0 %v8073_v21 }
 0x3ff   :  { %2065 = vmatprep.subr.bf16.mxu0 %v8078_v24 }
 0x402   :  { %2066 = vmatpush1.bf16.msra.mxu0 %v8076_v40 }
 0x403   :  { %2067 = vmatprep.subr.bf16.mxu0 %v8081_v26 }
 0x406   :  { %2068 = vmatpush1.bf16.msra.mxu0 %v8079_v46 }
 0x407   :  { %2069 = vmatprep.subr.bf16.mxu0 %v8084_v27 }
 0x40a   :  { %2070 = vmatpush1.bf16.msra.mxu0 %v8082_v28 }
 0x40b   :  { %2071 = vmatprep.subr.bf16.mxu0 %v8087_v10 }
 0x40e   :  { %2072 = vmatpush1.bf16.msra.mxu0 %v8085_v29 }
 0x40f   :  { %2073 = vmatprep.subr.bf16.mxu0 %v8090_v30 }
 0x412   :  { %2074 = vmatpush1.bf16.msra.mxu0 %v8088_v31 }
 0x413   :  { %2075 = vmatprep.subr.bf16.mxu0 %v8093_v32 }
 0x416   :  { %2076 = vmatpush1.bf16.msra.mxu0 %v8091_v33 }
 0x417   :  { %2077 = vmatprep.subr.bf16.mxu0 %v8096_v37 }
 0x41a   :  { %2078 = vmatpush1.bf16.msra.mxu0 %v8094_v38 }
 0x41b   :  { %6935 = vmatprep.subr.msk.bf16.mxu0 %vm1831_vm3, %v8097_v39 }
 0x41e   :  { %2080 = vmatpush1.bf16.msra.mxu0 %v1845_v43 }
 0x421   :  { %2088 = vmatmul.mubr.bf16.vlgmr.msra.gmra.mrb[8].mxu0 %v9145_v44 }
 0x480   :  { %v1925_v45 = vpop.f32.mrb[4].mxu0  ;;  %v2007_v63 = vpop.f32.mrb[8].mxu1 }
 0x481   :  { %v1927_v34 = vpop.f32.mrb[5].mxu0  ;;  %v2009_v61 = vpop.f32.mrb[9].mxu1  ;;  %v7635_v53 = vadd.f32 %v1925_v45, %v937_v41  ;;  %v7637_v57 = vadd.f32 %v2007_v63, %v945_v55  ;;  %v8103_v41 = vld [vmem:[#allocation5 + $0x578] ss:$24 sps:$4 sm:$0xff]  }
 0x482   :  { %v1929_v62 = vpop.f32.mrb[6].mxu0  ;;  %v2011_v1 = vpop.f32.mrb[10].mxu1  ;;  %v7636_v54 = vadd.f32 %v1927_v34, %v941_v52  ;;  %v7638_v4 = vadd.f32 %v2009_v61, %v949_v58  ;;  %v8105_v52 = vld [vmem:[#allocation5 + $0x57c] ss:$24 sps:$4 sm:$0xff]   ;;  %v8106_v55 = vld [vmem:[#allocation5 + $0x5a0] ss:$24 sps:$4 sm:$0xff]  }
 0x483   :  { %v1930_v47 = vpop.f32.mrb[7].mxu0  ;;  %v2012_v48 = vpop.f32.mrb[11].mxu1  ;;  %v2096_v44 = vmax.f32 %v7635_v53, 0.0  ;;  %v2098_v3 = vmax.f32 %v7637_v57, 0.0  ;;  %v8108_v53 = vld [vmem:[#allocation5 + $0x5a4] ss:$24 sps:$4 sm:$0xff]   ;;  %3950 = vmatprep.subr.bf16.mxu0 %v8105_v52 }
 0x484   :  { %v2097_v56 = vmax.f32 %v7636_v54, 0.0  ;;  %v2099_v9 = vmax.f32 %v7638_v4, 0.0  ;;  %v8111_v54 = vld [vmem:[#allocation5 + $0x5ac] ss:$24 sps:$4 sm:$0xff]   ;;  %3951 = vmatpush1.bf16.msra.mxu0 %v8103_v41  ;;  %3829 = vmatprep.subr.bf16.mxu1 %v8108_v53  ;;  %v8117_v57 = vld [vmem:[#allocation5 + $0x5dc] ss:$24 sps:$4 sm:$0xff]  }
 0x485   :  { %3952 = vmatprep.subr.bf16.mxu0 %v8111_v54  ;;  %3830 = vmatpush1.bf16.msra.mxu1 %v8106_v55  ;;  %v8112_v58 = vld [vmem:[#allocation5 + $0x5d0] ss:$24 sps:$4 sm:$0xff]   ;;  %v8120_v4 = vld [vmem:[#allocation5 + $0x604] ss:$24 sps:$4 sm:$0xff]   ;;  %v8178_v53 = vld [vmem:[#allocation5 + $0x7e0] ss:$24 sps:$4 sm:$0xff]  }
 0x486   :  { %v2102_v2 = vadd.f32 %v2097_v56, %v2096_v44  ;;  %v8180_v41 = vld [vmem:[#allocation5 + $0x7e4] ss:$24 sps:$4 sm:$0xff]   ;;  %v8181_v54 = vld [vmem:[#allocation5 + $0x7e8] ss:$24 sps:$4 sm:$0xff]   ;;  %v8186_v55 = vld [vmem:[#allocation5 + $0x814] ss:$24 sps:$4 sm:$0xff]  }
 0x487   :  { %v8183_v52 = vld [vmem:[#allocation5 + $0x7ec] ss:$24 sps:$4 sm:$0xff]  }
 0x488   :  { %v2103_v7 = vadd.f32 %v2102_v2, %v2098_v3  ;;  %v8115_v2 = vld [vmem:[#allocation5 + $0x5d8] ss:$24 sps:$4 sm:$0xff]  }
 0x48a   :  { %v2104_v15 = vadd.f32 %v2103_v7, %v2099_v9  ;;  %v8126_v7 = vld [vmem:[#allocation5 + $0x634] ss:$24 sps:$4 sm:$0xff]  }
 0x4f4   :  { %v2089_v8 = vpop.f32.mrb[8].mxu0 }
 0x4f5   :  { %v7639_v11 = vadd.f32 %v2089_v8, %v953_v5  ;;  %v2091_v12 = vpop.f32.mrb[9].mxu0  ;;  %v8121_v5 = vld [vmem:[#allocation5 + $0x608] ss:$24 sps:$4 sm:$0xff]   ;;  %v8129_v8 = vld [vmem:[#allocation5 + $0x63c] ss:$24 sps:$4 sm:$0xff]  }
 0x4f6   :  { %v7640_v13 = vadd.f32 %v2091_v12, %v957_v6  ;;  %v2093_v14 = vpop.f32.mrb[10].mxu0  ;;  %v8123_v6 = vld [vmem:[#allocation5 + $0x60c] ss:$24 sps:$4 sm:$0xff]  }
 0x4f7   :  { %v2100_v16 = vmax.f32 %v7639_v11, 0.0  ;;  %v2094_v17 = vpop.f32.mrb[11].mxu0  ;;  %v8127_v11 = vld [vmem:[#allocation5 + $0x638] ss:$24 sps:$4 sm:$0xff]   ;;  %v8132_v12 = vld [vmem:[#allocation5 + $0x664] ss:$24 sps:$4 sm:$0xff]  }
 0x4f8   :  { %v2101_v18 = vmax.f32 %v7640_v13, 0.0  ;;  %v8135_v13 = vld [vmem:[#allocation5 + $0x66c] ss:$24 sps:$4 sm:$0xff]   ;;  %v8130_v14 = vld [vmem:[#allocation5 + $0x660] ss:$24 sps:$4 sm:$0xff]  }
 0x4f9   :  { %v2105_v19 = vadd.f32 %v2104_v15, %v2100_v16  ;;  %v8133_v15 = vld [vmem:[#allocation5 + $0x668] ss:$24 sps:$4 sm:$0xff]   ;;  %v8141_v17 = vld [vmem:[#allocation5 + $0x69c] ss:$24 sps:$4 sm:$0xff]  }
 0x4fa   :  { %v2107_v20 = vsel %vm2106_vm4, %v2101_v18, 0.0 }
 0x4fb   :  { %v2108_v21 = vadd.f32 %v2107_v20, %v2105_v19  ;;  %v8139_v19 = vld [vmem:[#allocation5 + $0x698] ss:$24 sps:$4 sm:$0xff]   ;;  %v8144_v20 = vld [vmem:[#allocation5 + $0x6c4] ss:$24 sps:$4 sm:$0xff]  }
 0x4fd   :  { %2109 = vadd.xlane.f32.xlu1 %v2108_v21  ;;  %v8147_v21 = vld [vmem:[#allocation5 + $0x6cc] ss:$24 sps:$4 sm:$0xff]  }
 0x58a   :  { %v2110_v24 = vpop.xlane.xlu1 %2109 }
 0x58b   :  { %v2111_v40 = vrot.slane %v2110_v24, 4 }
 0x58d   :  { %v2112_v26 = vadd.f32 %v2111_v40, %v2110_v24  ;;  %v8142_v24 = vld [vmem:[#allocation5 + $0x6c0] ss:$24 sps:$4 sm:$0xff]  }
 0x58e   :  { %v8145_v40 = vld [vmem:[#allocation5 + $0x6c8] ss:$24 sps:$4 sm:$0xff]  }
 0x58f   :  { %v2113_v46 = vrot.slane %v2112_v26, 2 }
 0x591   :  { %v2114_v27 = vadd.f32 %v2113_v46, %v2112_v26  ;;  %v8150_v26 = vld [vmem:[#allocation5 + $0x6f4] ss:$24 sps:$4 sm:$0xff]  }
 0x592   :  { %v8153_v46 = vld [vmem:[#allocation5 + $0x6fc] ss:$24 sps:$4 sm:$0xff]  }
 0x593   :  { %v2115_v28 = vrot.slane %v2114_v27, 1 }
 0x595   :  { %v2116_v10 = vadd.f32 %v2115_v28, %v2114_v27  ;;  %v8148_v27 = vld [vmem:[#allocation5 + $0x6f0] ss:$24 sps:$4 sm:$0xff]  }
 0x596   :  { %v8151_v28 = vld [vmem:[#allocation5 + $0x6f8] ss:$24 sps:$4 sm:$0xff]  }
 0x597   :  { %7703 = vpush %v2116_v10  ;;  %v8156_v10 = vld [vmem:[#allocation5 + $0x724] ss:$24 sps:$4 sm:$0xff]  }
 0x5c8   :  { %s7704_s1 = spop %7703 }
 0x5c9   :  { %s2120_s2 = smul.f32 0.00017361112, %s7704_s1 }
 0x5cb   :  { %v2121_v29 = vstv %s2120_s2 }
 0x5cc   :  { %v9167_v30 = vsub.f32 %v2096_v44, %v2121_v29  ;;  %v9169_v31 = vsub.f32 %v2097_v56, %v2121_v29  ;;  %v9171_v32 = vsub.f32 %v2098_v3, %v2121_v29  ;;  %v9173_v33 = vsub.f32 %v2099_v9, %v2121_v29  ;;  %v8109_v44 = vld [vmem:[#allocation5 + $0x5a8] ss:$24 sps:$4 sm:$0xff]   ;;  %v8114_v56 = vld [vmem:[#allocation5 + $0x5d4] ss:$24 sps:$4 sm:$0xff]  }
 0x5cd   :  { %v9179_v39 = vsub.f32 %v2101_v18, %v2121_v29  ;;  %v9181_v42 = vsub.f32 %v2100_v16, %v2121_v29  ;;  %3953 = vmatpush1.bf16.msra.mxu0 %v8109_v44  ;;  %3831 = vmatprep.subr.bf16.mxu1 %v8114_v56  ;;  %v8118_v3 = vld [vmem:[#allocation5 + $0x600] ss:$24 sps:$4 sm:$0xff]   ;;  %v8124_v9 = vld [vmem:[#allocation5 + $0x630] ss:$24 sps:$4 sm:$0xff]   ;;  %v8138_v16 = vld [vmem:[#allocation5 + $0x694] ss:$24 sps:$4 sm:$0xff]  }
 0x5ce   :  { %v2128_v37 = vmul.f32 %v9167_v30, %v9167_v30  ;;  %v2129_v38 = vmul.f32 %v9169_v31, %v9169_v31  ;;  %v2130_v43 = vmul.f32 %v9171_v32, %v9171_v32  ;;  %v2131_v63 = vmul.f32 %v9173_v33, %v9173_v33  ;;  %3954 = vmatprep.subr.bf16.mxu0 %v8117_v57  ;;  %v8136_v18 = vld [vmem:[#allocation5 + $0x690] ss:$24 sps:$4 sm:$0xff]   ;;  %v8159_v29 = vld [vmem:[#allocation5 + $0x72c] ss:$24 sps:$4 sm:$0xff]   ;;  %v8189_v44 = vld [vmem:[#allocation5 + $0x81c] ss:$24 sps:$4 sm:$0xff]  }
 0x5cf   :  { %v2133_v61 = vmul.f32 %v9179_v39, %v9179_v39  ;;  %v2132_v62 = vmul.f32 %v9181_v42, %v9181_v42  ;;  %3832 = vmatpush1.bf16.msra.mxu1 %v8112_v58  ;;  %v8184_v56 = vld [vmem:[#allocation5 + $0x810] ss:$24 sps:$4 sm:$0xff]  }
 0x5d0   :  { %v2134_v45 = vadd.f32 %v2129_v38, %v2128_v37  ;;  %3833 = vmatprep.subr.bf16.mxu1 %v8120_v4  ;;  %v8154_v37 = vld [vmem:[#allocation5 + $0x720] ss:$24 sps:$4 sm:$0xff]   ;;  %v8192_v4 = vld [vmem:[#allocation5 + $0x844] ss:$24 sps:$4 sm:$0xff]  }
 0x5d1   :  { %v2138_v48 = vsel %vm2106_vm4, %v2133_v61, 0.0  ;;  %3955 = vmatpush1.bf16.msra.mxu0 %v8115_v2  ;;  %v8157_v38 = vld [vmem:[#allocation5 + $0x728] ss:$24 sps:$4 sm:$0xff]   ;;  %v8168_v61 = vld [vmem:[#allocation5 + $0x784] ss:$24 sps:$4 sm:$0xff]  }
 0x5d2   :  { %v2135_v34 = vadd.f32 %v2134_v45, %v2130_v43  ;;  %3956 = vmatprep.subr.bf16.mxu0 %v8123_v6  ;;  %v8162_v43 = vld [vmem:[#allocation5 + $0x754] ss:$24 sps:$4 sm:$0xff]   ;;  %v8187_v57 = vld [vmem:[#allocation5 + $0x818] ss:$24 sps:$4 sm:$0xff]  }
 0x5d3   :  { %3834 = vmatpush1.bf16.msra.mxu1 %v8118_v3  ;;  %v8165_v45 = vld [vmem:[#allocation5 + $0x75c] ss:$24 sps:$4 sm:$0xff]   ;;  %v8190_v3 = vld [vmem:[#allocation5 + $0x840] ss:$24 sps:$4 sm:$0xff]   ;;  %v8195_v6 = vld [vmem:[#allocation5 + $0x84c] ss:$24 sps:$4 sm:$0xff]  }
 0x5d4   :  { %v2136_v1 = vadd.f32 %v2135_v34, %v2131_v63  ;;  %3835 = vmatprep.subr.bf16.mxu1 %v8126_v7  ;;  %v8160_v63 = vld [vmem:[#allocation5 + $0x750] ss:$24 sps:$4 sm:$0xff]  }
 0x5d5   :  { %3957 = vmatpush1.bf16.msra.mxu0 %v8121_v5  ;;  %v8163_v34 = vld [vmem:[#allocation5 + $0x758] ss:$24 sps:$4 sm:$0xff]   ;;  %v8193_v5 = vld [vmem:[#allocation5 + $0x848] ss:$24 sps:$4 sm:$0xff]  }
 0x5d6   :  { %v2137_v47 = vadd.f32 %v2136_v1, %v2132_v62  ;;  %3958 = vmatprep.subr.bf16.mxu0 %v8129_v8  ;;  %v8171_v62 = vld [vmem:[#allocation5 + $0x78c] ss:$24 sps:$4 sm:$0xff]   ;;  %v8166_v1 = vld [vmem:[#allocation5 + $0x780] ss:$24 sps:$4 sm:$0xff]  }
 0x5d7   :  { %3836 = vmatpush1.bf16.msra.mxu1 %v8124_v9  ;;  %v8198_v9 = vld [vmem:[#allocation5 + $0x874] ss:$24 sps:$4 sm:$0xff]  }
 0x5d8   :  { %v2139_v49 = vadd.f32 %v2138_v48, %v2137_v47  ;;  %3837 = vmatprep.subr.bf16.mxu1 %v8132_v12  ;;  %v8169_v47 = vld [vmem:[#allocation5 + $0x788] ss:$24 sps:$4 sm:$0xff]   ;;  %v8174_v48 = vld [vmem:[#allocation5 + $0x7b4] ss:$24 sps:$4 sm:$0xff]  }
 0x5d9   :  { %3959 = vmatpush1.bf16.msra.mxu0 %v8127_v11  ;;  %v8201_v11 = vld [vmem:[#allocation5 + $0x87c] ss:$24 sps:$4 sm:$0xff]  }
 0x5da   :  { %2140 = vadd.xlane.f32.xlu1 %v2139_v49  ;;  %3960 = vmatprep.subr.bf16.mxu0 %v8135_v13  ;;  %v8177_v49 = vld [vmem:[#allocation5 + $0x7bc] ss:$24 sps:$4 sm:$0xff]  }
 0x5db   :  { %3838 = vmatpush1.bf16.msra.mxu1 %v8130_v14 }
 0x5dc   :  { %3839 = vmatprep.subr.bf16.mxu1 %v8138_v16 }
 0x5dd   :  { %3961 = vmatpush1.bf16.msra.mxu0 %v8133_v15 }
 0x5de   :  { %3962 = vmatprep.subr.bf16.mxu0 %v8141_v17 }
 0x5df   :  { %3840 = vmatpush1.bf16.msra.mxu1 %v8136_v18 }
 0x5e0   :  { %3841 = vmatprep.subr.bf16.mxu1 %v8144_v20 }
 0x5e1   :  { %3963 = vmatpush1.bf16.msra.mxu0 %v8139_v19 }
 0x5e2   :  { %3964 = vmatprep.subr.bf16.mxu0 %v8147_v21 }
 0x5e3   :  { %3842 = vmatpush1.bf16.msra.mxu1 %v8142_v24  ;;  %v8196_v24 = vld [vmem:[#allocation5 + $0x870] ss:$24 sps:$4 sm:$0xff]  }
 0x5e4   :  { %3843 = vmatprep.subr.bf16.mxu1 %v8150_v26 }
 0x5e5   :  { %3965 = vmatpush1.bf16.msra.mxu0 %v8145_v40  ;;  %v8199_v40 = vld [vmem:[#allocation5 + $0x878] ss:$24 sps:$4 sm:$0xff]  }
 0x5e6   :  { %3966 = vmatprep.subr.bf16.mxu0 %v8153_v46  ;;  %v8204_v46 = vld [vmem:[#allocation5 + $0x8a4] ss:$24 sps:$4 sm:$0xff]  }
 0x5e7   :  { %3844 = vmatpush1.bf16.msra.mxu1 %v8148_v27  ;;  %v8207_v27 = vld [vmem:[#allocation5 + $0x8ac] ss:$24 sps:$4 sm:$0xff]  }
 0x5e8   :  { %3845 = vmatprep.subr.bf16.mxu1 %v8156_v10  ;;  %v8213_v10 = vld [vmem:[#allocation5 + $0x8dc] ss:$24 sps:$4 sm:$0xff]  }
 0x5e9   :  { %3967 = vmatpush1.bf16.msra.mxu0 %v8151_v28  ;;  %v8210_v28 = vld [vmem:[#allocation5 + $0x8d4] ss:$24 sps:$4 sm:$0xff]  }
 0x5ea   :  { %3968 = vmatprep.subr.bf16.mxu0 %v8159_v29  ;;  %v8208_v29 = vld [vmem:[#allocation5 + $0x8d0] ss:$24 sps:$4 sm:$0xff]  }
 0x5eb   :  { %3846 = vmatpush1.bf16.msra.mxu1 %v8154_v37  ;;  %v8211_v37 = vld [vmem:[#allocation5 + $0x8d8] ss:$24 sps:$4 sm:$0xff]  }
 0x5ec   :  { %3847 = vmatprep.subr.bf16.mxu1 %v8162_v43  ;;  %v8219_v43 = vld [vmem:[#allocation5 + $0x90c] ss:$24 sps:$4 sm:$0xff]  }
 0x5ed   :  { %3969 = vmatpush1.bf16.msra.mxu0 %v8157_v38  ;;  %v8216_v38 = vld [vmem:[#allocation5 + $0x904] ss:$24 sps:$4 sm:$0xff]  }
 0x5ee   :  { %3970 = vmatprep.subr.bf16.mxu0 %v8165_v45  ;;  %v8214_v45 = vld [vmem:[#allocation5 + $0x900] ss:$24 sps:$4 sm:$0xff]  }
 0x5ef   :  { %3848 = vmatpush1.bf16.msra.mxu1 %v8160_v63  ;;  %v8217_v63 = vld [vmem:[#allocation5 + $0x908] ss:$24 sps:$4 sm:$0xff]  }
 0x5f0   :  { %3849 = vmatprep.subr.bf16.mxu1 %v8168_v61  ;;  %v8225_v61 = vld [vmem:[#allocation5 + $0x93c] ss:$24 sps:$4 sm:$0xff]  }
 0x5f1   :  { %3971 = vmatpush1.bf16.msra.mxu0 %v8163_v34  ;;  %v8222_v34 = vld [vmem:[#allocation5 + $0x934] ss:$24 sps:$4 sm:$0xff]  }
 0x5f2   :  { %3972 = vmatprep.subr.bf16.mxu0 %v8171_v62  ;;  %v8220_v62 = vld [vmem:[#allocation5 + $0x930] ss:$24 sps:$4 sm:$0xff]  }
 0x5f3   :  { %3850 = vmatpush1.bf16.msra.mxu1 %v8166_v1  ;;  %v8223_v1 = vld [vmem:[#allocation5 + $0x938] ss:$24 sps:$4 sm:$0xff]  }
 0x5f4   :  { %3851 = vmatprep.subr.bf16.mxu1 %v8174_v48  ;;  %v8231_v48 = vld [vmem:[#allocation5 + $0x96c] ss:$24 sps:$4 sm:$0xff]  }
 0x5f5   :  { %3973 = vmatpush1.bf16.msra.mxu0 %v8169_v47  ;;  %v8228_v47 = vld [vmem:[#allocation5 + $0x964] ss:$24 sps:$4 sm:$0xff]  }
 0x5f6   :  { %3974 = vmatprep.subr.bf16.mxu0 %v8177_v49  ;;  %v8226_v49 = vld [vmem:[#allocation5 + $0x960] ss:$24 sps:$4 sm:$0xff]  }
 0x5f7   :  { %3852 = vmatpush1.bf16.msra.mxu1 %v8172_v50  ;;  %v8229_v50 = vld [vmem:[#allocation5 + $0x968] ss:$24 sps:$4 sm:$0xff]  }
 0x5f8   :  { %3853 = vmatprep.subr.bf16.mxu1 %v8180_v41  ;;  %v8237_v41 = vld [vmem:[#allocation5 + $0x99c] ss:$24 sps:$4 sm:$0xff]  }
 0x5f9   :  { %3975 = vmatpush1.bf16.msra.mxu0 %v8175_v51  ;;  %v8234_v51 = vld [vmem:[#allocation5 + $0x994] ss:$24 sps:$4 sm:$0xff]  }
 0x5fa   :  { %3976 = vmatprep.subr.bf16.mxu0 %v8183_v52  ;;  %v8232_v52 = vld [vmem:[#allocation5 + $0x990] ss:$24 sps:$4 sm:$0xff]  }
 0x5fb   :  { %3854 = vmatpush1.bf16.msra.mxu1 %v8178_v53  ;;  %v8235_v53 = vld [vmem:[#allocation5 + $0x998] ss:$24 sps:$4 sm:$0xff]  }
 0x5fc   :  { %3855 = vmatprep.subr.bf16.mxu1 %v8186_v55  ;;  %v8243_v55 = vld [vmem:[#allocation5 + $0x9cc] ss:$24 sps:$4 sm:$0xff]  }
 0x5fd   :  { %3977 = vmatpush1.bf16.msra.mxu0 %v8181_v54  ;;  %v8240_v54 = vld [vmem:[#allocation5 + $0x9c4] ss:$24 sps:$4 sm:$0xff]  }
 0x5fe   :  { %3978 = vmatprep.subr.bf16.mxu0 %v8189_v44  ;;  %v8238_v44 = vld [vmem:[#allocation5 + $0x9c0] ss:$24 sps:$4 sm:$0xff]  }
 0x5ff   :  { %3856 = vmatpush1.bf16.msra.mxu1 %v8184_v56  ;;  %v8241_v56 = vld [vmem:[#allocation5 + $0x9c8] ss:$24 sps:$4 sm:$0xff]  }
 0x600   :  { %3857 = vmatprep.subr.bf16.mxu1 %v8192_v4  ;;  %v8252_v4 = vld [vmem:[#allocation5 + $0xa24] ss:$24 sps:$4 sm:$0xff]  }
 0x601   :  { %3979 = vmatpush1.bf16.msra.mxu0 %v8187_v57  ;;  %v8246_v57 = vld [vmem:[#allocation5 + $0x9f4] ss:$24 sps:$4 sm:$0xff]  }
 0x602   :  { %3980 = vmatprep.subr.bf16.mxu0 %v8195_v6  ;;  %v8250_v6 = vld [vmem:[#allocation5 + $0xa20] ss:$24 sps:$4 sm:$0xff]  }
 0x603   :  { %3858 = vmatpush1.bf16.msra.mxu1 %v8190_v3  ;;  %v8247_v3 = vld [vmem:[#allocation5 + $0x9f8] ss:$24 sps:$4 sm:$0xff]  }
 0x604   :  { %3868 = vmatprep.subr.bf16.mxu1 %v8198_v9  ;;  %v8261_v9 = vld [vmem:[#allocation5 + $0xa5c] ss:$24 sps:$4 sm:$0xff]  }
 0x605   :  { %3981 = vmatpush1.bf16.msra.mxu0 %v8193_v5  ;;  %v8255_v5 = vld [vmem:[#allocation5 + $0xa2c] ss:$24 sps:$4 sm:$0xff]  }
 0x606   :  { %3991 = vmatprep.subr.bf16.mxu0 %v8201_v11  ;;  %v8256_v11 = vld [vmem:[#allocation5 + $0xa50] ss:$24 sps:$4 sm:$0xff]  }
 0x667   :  { %v2141_v58 = vpop.xlane.xlu1 %2140 }
 0x668   :  { %v2142_v2 = vrot.slane %v2141_v58, 4 }
 0x66a   :  { %v2143_v7 = vadd.f32 %v2142_v2, %v2141_v58  ;;  %v8249_v58 = vld [vmem:[#allocation5 + $0x9fc] ss:$24 sps:$4 sm:$0xff]   ;;  %v8244_v2 = vld [vmem:[#allocation5 + $0x9f0] ss:$24 sps:$4 sm:$0xff]  }
 0x66c   :  { %v2144_v8 = vrot.slane %v2143_v7, 2 }
 0x66e   :  { %v2145_v12 = vadd.f32 %v2144_v8, %v2143_v7  ;;  %v8253_v7 = vld [vmem:[#allocation5 + $0xa28] ss:$24 sps:$4 sm:$0xff]   ;;  %v8258_v8 = vld [vmem:[#allocation5 + $0xa54] ss:$24 sps:$4 sm:$0xff]  }
 0x670   :  { %v2146_v13 = vrot.slane %v2145_v12, 1 }
 0x672   :  { %v2147_v14 = vadd.f32 %v2146_v13, %v2145_v12  ;;  %v8259_v12 = vld [vmem:[#allocation5 + $0xa58] ss:$24 sps:$4 sm:$0xff]   ;;  %v8264_v13 = vld [vmem:[#allocation5 + $0xa84] ss:$24 sps:$4 sm:$0xff]  }
 0x674   :  { %7705 = vpush %v2147_v14  ;;  %v8267_v14 = vld [vmem:[#allocation5 + $0xa8c] ss:$24 sps:$4 sm:$0xff]  }
 0x6a5   :  { %s7706_s21 = spop %7705 }
 0x6a6   :  { %s2151_s22 = smul.f32 0.00017361112, %s7706_s21 }
 0x6a8   :  { %s2152_s23 = sadd.f32 1e-05, %s2151_s22 }
 0x6aa   :  { %v2153_v15 = vstv %s2152_s23 }
 0x6ab   :  { %8766 = vrsqrt.f32 %v2153_v15  ;;  %v8262_v15 = vld [vmem:[#allocation5 + $0xa80] ss:$24 sps:$4 sm:$0xff]  }
 0x6b5   :  { %v8767_v16 = vpop.eup %8766 }
 0x6b6   :  { %7707 = vpush %v8767_v16  ;;  %v8265_v16 = vld [vmem:[#allocation5 + $0xa88] ss:$24 sps:$4 sm:$0xff]  }
 0x6e7   :  { %s7708_s24 = spop %7707 }
 0x6e8   :  { %v9192_v17 = vstv %s7708_s24 }
 0x6e9   :  { %v2158_v18 = vmul.f32 %v9192_v17, %v9169_v31  ;;  %v2157_v19 = vmul.f32 %v9192_v17, %v9167_v30  ;;  %v2160_v20 = vmul.f32 %v9192_v17, %v9173_v33  ;;  %v8202_v31 = vld [vmem:[#allocation5 + $0x8a0] ss:$24 sps:$4 sm:$0xff]  }
 0x6ea   :  { %v8205_v33 = vld [vmem:[#allocation5 + $0x8a8] ss:$24 sps:$4 sm:$0xff]  }
 0x6eb   :  { %v9200_v21 = vpack.c.bf16 %v2158_v18, %v2158_v18  ;;  %v9202_v26 = vpack.c.bf16 %v2157_v19, %v2157_v19  ;;  %v9208_v30 = vpack.c.bf16 %v2160_v20, %v2160_v20  ;;  %v8270_v18 = vld [vmem:[#allocation5 + $0xab4] ss:$24 sps:$4 sm:$0xff]   ;;  %v8268_v20 = vld [vmem:[#allocation5 + $0xab0] ss:$24 sps:$4 sm:$0xff]  }
 0x6ec   :  { %v8273_v19 = vld [vmem:[#allocation5 + $0xabc] ss:$24 sps:$4 sm:$0xff]  }
 0x6ed   :  { %3859 = vmatprep.mubr.bf16.mxu1 %v9200_v21  ;;  %3982 = vmatprep.mubr.bf16.mxu0 %v9200_v21 }
 0x6ee   :  { %3860 = vmatmul.mubr.bf16.vlgmr.msra.gmra.mrb[12].mxu1 %v9202_v26  ;;  %3983 = vmatmul.mubr.bf16.vlgmr.msra.gmra.mrb[12].mxu0 %v9202_v26 }
 0x6ef   :  { %3869 = vmatpush1.bf16.msra.mxu1 %v8196_v24  ;;  %3992 = vmatpush1.bf16.msra.mxu0 %v8199_v40  ;;  %v8271_v24 = vld [vmem:[#allocation5 + $0xab8] ss:$24 sps:$4 sm:$0xff]   ;;  %v8276_v40 = vld [vmem:[#allocation5 + $0xae4] ss:$24 sps:$4 sm:$0xff]  }
 0x6f0   :  { %3900 = vmatprep.mubr.bf16.mxu1 %v9208_v30  ;;  %4023 = vmatprep.mubr.bf16.mxu0 %v9208_v30 }
 0x6f1   :  { %3870 = vmatprep.subr.bf16.mxu1 %v8204_v46  ;;  %3993 = vmatprep.subr.bf16.mxu0 %v8207_v27  ;;  %v8279_v46 = vld [vmem:[#allocation5 + $0xaec] ss:$24 sps:$4 sm:$0xff]   ;;  %v8274_v27 = vld [vmem:[#allocation5 + $0xae0] ss:$24 sps:$4 sm:$0xff]  }
 0x6f3   :  { %3871 = vmatpush1.bf16.msra.mxu1 %v8202_v31  ;;  %3994 = vmatpush1.bf16.msra.mxu0 %v8205_v33  ;;  %v8277_v31 = vld [vmem:[#allocation5 + $0xae8] ss:$24 sps:$4 sm:$0xff]   ;;  %v8282_v33 = vld [vmem:[#allocation5 + $0xb14] ss:$24 sps:$4 sm:$0xff]  }
 0x6f4   :  { %3872 = vmatprep.subr.bf16.mxu1 %v8210_v28  ;;  %3995 = vmatprep.subr.bf16.mxu0 %v8213_v10  ;;  %v8285_v28 = vld [vmem:[#allocation5 + $0xb1c] ss:$24 sps:$4 sm:$0xff]   ;;  %v8280_v10 = vld [vmem:[#allocation5 + $0xb10] ss:$24 sps:$4 sm:$0xff]  }
 0x6f7   :  { %3873 = vmatpush1.bf16.msra.mxu1 %v8208_v29  ;;  %3996 = vmatpush1.bf16.msra.mxu0 %v8211_v37  ;;  %v8283_v29 = vld [vmem:[#allocation5 + $0xb18] ss:$24 sps:$4 sm:$0xff]   ;;  %v8288_v37 = vld [vmem:[#allocation5 + $0xb44] ss:$24 sps:$4 sm:$0xff]  }
 0x6f8   :  { %3874 = vmatprep.subr.bf16.mxu1 %v8216_v38  ;;  %3997 = vmatprep.subr.bf16.mxu0 %v8219_v43  ;;  %v8291_v38 = vld [vmem:[#allocation5 + $0xb4c] ss:$24 sps:$4 sm:$0xff]   ;;  %v8286_v43 = vld [vmem:[#allocation5 + $0xb40] ss:$24 sps:$4 sm:$0xff]  }
 0x6fb   :  { %3875 = vmatpush1.bf16.msra.mxu1 %v8214_v45  ;;  %3998 = vmatpush1.bf16.msra.mxu0 %v8217_v63  ;;  %v8289_v45 = vld [vmem:[#allocation5 + $0xb48] ss:$24 sps:$4 sm:$0xff]   ;;  %v2159_v63 = vmul.f32 %v9192_v17, %v9171_v32 }
 0x6fc   :  { %3876 = vmatprep.subr.bf16.mxu1 %v8222_v34  ;;  %3999 = vmatprep.subr.bf16.mxu0 %v8225_v61  ;;  %v8294_v34 = vld [vmem:[#allocation5 + $0xb74] ss:$24 sps:$4 sm:$0xff]   ;;  %v8298_v32 = vld [vmem:[#allocation5 + $0xba0] ss:$24 sps:$4 sm:$0xff]  }
 0x6fd   :  { %v8297_v61 = vld [vmem:[#allocation5 + $0xb7c] ss:$24 sps:$4 sm:$0xff]  }
 0x6ff   :  { %3877 = vmatpush1.bf16.msra.mxu1 %v8220_v62  ;;  %4000 = vmatpush1.bf16.msra.mxu0 %v8223_v1  ;;  %v2162_v62 = vmul.f32 %v9192_v17, %v9179_v39  ;;  %v8292_v1 = vld [vmem:[#allocation5 + $0xb70] ss:$24 sps:$4 sm:$0xff]  }
 0x700   :  { %3878 = vmatprep.subr.bf16.mxu1 %v8228_v47  ;;  %4001 = vmatprep.subr.bf16.mxu0 %v8231_v48  ;;  %v9216_v47 = vpack.c.bf16 %v2159_v63, %v2159_v63  ;;  %v8295_v48 = vld [vmem:[#allocation5 + $0xb78] ss:$24 sps:$4 sm:$0xff]   ;;  %v8301_v39 = vld [vmem:[#allocation5 + $0xba8] ss:$24 sps:$4 sm:$0xff]  }
 0x701   :  { %v8361_v63 = vld [vmem:[#allocation5 + $0xd88] ss:$24 sps:$4 sm:$0xff]  }
 0x703   :  { %3879 = vmatpush1.bf16.msra.mxu1 %v8226_v49  ;;  %4002 = vmatpush1.bf16.msra.mxu0 %v8229_v50  ;;  %v9218_v49 = vpack.c.bf16 %v2162_v62, %v2162_v62  ;;  %v8300_v50 = vld [vmem:[#allocation5 + $0xba4] ss:$24 sps:$4 sm:$0xff]   ;;  %v8364_v62 = vld [vmem:[#allocation5 + $0xdb0] ss:$24 sps:$4 sm:$0xff]  }
 0x704   :  { %3880 = vmatprep.subr.bf16.mxu1 %v8234_v51  ;;  %4003 = vmatprep.subr.bf16.mxu0 %v8237_v41  ;;  %v8303_v51 = vld [vmem:[#allocation5 + $0xbac] ss:$24 sps:$4 sm:$0xff]  }
 0x705   :  { %v8306_v41 = vld [vmem:[#allocation5 + $0xbd4] ss:$24 sps:$4 sm:$0xff]  }
 0x707   :  { %3881 = vmatpush1.bf16.msra.mxu1 %v8232_v52  ;;  %4004 = vmatpush1.bf16.msra.mxu0 %v8235_v53  ;;  %v8309_v52 = vld [vmem:[#allocation5 + $0xbdc] ss:$24 sps:$4 sm:$0xff]   ;;  %v8304_v53 = vld [vmem:[#allocation5 + $0xbd0] ss:$24 sps:$4 sm:$0xff]  }
 0x708   :  { %3882 = vmatprep.subr.bf16.mxu1 %v8240_v54  ;;  %4005 = vmatprep.subr.bf16.mxu0 %v8243_v55  ;;  %v8307_v54 = vld [vmem:[#allocation5 + $0xbd8] ss:$24 sps:$4 sm:$0xff]   ;;  %v8312_v55 = vld [vmem:[#allocation5 + $0xc04] ss:$24 sps:$4 sm:$0xff]  }
 0x70b   :  { %3883 = vmatpush1.bf16.msra.mxu1 %v8238_v44  ;;  %4006 = vmatpush1.bf16.msra.mxu0 %v8241_v56  ;;  %v8315_v44 = vld [vmem:[#allocation5 + $0xc0c] ss:$24 sps:$4 sm:$0xff]   ;;  %v8310_v56 = vld [vmem:[#allocation5 + $0xc00] ss:$24 sps:$4 sm:$0xff]  }
 0x70c   :  { %3884 = vmatprep.subr.bf16.mxu1 %v8246_v57  ;;  %4007 = vmatprep.subr.bf16.mxu0 %v8249_v58  ;;  %v8313_v57 = vld [vmem:[#allocation5 + $0xc08] ss:$24 sps:$4 sm:$0xff]   ;;  %v8318_v58 = vld [vmem:[#allocation5 + $0xc34] ss:$24 sps:$4 sm:$0xff]  }
 0x70f   :  { %3885 = vmatpush1.bf16.msra.mxu1 %v8244_v2  ;;  %4008 = vmatpush1.bf16.msra.mxu0 %v8247_v3  ;;  %v8321_v2 = vld [vmem:[#allocation5 + $0xc3c] ss:$24 sps:$4 sm:$0xff]   ;;  %v8316_v3 = vld [vmem:[#allocation5 + $0xc30] ss:$24 sps:$4 sm:$0xff]  }
 0x710   :  { %3886 = vmatprep.subr.bf16.mxu1 %v8252_v4  ;;  %4009 = vmatprep.subr.bf16.mxu0 %v8255_v5  ;;  %v8319_v4 = vld [vmem:[#allocation5 + $0xc38] ss:$24 sps:$4 sm:$0xff]   ;;  %v8324_v5 = vld [vmem:[#allocation5 + $0xc64] ss:$24 sps:$4 sm:$0xff]  }
 0x713   :  { %3887 = vmatpush1.bf16.msra.mxu1 %v8250_v6  ;;  %4010 = vmatpush1.bf16.msra.mxu0 %v8253_v7  ;;  %v8327_v6 = vld [vmem:[#allocation5 + $0xc6c] ss:$24 sps:$4 sm:$0xff]   ;;  %v8322_v7 = vld [vmem:[#allocation5 + $0xc60] ss:$24 sps:$4 sm:$0xff]  }
 0x714   :  { %3888 = vmatprep.subr.bf16.mxu1 %v8258_v8  ;;  %4011 = vmatprep.subr.bf16.mxu0 %v8261_v9  ;;  %v8325_v8 = vld [vmem:[#allocation5 + $0xc68] ss:$24 sps:$4 sm:$0xff]   ;;  %v8330_v9 = vld [vmem:[#allocation5 + $0xc94] ss:$24 sps:$4 sm:$0xff]  }
 0x717   :  { %3889 = vmatpush1.bf16.msra.mxu1 %v8256_v11  ;;  %4012 = vmatpush1.bf16.msra.mxu0 %v8259_v12  ;;  %v8333_v11 = vld [vmem:[#allocation5 + $0xc9c] ss:$24 sps:$4 sm:$0xff]   ;;  %v8328_v12 = vld [vmem:[#allocation5 + $0xc90] ss:$24 sps:$4 sm:$0xff]  }
 0x718   :  { %3890 = vmatprep.subr.bf16.mxu1 %v8264_v13  ;;  %4013 = vmatprep.subr.bf16.mxu0 %v8267_v14  ;;  %v8331_v13 = vld [vmem:[#allocation5 + $0xc98] ss:$24 sps:$4 sm:$0xff]   ;;  %v8336_v14 = vld [vmem:[#allocation5 + $0xcc4] ss:$24 sps:$4 sm:$0xff]  }
 0x71b   :  { %3891 = vmatpush1.bf16.msra.mxu1 %v8262_v15  ;;  %4014 = vmatpush1.bf16.msra.mxu0 %v8265_v16  ;;  %v8339_v15 = vld [vmem:[#allocation5 + $0xccc] ss:$24 sps:$4 sm:$0xff]   ;;  %v8334_v16 = vld [vmem:[#allocation5 + $0xcc0] ss:$24 sps:$4 sm:$0xff]  }
 0x71c   :  { %3892 = vmatprep.subr.bf16.mxu1 %v8270_v18  ;;  %4015 = vmatprep.subr.bf16.mxu0 %v8273_v19  ;;  %v8337_v18 = vld [vmem:[#allocation5 + $0xcc8] ss:$24 sps:$4 sm:$0xff]   ;;  %v8342_v19 = vld [vmem:[#allocation5 + $0xcf4] ss:$24 sps:$4 sm:$0xff]  }
 0x71f   :  { %3893 = vmatpush1.bf16.msra.mxu1 %v8268_v20  ;;  %4016 = vmatpush1.bf16.msra.mxu0 %v8271_v24  ;;  %v8345_v20 = vld [vmem:[#allocation5 + $0xcfc] ss:$24 sps:$4 sm:$0xff]   ;;  %v8340_v24 = vld [vmem:[#allocation5 + $0xcf0] ss:$24 sps:$4 sm:$0xff]  }
 0x720   :  { %3894 = vmatprep.subr.bf16.mxu1 %v8276_v40  ;;  %4017 = vmatprep.subr.bf16.mxu0 %v8279_v46  ;;  %v8343_v40 = vld [vmem:[#allocation5 + $0xcf8] ss:$24 sps:$4 sm:$0xff]   ;;  %v8348_v46 = vld [vmem:[#allocation5 + $0xd24] ss:$24 sps:$4 sm:$0xff]  }
 0x723   :  { %3895 = vmatpush1.bf16.msra.mxu1 %v8274_v27  ;;  %4018 = vmatpush1.bf16.msra.mxu0 %v8277_v31  ;;  %v8351_v27 = vld [vmem:[#allocation5 + $0xd2c] ss:$24 sps:$4 sm:$0xff]   ;;  %v8346_v31 = vld [vmem:[#allocation5 + $0xd20] ss:$24 sps:$4 sm:$0xff]  }
 0x724   :  { %3896 = vmatprep.subr.bf16.mxu1 %v8282_v33  ;;  %4019 = vmatprep.subr.bf16.mxu0 %v8285_v28  ;;  %v8349_v33 = vld [vmem:[#allocation5 + $0xd28] ss:$24 sps:$4 sm:$0xff]   ;;  %v8354_v28 = vld [vmem:[#allocation5 + $0xd54] ss:$24 sps:$4 sm:$0xff]  }
 0x727   :  { %3897 = vmatpush1.bf16.msra.mxu1 %v8280_v10  ;;  %4020 = vmatpush1.bf16.msra.mxu0 %v8283_v29  ;;  %v8357_v10 = vld [vmem:[#allocation5 + $0xd5c] ss:$24 sps:$4 sm:$0xff]   ;;  %v8352_v29 = vld [vmem:[#allocation5 + $0xd50] ss:$24 sps:$4 sm:$0xff]  }
 0x728   :  { %3898 = vmatprep.subr.bf16.mxu1 %v8288_v37  ;;  %4021 = vmatprep.subr.bf16.mxu0 %v8291_v38  ;;  %v8355_v37 = vld [vmem:[#allocation5 + $0xd58] ss:$24 sps:$4 sm:$0xff]   ;;  %v8360_v38 = vld [vmem:[#allocation5 + $0xd84] ss:$24 sps:$4 sm:$0xff]  }
 0x72b   :  { %3899 = vmatpush1.bf16.msra.mxu1 %v8286_v43  ;;  %4022 = vmatpush1.bf16.msra.mxu0 %v8289_v45  ;;  %v8363_v43 = vld [vmem:[#allocation5 + $0xd8c] ss:$24 sps:$4 sm:$0xff]   ;;  %v8358_v45 = vld [vmem:[#allocation5 + $0xd80] ss:$24 sps:$4 sm:$0xff]  }
 0x72c   :  { %3909 = vmatprep.subr.bf16.mxu1 %v8294_v34  ;;  %4032 = vmatprep.subr.bf16.mxu0 %v8297_v61  ;;  %v8366_v34 = vld [vmem:[#allocation5 + $0xdb4] ss:$24 sps:$4 sm:$0xff]  }
 0x72d   :  { %v8369_v61 = vld [vmem:[#allocation5 + $0xdbc] ss:$24 sps:$4 sm:$0xff]  }
 0x72e   :  { %3901 = vmatmul.mubr.bf16.vlgmr.msra.gmra.mrb[12].mxu1 %v9216_v47  ;;  %4024 = vmatmul.mubr.bf16.vlgmr.msra.gmra.mrb[12].mxu0 %v9216_v47 }
 0x72f   :  { %3910 = vmatpush1.bf16.msra.mxu1 %v8292_v1  ;;  %7207 = vmatprep.mubr.msk.bf16.mxu1 %vm2106_vm4, %v9218_v49  ;;  %v8367_v1 = vld [vmem:[#allocation5 + $0xdb8] ss:$24 sps:$4 sm:$0xff]  }
 0x730   :  { %4033 = vmatpush1.bf16.msra.mxu0 %v8295_v48  ;;  %7208 = vmatprep.mubr.msk.bf16.mxu0 %vm2106_vm4, %v9218_v49  ;;  %v2161_v48 = vmul.f32 %v9192_v17, %v9181_v42  ;;  %v8376_v42 = vld [vmem:[#allocation5 + $0x5e0] ss:$24 sps:$4 sm:$0xff]   ;;  %v8381_v17 = vld [vmem:[#allocation5 + $0x614] ss:$24 sps:$4 sm:$0xff]  }
 0x731   :  { %3911 = vmatprep.subr.bf16.mxu1 %v8300_v50  ;;  %4034 = vmatprep.subr.bf16.mxu0 %v8303_v51  ;;  %v8372_v50 = vld [vmem:[#allocation5 + $0x584] ss:$24 sps:$4 sm:$0xff]   ;;  %v8370_v51 = vld [vmem:[#allocation5 + $0x580] ss:$24 sps:$4 sm:$0xff]  }
 0x733   :  { %3912 = vmatpush1.bf16.msra.mxu1 %v8298_v32  ;;  %v9228_v32 = vpack.c.bf16 %v2161_v48, %v2161_v48  ;;  %v8450_v48 = vld [vmem:[#allocation5 + $0xa64] ss:$24 sps:$4 sm:$0xff]  }
 0x734   :  { %4035 = vmatpush1.bf16.msra.mxu0 %v8301_v39  ;;  %3913 = vmatprep.subr.bf16.mxu1 %v8306_v41  ;;  %v8375_v39 = vld [vmem:[#allocation5 + $0x5b4] ss:$24 sps:$4 sm:$0xff]   ;;  %v8373_v41 = vld [vmem:[#allocation5 + $0x5b0] ss:$24 sps:$4 sm:$0xff]  }
 0x735   :  { %4036 = vmatprep.subr.bf16.mxu0 %v8309_v52  ;;  %v8378_v52 = vld [vmem:[#allocation5 + $0x5e4] ss:$24 sps:$4 sm:$0xff]  }
 0x737   :  { %3914 = vmatpush1.bf16.msra.mxu1 %v8304_v53  ;;  %v8379_v53 = vld [vmem:[#allocation5 + $0x610] ss:$24 sps:$4 sm:$0xff]  }
 0x738   :  { %4037 = vmatpush1.bf16.msra.mxu0 %v8307_v54  ;;  %3915 = vmatprep.subr.bf16.mxu1 %v8312_v55  ;;  %v8384_v54 = vld [vmem:[#allocation5 + $0x644] ss:$24 sps:$4 sm:$0xff]   ;;  %v8382_v55 = vld [vmem:[#allocation5 + $0x640] ss:$24 sps:$4 sm:$0xff]  }
 0x739   :  { %4038 = vmatprep.subr.bf16.mxu0 %v8315_v44  ;;  %v8387_v44 = vld [vmem:[#allocation5 + $0x674] ss:$24 sps:$4 sm:$0xff]  }
 0x73b   :  { %3916 = vmatpush1.bf16.msra.mxu1 %v8310_v56  ;;  %v8385_v56 = vld [vmem:[#allocation5 + $0x670] ss:$24 sps:$4 sm:$0xff]  }
 0x73c   :  { %4039 = vmatpush1.bf16.msra.mxu0 %v8313_v57  ;;  %3917 = vmatprep.subr.bf16.mxu1 %v8318_v58  ;;  %v8390_v57 = vld [vmem:[#allocation5 + $0x6a4] ss:$24 sps:$4 sm:$0xff]   ;;  %v8393_v58 = vld [vmem:[#allocation5 + $0x6d4] ss:$24 sps:$4 sm:$0xff]  }
 0x73d   :  { %4040 = vmatprep.subr.bf16.mxu0 %v8321_v2  ;;  %v8391_v2 = vld [vmem:[#allocation5 + $0x6d0] ss:$24 sps:$4 sm:$0xff]  }
 0x73f   :  { %3918 = vmatpush1.bf16.msra.mxu1 %v8316_v3  ;;  %v8396_v3 = vld [vmem:[#allocation5 + $0x704] ss:$24 sps:$4 sm:$0xff]  }
 0x740   :  { %4041 = vmatpush1.bf16.msra.mxu0 %v8319_v4  ;;  %3919 = vmatprep.subr.bf16.mxu1 %v8324_v5  ;;  %v8394_v4 = vld [vmem:[#allocation5 + $0x700] ss:$24 sps:$4 sm:$0xff]   ;;  %v8399_v5 = vld [vmem:[#allocation5 + $0x734] ss:$24 sps:$4 sm:$0xff]  }
 0x741   :  { %4042 = vmatprep.subr.bf16.mxu0 %v8327_v6  ;;  %v8397_v6 = vld [vmem:[#allocation5 + $0x730] ss:$24 sps:$4 sm:$0xff]  }
 0x743   :  { %3920 = vmatpush1.bf16.msra.mxu1 %v8322_v7  ;;  %v8402_v7 = vld [vmem:[#allocation5 + $0x764] ss:$24 sps:$4 sm:$0xff]  }
 0x744   :  { %4043 = vmatpush1.bf16.msra.mxu0 %v8325_v8  ;;  %3921 = vmatprep.subr.bf16.mxu1 %v8330_v9  ;;  %v8400_v8 = vld [vmem:[#allocation5 + $0x760] ss:$24 sps:$4 sm:$0xff]   ;;  %v8405_v9 = vld [vmem:[#allocation5 + $0x794] ss:$24 sps:$4 sm:$0xff]  }
 0x745   :  { %4044 = vmatprep.subr.bf16.mxu0 %v8333_v11  ;;  %v8403_v11 = vld [vmem:[#allocation5 + $0x790] ss:$24 sps:$4 sm:$0xff]  }
 0x747   :  { %3922 = vmatpush1.bf16.msra.mxu1 %v8328_v12  ;;  %v8408_v12 = vld [vmem:[#allocation5 + $0x7c4] ss:$24 sps:$4 sm:$0xff]  }
 0x748   :  { %4045 = vmatpush1.bf16.msra.mxu0 %v8331_v13  ;;  %3923 = vmatprep.subr.bf16.mxu1 %v8336_v14  ;;  %v8406_v13 = vld [vmem:[#allocation5 + $0x7c0] ss:$24 sps:$4 sm:$0xff]   ;;  %v8411_v14 = vld [vmem:[#allocation5 + $0x7f4] ss:$24 sps:$4 sm:$0xff]  }
 0x749   :  { %4046 = vmatprep.subr.bf16.mxu0 %v8339_v15  ;;  %v8409_v15 = vld [vmem:[#allocation5 + $0x7f0] ss:$24 sps:$4 sm:$0xff]  }
 0x74b   :  { %3924 = vmatpush1.bf16.msra.mxu1 %v8334_v16  ;;  %v8414_v16 = vld [vmem:[#allocation5 + $0x824] ss:$24 sps:$4 sm:$0xff]  }
 0x74c   :  { %4047 = vmatpush1.bf16.msra.mxu0 %v8337_v18  ;;  %3925 = vmatprep.subr.bf16.mxu1 %v8342_v19  ;;  %v8412_v18 = vld [vmem:[#allocation5 + $0x820] ss:$24 sps:$4 sm:$0xff]   ;;  %v8417_v19 = vld [vmem:[#allocation5 + $0x854] ss:$24 sps:$4 sm:$0xff]  }
 0x74d   :  { %4048 = vmatprep.subr.bf16.mxu0 %v8345_v20  ;;  %v8415_v20 = vld [vmem:[#allocation5 + $0x850] ss:$24 sps:$4 sm:$0xff]  }
 0x74f   :  { %3926 = vmatpush1.bf16.msra.mxu1 %v8340_v24  ;;  %v8420_v24 = vld [vmem:[#allocation5 + $0x884] ss:$24 sps:$4 sm:$0xff]  }
 0x750   :  { %4049 = vmatpush1.bf16.msra.mxu0 %v8343_v40  ;;  %3927 = vmatprep.subr.bf16.mxu1 %v8348_v46  ;;  %v8418_v40 = vld [vmem:[#allocation5 + $0x880] ss:$24 sps:$4 sm:$0xff]   ;;  %v8423_v46 = vld [vmem:[#allocation5 + $0x8b4] ss:$24 sps:$4 sm:$0xff]  }
 0x751   :  { %4050 = vmatprep.subr.bf16.mxu0 %v8351_v27  ;;  %v8421_v27 = vld [vmem:[#allocation5 + $0x8b0] ss:$24 sps:$4 sm:$0xff]  }
 0x753   :  { %3928 = vmatpush1.bf16.msra.mxu1 %v8346_v31  ;;  %v8426_v31 = vld [vmem:[#allocation5 + $0x8e4] ss:$24 sps:$4 sm:$0xff]  }
 0x754   :  { %4051 = vmatpush1.bf16.msra.mxu0 %v8349_v33  ;;  %3929 = vmatprep.subr.bf16.mxu1 %v8354_v28  ;;  %v8424_v33 = vld [vmem:[#allocation5 + $0x8e0] ss:$24 sps:$4 sm:$0xff]   ;;  %v8429_v28 = vld [vmem:[#allocation5 + $0x914] ss:$24 sps:$4 sm:$0xff]  }
 0x755   :  { %4052 = vmatprep.subr.bf16.mxu0 %v8357_v10  ;;  %v8427_v10 = vld [vmem:[#allocation5 + $0x910] ss:$24 sps:$4 sm:$0xff]  }
 0x757   :  { %3930 = vmatpush1.bf16.msra.mxu1 %v8352_v29  ;;  %v8432_v29 = vld [vmem:[#allocation5 + $0x944] ss:$24 sps:$4 sm:$0xff]  }
 0x758   :  { %4053 = vmatpush1.bf16.msra.mxu0 %v8355_v37  ;;  %3931 = vmatprep.subr.bf16.mxu1 %v8360_v38  ;;  %v8430_v37 = vld [vmem:[#allocation5 + $0x940] ss:$24 sps:$4 sm:$0xff]   ;;  %v8435_v38 = vld [vmem:[#allocation5 + $0x974] ss:$24 sps:$4 sm:$0xff]  }
 0x759   :  { %4054 = vmatprep.subr.bf16.mxu0 %v8363_v43  ;;  %v8438_v43 = vld [vmem:[#allocation5 + $0x9a4] ss:$24 sps:$4 sm:$0xff]  }
 0x75b   :  { %3932 = vmatpush1.bf16.msra.mxu1 %v8358_v45  ;;  %v8441_v45 = vld [vmem:[#allocation5 + $0x9d4] ss:$24 sps:$4 sm:$0xff]  }
 0x75c   :  { %4055 = vmatpush1.bf16.msra.mxu0 %v8361_v63  ;;  %3933 = vmatprep.subr.bf16.mxu1 %v8366_v34  ;;  %v8439_v63 = vld [vmem:[#allocation5 + $0x9d0] ss:$24 sps:$4 sm:$0xff]   ;;  %v8444_v34 = vld [vmem:[#allocation5 + $0xa04] ss:$24 sps:$4 sm:$0xff]  }
 0x75d   :  { %4056 = vmatprep.subr.bf16.mxu0 %v8369_v61  ;;  %v8442_v61 = vld [vmem:[#allocation5 + $0xa00] ss:$24 sps:$4 sm:$0xff]  }
 0x75f   :  { %3934 = vmatpush1.bf16.msra.mxu1 %v8364_v62  ;;  %v8447_v62 = vld [vmem:[#allocation5 + $0xa34] ss:$24 sps:$4 sm:$0xff]  }
 0x760   :  { %4057 = vmatpush1.bf16.msra.mxu0 %v8367_v1  ;;  %4073 = vmatprep.subr.bf16.mxu1 %v8372_v50  ;;  %v8445_v1 = vld [vmem:[#allocation5 + $0xa30] ss:$24 sps:$4 sm:$0xff]   ;;  %v8448_v50 = vld [vmem:[#allocation5 + $0xa60] ss:$24 sps:$4 sm:$0xff]  }
 0x762   :  { %3942 = vmatmul.mubr.bf16.vlgmr.msra.gmra.mrb[12].mxu1 %v9228_v32 }
 0x763   :  { %4065 = vmatmul.mubr.bf16.vlgmr.msra.gmra.mrb[12].mxu0 %v9228_v32  ;;  %4074 = vmatpush1.bf16.msra.mxu1 %v8370_v51  ;;  %v8453_v51 = vld [vmem:[#allocation5 + $0xa94] ss:$24 sps:$4 sm:$0xff]  }
 0x764   :  { %4105 = vmatprep.mubr.bf16.mxu1 %v9200_v21  ;;  %4075 = vmatprep.subr.bf16.mxu1 %v8375_v39  ;;  %v8388_v21 = vld [vmem:[#allocation5 + $0x6a0] ss:$24 sps:$4 sm:$0xff]   ;;  %v8451_v39 = vld [vmem:[#allocation5 + $0xa90] ss:$24 sps:$4 sm:$0xff]  }
 0x767   :  { %4076 = vmatpush1.bf16.msra.mxu1 %v8373_v41  ;;  %v8456_v41 = vld [vmem:[#allocation5 + $0xac4] ss:$24 sps:$4 sm:$0xff]  }
 0x768   :  { %4077 = vmatprep.subr.bf16.mxu1 %v8378_v52  ;;  %v8454_v52 = vld [vmem:[#allocation5 + $0xac0] ss:$24 sps:$4 sm:$0xff]  }
 0x76b   :  { %4078 = vmatpush1.bf16.msra.mxu1 %v8376_v42  ;;  %v8459_v42 = vld [vmem:[#allocation5 + $0xaf4] ss:$24 sps:$4 sm:$0xff]  }
 0x76c   :  { %4079 = vmatprep.subr.bf16.mxu1 %v8381_v17  ;;  %v8457_v17 = vld [vmem:[#allocation5 + $0xaf0] ss:$24 sps:$4 sm:$0xff]  }
 0x76f   :  { %4080 = vmatpush1.bf16.msra.mxu1 %v8379_v53  ;;  %v8462_v53 = vld [vmem:[#allocation5 + $0xb24] ss:$24 sps:$4 sm:$0xff]  }
 0x770   :  { %4081 = vmatprep.subr.bf16.mxu1 %v8384_v54  ;;  %v8460_v54 = vld [vmem:[#allocation5 + $0xb20] ss:$24 sps:$4 sm:$0xff]  }
 0x773   :  { %4082 = vmatpush1.bf16.msra.mxu1 %v8382_v55  ;;  %v8465_v55 = vld [vmem:[#allocation5 + $0xb54] ss:$24 sps:$4 sm:$0xff]  }
 0x774   :  { %4083 = vmatprep.subr.bf16.mxu1 %v8387_v44  ;;  %v8463_v44 = vld [vmem:[#allocation5 + $0xb50] ss:$24 sps:$4 sm:$0xff]  }
 0x777   :  { %4084 = vmatpush1.bf16.msra.mxu1 %v8385_v56  ;;  %v8468_v56 = vld [vmem:[#allocation5 + $0xb84] ss:$24 sps:$4 sm:$0xff]  }
 0x778   :  { %4085 = vmatprep.subr.bf16.mxu1 %v8390_v57  ;;  %v8466_v57 = vld [vmem:[#allocation5 + $0xb80] ss:$24 sps:$4 sm:$0xff]  }
 0x77b   :  { %4086 = vmatpush1.bf16.msra.mxu1 %v8388_v21  ;;  %v8471_v21 = vld [vmem:[#allocation5 + $0xbb4] ss:$24 sps:$4 sm:$0xff]  }
 0x77c   :  { %4087 = vmatprep.subr.bf16.mxu1 %v8393_v58  ;;  %v8469_v58 = vld [vmem:[#allocation5 + $0xbb0] ss:$24 sps:$4 sm:$0xff]  }
 0x77f   :  { %4088 = vmatpush1.bf16.msra.mxu1 %v8391_v2  ;;  %v8474_v2 = vld [vmem:[#allocation5 + $0xbe4] ss:$24 sps:$4 sm:$0xff]  }
 0x780   :  { %4089 = vmatprep.subr.bf16.mxu1 %v8396_v3  ;;  %v8472_v3 = vld [vmem:[#allocation5 + $0xbe0] ss:$24 sps:$4 sm:$0xff]  }
 0x783   :  { %4090 = vmatpush1.bf16.msra.mxu1 %v8394_v4  ;;  %v8477_v4 = vld [vmem:[#allocation5 + $0xc14] ss:$24 sps:$4 sm:$0xff]  }
 0x784   :  { %4091 = vmatprep.subr.bf16.mxu1 %v8399_v5  ;;  %v8475_v5 = vld [vmem:[#allocation5 + $0xc10] ss:$24 sps:$4 sm:$0xff]  }
 0x787   :  { %4092 = vmatpush1.bf16.msra.mxu1 %v8397_v6  ;;  %v8480_v6 = vld [vmem:[#allocation5 + $0xc44] ss:$24 sps:$4 sm:$0xff]  }
 0x788   :  { %4093 = vmatprep.subr.bf16.mxu1 %v8402_v7  ;;  %v8478_v7 = vld [vmem:[#allocation5 + $0xc40] ss:$24 sps:$4 sm:$0xff]  }
 0x78b   :  { %4094 = vmatpush1.bf16.msra.mxu1 %v8400_v8  ;;  %v8483_v8 = vld [vmem:[#allocation5 + $0xc74] ss:$24 sps:$4 sm:$0xff]  }
 0x78c   :  { %4095 = vmatprep.subr.bf16.mxu1 %v8405_v9  ;;  %v8486_v9 = vld [vmem:[#allocation5 + $0xca4] ss:$24 sps:$4 sm:$0xff]  }
 0x78f   :  { %4096 = vmatpush1.bf16.msra.mxu1 %v8403_v11  ;;  %v8489_v11 = vld [vmem:[#allocation5 + $0xcd4] ss:$24 sps:$4 sm:$0xff]  }
 0x790   :  { %4097 = vmatprep.subr.bf16.mxu1 %v8408_v12  ;;  %v8487_v12 = vld [vmem:[#allocation5 + $0xcd0] ss:$24 sps:$4 sm:$0xff]  }
 0x793   :  { %4098 = vmatpush1.bf16.msra.mxu1 %v8406_v13  ;;  %v8492_v13 = vld [vmem:[#allocation5 + $0xd04] ss:$24 sps:$4 sm:$0xff]  }
 0x794   :  { %4099 = vmatprep.subr.bf16.mxu1 %v8411_v14  ;;  %v8490_v14 = vld [vmem:[#allocation5 + $0xd00] ss:$24 sps:$4 sm:$0xff]  }
 0x797   :  { %4100 = vmatpush1.bf16.msra.mxu1 %v8409_v15  ;;  %v8495_v15 = vld [vmem:[#allocation5 + $0xd34] ss:$24 sps:$4 sm:$0xff]  }
 0x798   :  { %4101 = vmatprep.subr.bf16.mxu1 %v8414_v16  ;;  %v8493_v16 = vld [vmem:[#allocation5 + $0xd30] ss:$24 sps:$4 sm:$0xff]  }
 0x79b   :  { %4102 = vmatpush1.bf16.msra.mxu1 %v8412_v18  ;;  %v8498_v18 = vld [vmem:[#allocation5 + $0xd64] ss:$24 sps:$4 sm:$0xff]  }
 0x79c   :  { %4103 = vmatprep.subr.bf16.mxu1 %v8417_v19  ;;  %v8496_v19 = vld [vmem:[#allocation5 + $0xd60] ss:$24 sps:$4 sm:$0xff]  }
 0x79f   :  { %4104 = vmatpush1.bf16.msra.mxu1 %v8415_v20  ;;  %v8501_v20 = vld [vmem:[#allocation5 + $0xd94] ss:$24 sps:$4 sm:$0xff]  }
 0x7a0   :  { %4114 = vmatprep.subr.bf16.mxu1 %v8420_v24  ;;  %v8499_v24 = vld [vmem:[#allocation5 + $0xd90] ss:$24 sps:$4 sm:$0xff]  }
 0x7a2   :  { %4106 = vmatmul.mubr.bf16.vlgmr.msra.gmra.mrb[16].mxu1 %v9202_v26  ;;  %v8433_v26 = vld [vmem:[#allocation5 + $0x970] ss:$24 sps:$4 sm:$0xff]  }
 0x7a3   :  { %4115 = vmatpush1.bf16.msra.mxu1 %v8418_v40  ;;  %4146 = vmatprep.mubr.bf16.mxu1 %v9208_v30  ;;  %v8436_v30 = vld [vmem:[#allocation5 + $0x9a0] ss:$24 sps:$4 sm:$0xff]   ;;  %v8504_v40 = vld [vmem:[#allocation5 + $0xdc4] ss:$24 sps:$4 sm:$0xff]  }
 0x7a4   :  { %4116 = vmatprep.subr.bf16.mxu1 %v8423_v46  ;;  %v8502_v46 = vld [vmem:[#allocation5 + $0xdc0] ss:$24 sps:$4 sm:$0xff]  }
 0x7a7   :  { %4117 = vmatpush1.bf16.msra.mxu1 %v8421_v27 }
 0x7a8   :  { %4118 = vmatprep.subr.bf16.mxu1 %v8426_v31 }
 0x7ab   :  { %4119 = vmatpush1.bf16.msra.mxu1 %v8424_v33 }
 0x7ac   :  { %4120 = vmatprep.subr.bf16.mxu1 %v8429_v28 }
 0x7af   :  { %4121 = vmatpush1.bf16.msra.mxu1 %v8427_v10 }
 0x7b0   :  { %4122 = vmatprep.subr.bf16.mxu1 %v8432_v29 }
 0x7b3   :  { %4123 = vmatpush1.bf16.msra.mxu1 %v8430_v37 }
 0x7b4   :  { %4124 = vmatprep.subr.bf16.mxu1 %v8435_v38 }
 0x7b7   :  { %4125 = vmatpush1.bf16.msra.mxu1 %v8433_v26  ;;  %v2440_v26 = vld [vmem:[#allocation10 + $0x2] ss:$8 sm:$0xf] }
 0x7b8   :  { %4126 = vmatprep.subr.bf16.mxu1 %v8438_v43  ;;  %v2441_v43 = vld [vmem:[#allocation10 + $0x2] ss:$8 sm:$0x30] }
 0x7bb   :  { %4127 = vmatpush1.bf16.msra.mxu1 %v8436_v30  ;;  %v2442_v30 = vor.u32 %v2441_v43, %v2440_v26  ;;  %v8508_v26 = vld [vmem:[#allocation7 + $0x240] ss:$16 sps:$4 sm:$0xff]   ;;  %v8513_v43 = vld [vmem:[#allocation7 + $0x264] ss:$16 sps:$4 sm:$0xff]  }
 0x7bc   :  { %4128 = vmatprep.subr.bf16.mxu1 %v8441_v45 }
 0x7bd   :  { %v2447_v45 = vrot.slane %v2442_v30, %v9084_v23 }
 0x7bf   :  { %4129 = vmatpush1.bf16.msra.mxu1 %v8439_v63  ;;  %v2451_v63 = vrot.slane %v2442_v30, %v9087_v25 }
 0x7c0   :  { %4130 = vmatprep.subr.bf16.mxu1 %v8444_v34 }
 0x7c3   :  { %4131 = vmatpush1.bf16.msra.mxu1 %v8442_v61 }
 0x7c4   :  { %4132 = vmatprep.subr.bf16.mxu1 %v8447_v62  ;;  %v2455_v62 = vrot.slane %v2442_v30, %v9092_v35 }
 0x7c7   :  { %4133 = vmatpush1.bf16.msra.mxu1 %v8445_v1 }
 0x7c8   :  { %4134 = vmatprep.subr.bf16.mxu1 %v8450_v48 }
 0x7cb   :  { %4135 = vmatpush1.bf16.msra.mxu1 %v8448_v50  ;;  %v2459_v50 = vrot.slane %v2442_v30, %v9095_v36 }
 0x7cc   :  { %4136 = vmatprep.subr.bf16.mxu1 %v8453_v51 }
 0x7cf   :  { %4137 = vmatpush1.bf16.msra.mxu1 %v8451_v39 }
 0x7d0   :  { %4138 = vmatprep.subr.bf16.mxu1 %v8456_v41 }
 0x7d3   :  { %4139 = vmatpush1.bf16.msra.mxu1 %v8454_v52  ;;  %v2463_v52 = vrot.slane %v2442_v30, %v952_v59 }
 0x7d4   :  { %4140 = vmatprep.subr.bf16.mxu1 %v8459_v42  ;;  %v2467_v42 = vrot.slane %v2442_v30, %v956_v60  ;;  %v8511_v30 = vld [vmem:[#allocation7 + $0x260] ss:$16 sps:$4 sm:$0xff]  }
 0x7d7   :  { %4141 = vmatpush1.bf16.msra.mxu1 %v8457_v17 }
 0x7d8   :  { %4142 = vmatprep.subr.bf16.mxu1 %v8462_v53 }
 0x7db   :  { %4143 = vmatpush1.bf16.msra.mxu1 %v8460_v54 }
 0x7dc   :  { %4144 = vmatprep.subr.bf16.mxu1 %v8465_v55 }
 0x7df   :  { %4145 = vmatpush1.bf16.msra.mxu1 %v8463_v44 }
 0x7e0   :  { %4155 = vmatprep.subr.bf16.mxu1 %v8468_v56 }
 0x7e2   :  { %4147 = vmatmul.mubr.bf16.vlgmr.msra.gmra.mrb[16].mxu1 %v9216_v47  ;;  %v8481_v47 = vld [vmem:[#allocation5 + $0xc70] ss:$24 sps:$4 sm:$0xff]  }
 0x7e3   :  { %4156 = vmatpush1.bf16.msra.mxu1 %v8466_v57  ;;  %7209 = vmatprep.mubr.msk.bf16.mxu1 %vm2106_vm4, %v9218_v49  ;;  %v8484_v49 = vld [vmem:[#allocation5 + $0xca0] ss:$24 sps:$4 sm:$0xff]  }
 0x7e4   :  { %4157 = vmatprep.subr.bf16.mxu1 %v8471_v21 }
 0x7e7   :  { %4158 = vmatpush1.bf16.msra.mxu1 %v8469_v58 }
 0x7e8   :  { %4159 = vmatprep.subr.bf16.mxu1 %v8474_v2 }
 0x7eb   :  { %4160 = vmatpush1.bf16.msra.mxu1 %v8472_v3 }
 0x7ec   :  { %4161 = vmatprep.subr.bf16.mxu1 %v8477_v4 }
 0x7ef   :  { %4162 = vmatpush1.bf16.msra.mxu1 %v8475_v5 }
 0x7f0   :  { %4163 = vmatprep.subr.bf16.mxu1 %v8480_v6 }
 0x7f3   :  { %4164 = vmatpush1.bf16.msra.mxu1 %v8478_v7 }
 0x7f4   :  { %4165 = vmatprep.subr.bf16.mxu1 %v8483_v8 }
 0x7f7   :  { %4166 = vmatpush1.bf16.msra.mxu1 %v8481_v47 }
 0x7f8   :  { %4167 = vmatprep.subr.bf16.mxu1 %v8486_v9 }
 0x7fb   :  { %4168 = vmatpush1.bf16.msra.mxu1 %v8484_v49 }
 0x7fc   :  { %4169 = vmatprep.subr.bf16.mxu1 %v8489_v11 }
 0x7ff   :  { %4170 = vmatpush1.bf16.msra.mxu1 %v8487_v12 }
 0x800   :  { %4171 = vmatprep.subr.bf16.mxu1 %v8492_v13 }
 0x803   :  { %4172 = vmatpush1.bf16.msra.mxu1 %v8490_v14 }
 0x804   :  { %4173 = vmatprep.subr.bf16.mxu1 %v8495_v15 }
 0x807   :  { %4174 = vmatpush1.bf16.msra.mxu1 %v8493_v16 }
 0x808   :  { %4175 = vmatprep.subr.bf16.mxu1 %v8498_v18 }
 0x80b   :  { %4176 = vmatpush1.bf16.msra.mxu1 %v8496_v19 }
 0x80c   :  { %4177 = vmatprep.subr.bf16.mxu1 %v8501_v20 }
 0x80f   :  { %4178 = vmatpush1.bf16.msra.mxu1 %v8499_v24 }
 0x810   :  { %4179 = vmatprep.subr.bf16.mxu1 %v8504_v40 }
 0x813   :  { %4180 = vmatpush1.bf16.msra.mxu1 %v8502_v46 }
 0x816   :  { %4188 = vmatmul.mubr.bf16.vlgmr.msra.gmra.mrb[16].mxu1 %v9228_v32 }
 0x835   :  { %v3943_v27 = vpop.f32.mrb[12].mxu1 }
 0x836   :  { %v4066_v31 = vpop.f32.mrb[12].mxu0  ;;  %v3945_v33 = vpop.f32.mrb[13].mxu1  ;;  %v7641_v34 = vadd.f32 %v3943_v27, %v2447_v45  ;;  %v8514_v45 = vld [vmem:[#allocation7 + $0x280] ss:$16 sps:$4 sm:$0xff]  }
 0x837   :  { %v4068_v28 = vpop.f32.mrb[13].mxu0  ;;  %v3947_v10 = vpop.f32.mrb[14].mxu1  ;;  %v7642_v61 = vadd.f32 %v3945_v33, %v2451_v63  ;;  %v7643_v48 = vadd.f32 %v4066_v31, %v2455_v62  ;;  %v8516_v63 = vld [vmem:[#allocation7 + $0x284] ss:$16 sps:$4 sm:$0xff]   ;;  %v8532_v62 = vld [vmem:[#allocation7 + $0x328] ss:$16 sps:$4 sm:$0xff]  }
 0x838   :  { %v4070_v29 = vpop.f32.mrb[14].mxu0  ;;  %v3948_v37 = vpop.f32.mrb[15].mxu1  ;;  %v4196_v32 = vmax.f32 %v7641_v34, 0.0  ;;  %v7644_v41 = vadd.f32 %v4068_v28, %v2459_v50  ;;  %v8519_v34 = vld [vmem:[#allocation7 + $0x2a4] ss:$16 sps:$4 sm:$0xff]   ;;  %7431 = vmatprep.subr.bf16.mxu1 %v8532_v62 }
 0x839   :  { %v4071_v38 = vpop.f32.mrb[15].mxu0  ;;  %v4197_v1 = vmax.f32 %v7642_v61, 0.0  ;;  %v4198_v39 = vmax.f32 %v7643_v48, 0.0  ;;  %v8505_v29 = vld [vmem:[#allocation7 + $0x220] ss:$16 sps:$4 sm:$0xff]  }
 0x83a   :  { %v4199_v54 = vmax.f32 %v7644_v41, 0.0  ;;  %v8507_v37 = vld [vmem:[#allocation7 + $0x224] ss:$16 sps:$4 sm:$0xff]   ;;  %v8517_v61 = vld [vmem:[#allocation7 + $0x2a0] ss:$16 sps:$4 sm:$0xff]  }
 0x83b   :  { %v4202_v51 = vadd.f32 %v4197_v1, %v4196_v32  ;;  %v8510_v38 = vld [vmem:[#allocation7 + $0x244] ss:$16 sps:$4 sm:$0xff]   ;;  %5189 = vmatprep.subr.bf16.mxu0 %v8507_v37  ;;  %v8537_v48 = vld [vmem:[#allocation7 + $0x348] ss:$16 sps:$4 sm:$0xff]   ;;  %v8569_v62 = vld [vmem:[#allocation7 + $0x420] ss:$16 sps:$4 sm:$0xff]  }
 0x83c   :  { %5190 = vmatpush1.bf16.msra.mxu0 %v8505_v29  ;;  %v8538_v50 = vld [vmem:[#allocation7 + $0x248] ss:$16 sps:$4 sm:$0xff]   ;;  %v8525_v41 = vld [vmem:[#allocation7 + $0x2e4] ss:$16 sps:$4 sm:$0xff]  }
 0x83d   :  { %v4203_v17 = vadd.f32 %v4202_v51, %v4198_v39  ;;  %5191 = vmatprep.subr.bf16.mxu0 %v8510_v38  ;;  %v8520_v51 = vld [vmem:[#allocation7 + $0x2c0] ss:$16 sps:$4 sm:$0xff]  }
 0x83f   :  { %v4204_v21 = vadd.f32 %v4203_v17, %v4199_v54  ;;  %v8547_v17 = vld [vmem:[#allocation7 + $0x388] ss:$16 sps:$4 sm:$0xff]  }
 0x840   :  { %5192 = vmatpush1.bf16.msra.mxu0 %v8508_v26 }
 0x841   :  { %5193 = vmatprep.subr.bf16.mxu0 %v8513_v43 }
 0x844   :  { %5194 = vmatpush1.bf16.msra.mxu0 %v8511_v30 }
 0x845   :  { %5195 = vmatprep.subr.bf16.mxu0 %v8516_v63 }
 0x848   :  { %5196 = vmatpush1.bf16.msra.mxu0 %v8514_v45 }
 0x849   :  { %5197 = vmatprep.subr.bf16.mxu0 %v8519_v34 }
 0x84c   :  { %5198 = vmatpush1.bf16.msra.mxu0 %v8517_v61 }
 0x8e9   :  { %v4189_v53 = vpop.f32.mrb[16].mxu1 }
 0x8ea   :  { %v7645_v55 = vadd.f32 %v4189_v53, %v2463_v52  ;;  %v4191_v44 = vpop.f32.mrb[17].mxu1  ;;  %v8543_v52 = vld [vmem:[#allocation7 + $0x268] ss:$16 sps:$4 sm:$0xff]   ;;  %v8528_v53 = vld [vmem:[#allocation7 + $0x304] ss:$16 sps:$4 sm:$0xff]  }
 0x8eb   :  { %v7646_v56 = vadd.f32 %v4191_v44, %v2467_v42  ;;  %v4193_v57 = vpop.f32.mrb[18].mxu1  ;;  %v8523_v42 = vld [vmem:[#allocation7 + $0x2e0] ss:$16 sps:$4 sm:$0xff]   ;;  %v8552_v44 = vld [vmem:[#allocation7 + $0x3a8] ss:$16 sps:$4 sm:$0xff]  }
 0x8ec   :  { %v4200_v58 = vmax.f32 %v7645_v55, 0.0  ;;  %v4194_v2 = vpop.f32.mrb[19].mxu1  ;;  %v8526_v55 = vld [vmem:[#allocation7 + $0x300] ss:$16 sps:$4 sm:$0xff]   ;;  %v8553_v57 = vld [vmem:[#allocation7 + $0x2a8] ss:$16 sps:$4 sm:$0xff]  }
 0x8ed   :  { %v4201_v36 = vmax.f32 %v7646_v56, 0.0  ;;  %v8531_v56 = vld [vmem:[#allocation7 + $0x324] ss:$16 sps:$4 sm:$0xff]  }
 0x8ee   :  { %v4205_v3 = vadd.f32 %v4204_v21, %v4200_v58  ;;  %v8529_v21 = vld [vmem:[#allocation7 + $0x320] ss:$16 sps:$4 sm:$0xff]   ;;  %v8536_v2 = vld [vmem:[#allocation7 + $0x344] ss:$16 sps:$4 sm:$0xff]  }
 0x8ef   :  { %v4206_v4 = vsel %vm2106_vm4, %v4201_v36, 0.0 }
 0x8f0   :  { %v4207_v5 = vadd.f32 %v4206_v4, %v4205_v3  ;;  %v8534_v3 = vld [vmem:[#allocation7 + $0x340] ss:$16 sps:$4 sm:$0xff]   ;;  %v8562_v4 = vld [vmem:[#allocation7 + $0x3e8] ss:$16 sps:$4 sm:$0xff]  }
 0x8f2   :  { %4208 = vadd.xlane.f32.xlu0 %v4207_v5  ;;  %v8541_v5 = vld [vmem:[#allocation7 + $0x364] ss:$16 sps:$4 sm:$0xff]  }
 0x97f   :  { %v4209_v59 = vpop.xlane.xlu0 %4208 }
 0x980   :  { %v4210_v6 = vrot.slane %v4209_v59, 4 }
 0x982   :  { %v4211_v22 = vadd.f32 %v4210_v6, %v4209_v59  ;;  %v8563_v59 = vld [vmem:[#allocation7 + $0x2e8] ss:$16 sps:$4 sm:$0xff]   ;;  %v8539_v6 = vld [vmem:[#allocation7 + $0x360] ss:$16 sps:$4 sm:$0xff]  }
 0x984   :  { %v4212_v60 = vrot.slane %v4211_v22, 2 }
 0x986   :  { %v4213_v7 = vadd.f32 %v4212_v60, %v4211_v22  ;;  %v8546_v22 = vld [vmem:[#allocation7 + $0x384] ss:$16 sps:$4 sm:$0xff]   ;;  %v8544_v60 = vld [vmem:[#allocation7 + $0x380] ss:$16 sps:$4 sm:$0xff]  }
 0x988   :  { %v4214_v8 = vrot.slane %v4213_v7, 1 }
 0x98a   :  { %v4215_v47 = vadd.f32 %v4214_v8, %v4213_v7  ;;  %v8551_v7 = vld [vmem:[#allocation7 + $0x3a4] ss:$16 sps:$4 sm:$0xff]   ;;  %v8549_v8 = vld [vmem:[#allocation7 + $0x3a0] ss:$16 sps:$4 sm:$0xff]  }
 0x98c   :  { %7709 = vpush %v4215_v47  ;;  %v8556_v47 = vld [vmem:[#allocation7 + $0x3c4] ss:$16 sps:$4 sm:$0xff]  }
 0x9bd   :  { %s7710_s25 = spop %7709 }
 0x9be   :  { %s4219_s26 = smul.f32 0.00017361112, %s7710_s25 }
 0x9c0   :  { %v4220_v9 = vstv %s4219_s26 }
 0x9c1   :  { %v9248_v49 = vsub.f32 %v4196_v32, %v4220_v9  ;;  %v9250_v11 = vsub.f32 %v4197_v1, %v4220_v9  ;;  %v9252_v12 = vsub.f32 %v4198_v39, %v4220_v9  ;;  %v9254_v13 = vsub.f32 %v4199_v54, %v4220_v9  ;;  %v8533_v32 = vld [vmem:[#allocation7 + $0x228] ss:$16 sps:$4 sm:$0xff]   ;;  %v8522_v1 = vld [vmem:[#allocation7 + $0x2c4] ss:$16 sps:$4 sm:$0xff]  }
 0x9c2   :  { %v9260_v16 = vsub.f32 %v4201_v36, %v4220_v9  ;;  %v9262_v18 = vsub.f32 %v4200_v58, %v4220_v9  ;;  %7432 = vmatpush3.bf16.msra.mxu1 %v8533_v32  ;;  %v8542_v39 = vld [vmem:[#allocation7 + $0x368] ss:$16 sps:$4 sm:$0xff]   ;;  %5199 = vmatprep.subr.bf16.mxu0 %v8522_v1  ;;  %v8554_v9 = vld [vmem:[#allocation7 + $0x3c0] ss:$16 sps:$4 sm:$0xff]  }
 0x9c3   :  { %v4227_v14 = vmul.f32 %v9248_v49, %v9248_v49  ;;  %v4228_v15 = vmul.f32 %v9250_v11, %v9250_v11  ;;  %v4229_v19 = vmul.f32 %v9252_v12, %v9252_v12  ;;  %v4230_v24 = vmul.f32 %v9254_v13, %v9254_v13  ;;  %7433 = vmatprep.subr.bf16.mxu1 %v8537_v48  ;;  %v8548_v54 = vld [vmem:[#allocation7 + $0x288] ss:$16 sps:$4 sm:$0xff]   ;;  %v8576_v48 = vld [vmem:[#allocation7 + $0x444] ss:$16 sps:$4 sm:$0xff]  }
 0x9c4   :  { %v4232_v46 = vmul.f32 %v9260_v16, %v9260_v16  ;;  %v4231_v27 = vmul.f32 %v9262_v18, %v9262_v18  ;;  %5200 = vmatpush1.bf16.msra.mxu0 %v8520_v51  ;;  %v8557_v58 = vld [vmem:[#allocation7 + $0x3c8] ss:$16 sps:$4 sm:$0xff]  }
 0x9c5   :  { %v4233_v20 = vadd.f32 %v4228_v15, %v4227_v14  ;;  %5201 = vmatprep.subr.bf16.mxu0 %v8525_v41  ;;  %v8558_v36 = vld [vmem:[#allocation7 + $0x2c8] ss:$16 sps:$4 sm:$0xff]   ;;  %v8561_v14 = vld [vmem:[#allocation7 + $0x3e4] ss:$16 sps:$4 sm:$0xff]   ;;  %v8559_v15 = vld [vmem:[#allocation7 + $0x3e0] ss:$16 sps:$4 sm:$0xff]  }
 0x9c6   :  { %v4237_v28 = vsel %vm2106_vm4, %v4232_v46, 0.0  ;;  %7434 = vmatpush3.bf16.msra.mxu1 %v8538_v50  ;;  %v8567_v46 = vld [vmem:[#allocation7 + $0x408] ss:$16 sps:$4 sm:$0xff]  }
 0x9c7   :  { %v4234_v40 = vadd.f32 %v4233_v20, %v4229_v19  ;;  %7435 = vmatprep.subr.bf16.mxu1 %v8542_v39  ;;  %v8573_v1 = vld [vmem:[#allocation7 + $0x428] ss:$16 sps:$4 sm:$0xff]  }
 0x9c8   :  { %5202 = vmatpush1.bf16.msra.mxu0 %v8523_v42  ;;  %v8577_v50 = vld [vmem:[#allocation7 + $0x548] ss:$16 sps:$4 sm:$0xff]   ;;  %v8586_v42 = vld [vmem:[#allocation7 + $0x484] ss:$16 sps:$4 sm:$0xff]  }
 0x9c9   :  { %v4235_v31 = vadd.f32 %v4234_v40, %v4230_v24  ;;  %5203 = vmatprep.subr.bf16.mxu0 %v8528_v53  ;;  %v8564_v24 = vld [vmem:[#allocation7 + $0x400] ss:$16 sps:$4 sm:$0xff]   ;;  %v8566_v40 = vld [vmem:[#allocation7 + $0x404] ss:$16 sps:$4 sm:$0xff]   ;;  %v8578_v39 = vld [vmem:[#allocation7 + $0x448] ss:$16 sps:$4 sm:$0xff]  }
 0x9ca   :  { %7436 = vmatpush3.bf16.msra.mxu1 %v8543_v52  ;;  %v8582_v41 = vld [vmem:[#allocation7 + $0x568] ss:$16 sps:$4 sm:$0xff]   ;;  %v8584_v53 = vld [vmem:[#allocation7 + $0x480] ss:$16 sps:$4 sm:$0xff]  }
 0x9cb   :  { %v4236_v33 = vadd.f32 %v4235_v31, %v4231_v27  ;;  %7437 = vmatprep.subr.bf16.mxu1 %v8547_v17  ;;  %v8568_v27 = vld [vmem:[#allocation7 + $0x308] ss:$16 sps:$4 sm:$0xff]  }
 0x9cc   :  { %5204 = vmatpush1.bf16.msra.mxu0 %v8526_v55  ;;  %v8583_v52 = vld [vmem:[#allocation7 + $0x468] ss:$16 sps:$4 sm:$0xff]   ;;  %v8591_v55 = vld [vmem:[#allocation7 + $0x4a4] ss:$16 sps:$4 sm:$0xff]  }
 0x9cd   :  { %v4238_v10 = vadd.f32 %v4237_v28, %v4236_v33  ;;  %5205 = vmatprep.subr.bf16.mxu0 %v8531_v56  ;;  %v8571_v28 = vld [vmem:[#allocation7 + $0x424] ss:$16 sps:$4 sm:$0xff]   ;;  %v8587_v17 = vld [vmem:[#allocation7 + $0x588] ss:$16 sps:$4 sm:$0xff]   ;;  %v8589_v56 = vld [vmem:[#allocation7 + $0x4a0] ss:$16 sps:$4 sm:$0xff]  }
 0x9ce   :  { %7438 = vmatpush3.bf16.msra.mxu1 %v8548_v54  ;;  %v8588_v54 = vld [vmem:[#allocation7 + $0x488] ss:$16 sps:$4 sm:$0xff]  }
 0x9cf   :  { %4239 = vadd.xlane.f32.xlu1 %v4238_v10  ;;  %7439 = vmatprep.subr.bf16.mxu1 %v8552_v44  ;;  %v8572_v10 = vld [vmem:[#allocation7 + $0x528] ss:$16 sps:$4 sm:$0xff]  }
 0x9d0   :  { %5206 = vmatpush1.bf16.msra.mxu0 %v8529_v21  ;;  %v8592_v44 = vld [vmem:[#allocation7 + $0x5a8] ss:$16 sps:$4 sm:$0xff]   ;;  %v8596_v21 = vld [vmem:[#allocation7 + $0x4c4] ss:$16 sps:$4 sm:$0xff]  }
 0x9d1   :  { %5207 = vmatprep.subr.bf16.mxu0 %v8536_v2  ;;  %v8594_v2 = vld [vmem:[#allocation7 + $0x4c0] ss:$16 sps:$4 sm:$0xff]  }
 0x9d2   :  { %7440 = vmatpush3.bf16.msra.mxu1 %v8553_v57  ;;  %v8593_v57 = vld [vmem:[#allocation7 + $0x4a8] ss:$16 sps:$4 sm:$0xff]  }
 0x9d3   :  { %7441 = vmatprep.subr.bf16.mxu1 %v8557_v58  ;;  %v8597_v58 = vld [vmem:[#allocation7 + $0x5c8] ss:$16 sps:$4 sm:$0xff]  }
 0x9d4   :  { %5208 = vmatpush1.bf16.msra.mxu0 %v8534_v3  ;;  %v8601_v3 = vld [vmem:[#allocation7 + $0x4e4] ss:$16 sps:$4 sm:$0xff]  }
 0x9d5   :  { %5209 = vmatprep.subr.bf16.mxu0 %v8541_v5  ;;  %v8599_v5 = vld [vmem:[#allocation7 + $0x4e0] ss:$16 sps:$4 sm:$0xff]  }
 0x9d6   :  { %7442 = vmatpush3.bf16.msra.mxu1 %v8558_v36  ;;  %v8598_v36 = vld [vmem:[#allocation7 + $0x4c8] ss:$16 sps:$4 sm:$0xff]  }
 0x9d7   :  { %7443 = vmatprep.subr.bf16.mxu1 %v8562_v4  ;;  %v8602_v4 = vld [vmem:[#allocation7 + $0x5e8] ss:$16 sps:$4 sm:$0xff]  }
 0x9d8   :  { %5210 = vmatpush1.bf16.msra.mxu0 %v8539_v6  ;;  %v8606_v6 = vld [vmem:[#allocation7 + $0x504] ss:$16 sps:$4 sm:$0xff]  }
 0x9d9   :  { %5211 = vmatprep.subr.bf16.mxu0 %v8546_v22  ;;  %v8607_v22 = vld [vmem:[#allocation7 + $0x608] ss:$16 sps:$4 sm:$0xff]  }
 0x9da   :  { %7444 = vmatpush3.bf16.msra.mxu1 %v8563_v59  ;;  %v8603_v59 = vld [vmem:[#allocation7 + $0x4e8] ss:$16 sps:$4 sm:$0xff]  }
 0x9db   :  { %7445 = vmatprep.subr.bf16.mxu1 %v8567_v46  ;;  %v8616_v46 = vld [vmem:[#allocation7 + $0x648] ss:$16 sps:$4 sm:$0xff]  }
 0x9dc   :  { %5212 = vmatpush1.bf16.msra.mxu0 %v8544_v60  ;;  %v8604_v60 = vld [vmem:[#allocation7 + $0x500] ss:$16 sps:$4 sm:$0xff]  }
 0x9dd   :  { %5213 = vmatprep.subr.bf16.mxu0 %v8551_v7  ;;  %v8608_v7 = vld [vmem:[#allocation7 + $0x508] ss:$16 sps:$4 sm:$0xff]  }
 0x9de   :  { %7446 = vmatpush3.bf16.msra.mxu1 %v8568_v27  ;;  %v8620_v27 = vld [vmem:[#allocation7 + $0x668] ss:$16 sps:$4 sm:$0xff]  }
 0x9df   :  { %7453 = vmatprep.subr.bf16.mxu1 %v8572_v10  ;;  %v8627_v10 = vld [vmem:[#allocation7 + $0x5a4] ss:$16 sps:$4 sm:$0xff]  }
 0x9e0   :  { %5214 = vmatpush1.bf16.msra.mxu0 %v8549_v8  ;;  %v8611_v8 = vld [vmem:[#allocation7 + $0x524] ss:$16 sps:$4 sm:$0xff]  }
 0x9e1   :  { %5215 = vmatprep.subr.bf16.mxu0 %v8556_v47 }
 0x9e4   :  { %5216 = vmatpush1.bf16.msra.mxu0 %v8554_v9 }
 0x9e5   :  { %5217 = vmatprep.subr.bf16.mxu0 %v8561_v14  ;;  %v8609_v14 = vld [vmem:[#allocation7 + $0x520] ss:$16 sps:$4 sm:$0xff]  }
 0x9e8   :  { %5218 = vmatpush1.bf16.msra.mxu0 %v8559_v15  ;;  %v8612_v15 = vld [vmem:[#allocation7 + $0x628] ss:$16 sps:$4 sm:$0xff]  }
 0x9e9   :  { %5219 = vmatprep.subr.bf16.mxu0 %v8566_v40  ;;  %v8613_v40 = vld [vmem:[#allocation7 + $0x540] ss:$16 sps:$4 sm:$0xff]  }
 0x9ec   :  { %5220 = vmatpush1.bf16.msra.mxu0 %v8564_v24 }
 0x9ed   :  { %5230 = vmatprep.subr.bf16.mxu0 %v8571_v28  ;;  %v8624_v28 = vld [vmem:[#allocation7 + $0x688] ss:$16 sps:$4 sm:$0xff]  }
 0xa5c   :  { %v4240_v19 = vpop.xlane.xlu1 %4239 }
 0xa5d   :  { %v4241_v20 = vrot.slane %v4240_v19, 4 }
 0xa5f   :  { %v4242_v31 = vadd.f32 %v4241_v20, %v4240_v19  ;;  %v8615_v20 = vld [vmem:[#allocation7 + $0x544] ss:$16 sps:$4 sm:$0xff]  }
 0xa61   :  { %v4243_v33 = vrot.slane %v4242_v31, 2 }
 0xa63   :  { %v4244_v29 = vadd.f32 %v4243_v33, %v4242_v31  ;;  %v8623_v31 = vld [vmem:[#allocation7 + $0x584] ss:$16 sps:$4 sm:$0xff]   ;;  %v8621_v33 = vld [vmem:[#allocation7 + $0x580] ss:$16 sps:$4 sm:$0xff]  }
 0xa65   :  { %v4245_v37 = vrot.slane %v4244_v29, 1 }
 0xa67   :  { %v4246_v38 = vadd.f32 %v4245_v37, %v4244_v29  ;;  %v8625_v29 = vld [vmem:[#allocation7 + $0x5a0] ss:$16 sps:$4 sm:$0xff]   ;;  %v8628_v37 = vld [vmem:[#allocation7 + $0x6a8] ss:$16 sps:$4 sm:$0xff]  }
 0xa69   :  { %7711 = vpush %v4246_v38  ;;  %v8631_v38 = vld [vmem:[#allocation7 + $0x5c4] ss:$16 sps:$4 sm:$0xff]  }
 0xa9a   :  { %s7712_s28 = spop %7711 }
 0xa9b   :  { %s4250_s29 = smul.f32 0.00017361112, %s7712_s28 }
 0xa9d   :  { %s4251_s30 = sadd.f32 1e-05, %s4250_s29 }
 0xa9f   :  { %v4252_v26 = vstv %s4251_s30 }
 0xaa0   :  { %8768 = vrsqrt.f32 %v4252_v26  ;;  %v8629_v26 = vld [vmem:[#allocation7 + $0x5c0] ss:$16 sps:$4 sm:$0xff]  }
 0xaaa   :  { %v8769_v43 = vpop.eup %8768 }
 0xaab   :  { %7713 = vpush %v8769_v43  ;;  %v8632_v43 = vld [vmem:[#allocation7 + $0x6c8] ss:$16 sps:$4 sm:$0xff]  }
 0xadc   :  { %s7714_s7 = spop %7713 }
 0xadd   :  { %v9273_v30 = vstv %s7714_s7 }
 0xade   :  { %v4257_v45 = vmul.f32 %v9273_v30, %v9250_v11  ;;  %v4256_v63 = vmul.f32 %v9273_v30, %v9248_v49  ;;  %v4259_v34 = vmul.f32 %v9273_v30, %v9254_v13  ;;  %v8574_v11 = vld [vmem:[#allocation7 + $0x440] ss:$16 sps:$4 sm:$0xff]   ;;  %v8581_v49 = vld [vmem:[#allocation7 + $0x464] ss:$16 sps:$4 sm:$0xff]   ;;  %v4258_v47 = vmul.f32 %v9273_v30, %v9252_v12 }
 0xadf   :  { %v8579_v13 = vld [vmem:[#allocation7 + $0x460] ss:$16 sps:$4 sm:$0xff]   ;;  %v4261_v9 = vmul.f32 %v9273_v30, %v9260_v16  ;;  %v8619_v12 = vld [vmem:[#allocation7 + $0x564] ss:$16 sps:$4 sm:$0xff]  }
 0xae0   :  { %v4263_v61 = vpack.c.bf16 %v4257_v45, %v4257_v45  ;;  %v4262_v32 = vpack.c.bf16 %v4256_v63, %v4256_v63  ;;  %v4265_v51 = vpack.c.bf16 %v4259_v34, %v4259_v34  ;;  %v4264_v19 = vpack.c.bf16 %v4258_v47, %v4258_v47  ;;  %v8617_v16 = vld [vmem:[#allocation7 + $0x560] ss:$16 sps:$4 sm:$0xff]   ;;  %v8635_v45 = vld [vmem:[#allocation7 + $0x5e4] ss:$16 sps:$4 sm:$0xff]   ;;  %v8636_v34 = vld [vmem:[#allocation7 + $0x6e8] ss:$16 sps:$4 sm:$0xff]  }
 0xae1   :  { %v4267_v24 = vpack.c.bf16 %v4261_v9, %v4261_v9  ;;  %v8633_v63 = vld [vmem:[#allocation7 + $0x5e0] ss:$16 sps:$4 sm:$0xff]  }
 0xae2   :  { %5221 = vmatprep.mubr.bf16.mxu0 %v4263_v61  ;;  %5344 = vmatprep.mubr.bf16.mxu1 %v4263_v61  ;;  %v8639_v61 = vld [vmem:[#allocation7 + $0x604] ss:$16 sps:$4 sm:$0xff]  }
 0xae3   :  { %5222 = vmatmul.mubr.bf16.vlgmr.msra.gmra.mrb[16].mxu0 %v4262_v32  ;;  %5345 = vmatmul.mubr.bf16.vlgmr.msra.gmra.mrb[20].mxu1 %v4262_v32  ;;  %v8640_v32 = vld [vmem:[#allocation7 + $0x708] ss:$16 sps:$4 sm:$0xff]  }
 0xae4   :  { %5231 = vmatpush1.bf16.msra.mxu0 %v8569_v62  ;;  %7454 = vmatpush3.bf16.msra.mxu1 %v8573_v1  ;;  %v8637_v62 = vld [vmem:[#allocation7 + $0x600] ss:$16 sps:$4 sm:$0xff]   ;;  %v8643_v1 = vld [vmem:[#allocation7 + $0x624] ss:$16 sps:$4 sm:$0xff]  }
 0xae5   :  { %5262 = vmatprep.mubr.bf16.mxu0 %v4265_v51  ;;  %5384 = vmatprep.mubr.bf16.mxu1 %v4265_v51  ;;  %v8647_v51 = vld [vmem:[#allocation7 + $0x644] ss:$16 sps:$4 sm:$0xff]  }
 0xae6   :  { %5232 = vmatprep.subr.bf16.mxu0 %v8576_v48  ;;  %7455 = vmatprep.subr.bf16.mxu1 %v8577_v50  ;;  %v8641_v48 = vld [vmem:[#allocation7 + $0x620] ss:$16 sps:$4 sm:$0xff]   ;;  %v8644_v50 = vld [vmem:[#allocation7 + $0x728] ss:$16 sps:$4 sm:$0xff]  }
 0xae8   :  { %5233 = vmatpush1.bf16.msra.mxu0 %v8574_v11  ;;  %7456 = vmatpush3.bf16.msra.mxu1 %v8578_v39  ;;  %v8645_v11 = vld [vmem:[#allocation7 + $0x640] ss:$16 sps:$4 sm:$0xff]   ;;  %v8648_v39 = vld [vmem:[#allocation7 + $0x748] ss:$16 sps:$4 sm:$0xff]  }
 0xae9   :  { %5234 = vmatprep.subr.bf16.mxu0 %v8581_v49  ;;  %7457 = vmatprep.subr.bf16.mxu1 %v8582_v41  ;;  %v8651_v49 = vld [vmem:[#allocation7 + $0x664] ss:$16 sps:$4 sm:$0xff]   ;;  %v8649_v41 = vld [vmem:[#allocation7 + $0x660] ss:$16 sps:$4 sm:$0xff]  }
 0xaec   :  { %5235 = vmatpush1.bf16.msra.mxu0 %v8579_v13  ;;  %7458 = vmatpush3.bf16.msra.mxu1 %v8583_v52  ;;  %v8652_v13 = vld [vmem:[#allocation7 + $0x768] ss:$16 sps:$4 sm:$0xff]   ;;  %v8655_v52 = vld [vmem:[#allocation7 + $0x684] ss:$16 sps:$4 sm:$0xff]  }
 0xaed   :  { %5236 = vmatprep.subr.bf16.mxu0 %v8586_v42  ;;  %7459 = vmatprep.subr.bf16.mxu1 %v8587_v17  ;;  %v8653_v42 = vld [vmem:[#allocation7 + $0x680] ss:$16 sps:$4 sm:$0xff]   ;;  %v8656_v17 = vld [vmem:[#allocation7 + $0x788] ss:$16 sps:$4 sm:$0xff]  }
 0xaf0   :  { %5237 = vmatpush1.bf16.msra.mxu0 %v8584_v53  ;;  %7460 = vmatpush3.bf16.msra.mxu1 %v8588_v54  ;;  %v8659_v53 = vld [vmem:[#allocation7 + $0x6a4] ss:$16 sps:$4 sm:$0xff]   ;;  %v8657_v54 = vld [vmem:[#allocation7 + $0x6a0] ss:$16 sps:$4 sm:$0xff]  }
 0xaf1   :  { %5238 = vmatprep.subr.bf16.mxu0 %v8591_v55  ;;  %7461 = vmatprep.subr.bf16.mxu1 %v8592_v44  ;;  %v8660_v55 = vld [vmem:[#allocation7 + $0x7a8] ss:$16 sps:$4 sm:$0xff]   ;;  %v8663_v44 = vld [vmem:[#allocation7 + $0x6c4] ss:$16 sps:$4 sm:$0xff]  }
 0xaf4   :  { %5239 = vmatpush1.bf16.msra.mxu0 %v8589_v56  ;;  %7462 = vmatpush3.bf16.msra.mxu1 %v8593_v57  ;;  %v4260_v56 = vmul.f32 %v9273_v30, %v9262_v18  ;;  %v8661_v57 = vld [vmem:[#allocation7 + $0x6c0] ss:$16 sps:$4 sm:$0xff]   ;;  %v8678_v30 = vld [vmem:[#allocation7 + $0x764] ss:$16 sps:$4 sm:$0xff]  }
 0xaf5   :  { %5240 = vmatprep.subr.bf16.mxu0 %v8596_v21  ;;  %7463 = vmatprep.subr.bf16.mxu1 %v8597_v58  ;;  %v8666_v21 = vld [vmem:[#allocation7 + $0x6e4] ss:$16 sps:$4 sm:$0xff]   ;;  %v8673_v18 = vld [vmem:[#allocation7 + $0x740] ss:$16 sps:$4 sm:$0xff]  }
 0xaf6   :  { %v4266_v58 = vpack.c.bf16 %v4260_v56, %v4260_v56 }
 0xaf8   :  { %5241 = vmatpush1.bf16.msra.mxu0 %v8594_v2  ;;  %7464 = vmatpush3.bf16.msra.mxu1 %v8598_v36  ;;  %v8664_v2 = vld [vmem:[#allocation7 + $0x6e0] ss:$16 sps:$4 sm:$0xff]   ;;  %v8669_v36 = vld [vmem:[#allocation7 + $0x704] ss:$16 sps:$4 sm:$0xff]  }
 0xaf9   :  { %5242 = vmatprep.subr.bf16.mxu0 %v8601_v3  ;;  %7465 = vmatprep.subr.bf16.mxu1 %v8602_v4  ;;  %v8667_v3 = vld [vmem:[#allocation7 + $0x700] ss:$16 sps:$4 sm:$0xff]   ;;  %v8672_v4 = vld [vmem:[#allocation7 + $0x724] ss:$16 sps:$4 sm:$0xff]  }
 0xafc   :  { %5243 = vmatpush1.bf16.msra.mxu0 %v8599_v5  ;;  %7466 = vmatpush3.bf16.msra.mxu1 %v8603_v59  ;;  %v8670_v5 = vld [vmem:[#allocation7 + $0x720] ss:$16 sps:$4 sm:$0xff]   ;;  %v8675_v59 = vld [vmem:[#allocation7 + $0x744] ss:$16 sps:$4 sm:$0xff]  }
 0xafd   :  { %5244 = vmatprep.subr.bf16.mxu0 %v8606_v6  ;;  %7467 = vmatprep.subr.bf16.mxu1 %v8607_v22  ;;  %v8676_v6 = vld [vmem:[#allocation7 + $0x760] ss:$16 sps:$4 sm:$0xff]   ;;  %v8681_v22 = vld [vmem:[#allocation7 + $0x784] ss:$16 sps:$4 sm:$0xff]  }
 0xb00   :  { %5245 = vmatpush1.bf16.msra.mxu0 %v8604_v60  ;;  %7468 = vmatpush3.bf16.msra.mxu1 %v8608_v7  ;;  %v8679_v60 = vld [vmem:[#allocation7 + $0x780] ss:$16 sps:$4 sm:$0xff]   ;;  %v8684_v7 = vld [vmem:[#allocation7 + $0x7a4] ss:$16 sps:$4 sm:$0xff]  }
 0xb01   :  { %5246 = vmatprep.subr.bf16.mxu0 %v8611_v8  ;;  %5392 = vmatprep.subr.bf16.mxu1 %v8953_v0  ;;  %v8682_v8 = vld [vmem:[#allocation7 + $0x7a0] ss:$16 sps:$4 sm:$0xff]  }
 0xb03   :  { %5385 = vmatmul.mubr.bf16.vlgmr.msra.gmra.mrb[24].mxu1 %v4264_v19 }
 0xb04   :  { %5247 = vmatpush1.bf16.msra.mxu0 %v8609_v14  ;;  %5393 = vmatpush1.bf16.msra.mxu1 %v8612_v15 }
 0xb05   :  { %7346 = vmatprep.mubr.msk.bf16.mxu1 %vm2106_vm4, %v4267_v24  ;;  %5248 = vmatprep.subr.bf16.mxu0 %v8615_v20  ;;  %v4449_v20 = vld [vmem:[#allocation10 + $0x3] ss:$8 sm:$0x7] }
 0xb06   :  { %5394 = vmatprep.subr.bf16.mxu1 %v8953_v0 }
 0xb08   :  { %5249 = vmatpush1.bf16.msra.mxu0 %v8613_v40  ;;  %5395 = vmatpush1.bf16.msra.mxu1 %v8616_v46 }
 0xb09   :  { %5250 = vmatprep.subr.bf16.mxu0 %v8619_v12  ;;  %5396 = vmatprep.subr.bf16.mxu1 %v8953_v0 }
 0xb0c   :  { %5251 = vmatpush1.bf16.msra.mxu0 %v8617_v16  ;;  %5397 = vmatpush1.bf16.msra.mxu1 %v8620_v27 }
 0xb0d   :  { %5252 = vmatprep.subr.bf16.mxu0 %v8623_v31  ;;  %5398 = vmatprep.subr.bf16.mxu1 %v8953_v0 }
 0xb10   :  { %5253 = vmatpush1.bf16.msra.mxu0 %v8621_v33  ;;  %5399 = vmatpush1.bf16.msra.mxu1 %v8624_v28 }
 0xb11   :  { %5254 = vmatprep.subr.bf16.mxu0 %v8627_v10  ;;  %5400 = vmatprep.subr.bf16.mxu1 %v8953_v0 }
 0xb14   :  { %5255 = vmatpush1.bf16.msra.mxu0 %v8625_v29  ;;  %5401 = vmatpush1.bf16.msra.mxu1 %v8628_v37 }
 0xb15   :  { %5256 = vmatprep.subr.bf16.mxu0 %v8631_v38  ;;  %5402 = vmatprep.subr.bf16.mxu1 %v8953_v0 }
 0xb18   :  { %5257 = vmatpush1.bf16.msra.mxu0 %v8629_v26  ;;  %5403 = vmatpush1.bf16.msra.mxu1 %v8632_v43  ;;  %v4454_v26 = vrot.slane %v4449_v20, %v9084_v23  ;;  %v4458_v43 = vrot.slane %v4449_v20, %v9087_v25 }
 0xb19   :  { %5258 = vmatprep.subr.bf16.mxu0 %v8635_v45  ;;  %5404 = vmatprep.subr.bf16.mxu1 %v8953_v0 }
 0xb1c   :  { %5259 = vmatpush1.bf16.msra.mxu0 %v8633_v63  ;;  %5405 = vmatpush1.bf16.msra.mxu1 %v8636_v34 }
 0xb1d   :  { %5260 = vmatprep.subr.bf16.mxu0 %v8639_v61  ;;  %5406 = vmatprep.subr.bf16.mxu1 %v8953_v0 }
 0xb20   :  { %5261 = vmatpush1.bf16.msra.mxu0 %v8637_v62  ;;  %5407 = vmatpush1.bf16.msra.mxu1 %v8640_v32 }
 0xb21   :  { %5271 = vmatprep.subr.bf16.mxu0 %v8643_v1  ;;  %5408 = vmatprep.subr.bf16.mxu1 %v8953_v0 }
 0xb23   :  { %5263 = vmatmul.mubr.bf16.vlgmr.msra.gmra.mrb[16].mxu0 %v4264_v19 }
 0xb24   :  { %5272 = vmatpush1.bf16.msra.mxu0 %v8641_v48  ;;  %7345 = vmatprep.mubr.msk.bf16.mxu0 %vm2106_vm4, %v4267_v24  ;;  %v4462_v24 = vrot.slane %v4449_v20, %v9092_v35  ;;  %v8693_v20 = vld [vmem:[#allocation8 + $0xb0] ss:$8 sps:$4 sm:$0xff]  }
 0xb25   :  { %5409 = vmatpush1.bf16.msra.mxu1 %v8644_v50  ;;  %5273 = vmatprep.subr.bf16.mxu0 %v8647_v51 }
 0xb26   :  { %5410 = vmatprep.subr.bf16.mxu1 %v8953_v0 }
 0xb28   :  { %5274 = vmatpush1.bf16.msra.mxu0 %v8645_v11 }
 0xb29   :  { %5411 = vmatpush1.bf16.msra.mxu1 %v8648_v39  ;;  %5275 = vmatprep.subr.bf16.mxu0 %v8651_v49 }
 0xb2a   :  { %5412 = vmatprep.subr.bf16.mxu1 %v8953_v0 }
 0xb2c   :  { %5276 = vmatpush1.bf16.msra.mxu0 %v8649_v41 }
 0xb2d   :  { %5413 = vmatpush1.bf16.msra.mxu1 %v8652_v13  ;;  %5277 = vmatprep.subr.bf16.mxu0 %v8655_v52 }
 0xb2e   :  { %5414 = vmatprep.subr.bf16.mxu1 %v8953_v0 }
 0xb30   :  { %5278 = vmatpush1.bf16.msra.mxu0 %v8653_v42 }
 0xb31   :  { %5415 = vmatpush1.bf16.msra.mxu1 %v8656_v17  ;;  %5279 = vmatprep.subr.bf16.mxu0 %v8659_v53 }
 0xb32   :  { %5416 = vmatprep.subr.bf16.mxu1 %v8953_v0 }
 0xb34   :  { %5280 = vmatpush1.bf16.msra.mxu0 %v8657_v54 }
 0xb35   :  { %5417 = vmatpush1.bf16.msra.mxu1 %v8660_v55  ;;  %5281 = vmatprep.subr.bf16.mxu0 %v8663_v44 }
 0xb38   :  { %5425 = vmatmul.mubr.bf16.vlgmr.msra.gmra.mrb[28].mxu1 %v4266_v58  ;;  %5282 = vmatpush1.bf16.msra.mxu0 %v8661_v57 }
 0xb39   :  { %5283 = vmatprep.subr.bf16.mxu0 %v8666_v21 }
 0xb3c   :  { %5284 = vmatpush1.bf16.msra.mxu0 %v8664_v2 }
 0xb3d   :  { %5285 = vmatprep.subr.bf16.mxu0 %v8669_v36 }
 0xb40   :  { %5286 = vmatpush1.bf16.msra.mxu0 %v8667_v3  ;;  %v5531_v3 = vld [vmem:[#allocation8 + $0x170] sm:$0x7] }
 0xb41   :  { %5287 = vmatprep.subr.bf16.mxu0 %v8672_v4  ;;  %v8954_v4 = vmov 0.0  }
 0xb44   :  { %5288 = vmatpush1.bf16.msra.mxu0 %v8670_v5  ;;  %v8955_v5 = vmov 65535  }
 0xb45   :  { %5289 = vmatprep.subr.bf16.mxu0 %v8675_v59  ;;  %v5537_v59 = vsel %vm519_vm0, 4294967295, %v8955_v5 }
 0xb48   :  { %5290 = vmatpush1.bf16.msra.mxu0 %v8673_v18  ;;  %v8685_v18 = vld [vmem:[#allocation8 + $0x80] ss:$8 sps:$4 sm:$0xff]  }
 0xb49   :  { %5291 = vmatprep.subr.bf16.mxu0 %v8678_v30  ;;  %v8686_v30 = vld [vmem:[#allocation8] ss:$8 sps:$4 sm:$0xff]   ;;  %7477 = vmatprep.subr.bf16.mxu1 %v8685_v18  ;;  %v5804_v18 = vld [vmem:[#allocation10 + $0x4] ss:$0 sm:$0xff] }
 0xb4a   :  { %7478 = vmatpush3.bf16.msra.mxu1 %v8686_v30 }
 0xb4c   :  { %5292 = vmatpush1.bf16.msra.mxu0 %v8676_v6  ;;  %v5529_v6 = vld [vmem:[#allocation2] sm:$0xff] }
 0xb4d   :  { %5293 = vmatprep.subr.bf16.mxu0 %v8681_v22  ;;  %v9323_v22 = vsel %vm5536_vm6, %v5537_v59, 0 }
 0xb50   :  { %5294 = vmatpush1.bf16.msra.mxu0 %v8679_v60  ;;  %v8687_v60 = vld [vmem:[#allocation8 + $0x90] ss:$8 sps:$4 sm:$0xff]  }
 0xb51   :  { %5295 = vmatprep.subr.bf16.mxu0 %v8684_v7  ;;  %v5540_v7 = vand.u32 %v9323_v22, %v5531_v3  ;;  %7479 = vmatprep.subr.bf16.mxu1 %v8687_v60 }
 0xb54   :  { %5296 = vmatpush1.bf16.msra.mxu0 %v8682_v8  ;;  %v5530_v8 = vpack.c.bf16 %v5529_v6, %v5529_v6 }
 0xb55   :  { %7551 = vmatprep.subr.bf16.mxu0 %v8954_v4 }
 0xb57   :  { %5304 = vmatmul.mubr.bf16.vlgmr.msra.gmra.mrb[16].mxu0 %v4266_v58 }
 0xb58   :  { %7553 = vmatprep.mubr.msk.bf16.mxu0 %vm8956_vm7, %v8954_v4  ;;  %7552 = vmatpush3.bf16.msra.mxu0 %v5540_v7 }
 0xb59   :  { %7557 = vmatprep.subr.bf16.mxu0 %v8954_v4 }
 0xb5f   :  { %7554 = vmatmul.mubr.msk.bf16.vlgmr.msra.gmra.mrb[20].mxu0 %vm5532_vm8, %v5530_v8  ;;  %v8709_v8 = vld [vmem:[#allocation8 + $0x1a0] ss:$8 sps:$4 sm:$0xff]  }
 0xb60   :  { %7571 = vmatprep.mubr.msk.bf16.mxu0 %vm8956_vm7, %v8954_v4 }
 0xbb6   :  { %v7447_v47 = vpop.f32.mrb[20].mxu1 }
 0xbb7   :  { %v7448_v9 = vpop.f32.mrb[21].mxu1 }
 0xbb8   :  { %v7449_v14 = vadd.f32 %v7448_v9, %v7447_v47  ;;  %v7450_v15 = vpop.f32.mrb[22].mxu1  ;;  %v8689_v47 = vld [vmem:[#allocation8 + $0x10] ss:$8 sps:$4 sm:$0xff]   ;;  %v8688_v9 = vld [vmem:[#allocation8 + $0x100] ss:$8 sps:$4 sm:$0xff]  }
 0xbb9   :  { %v7451_v19 = vpop.f32.mrb[23].mxu1  ;;  %7480 = vmatpush3.bf16.msra.mxu1 %v8689_v47  ;;  %v8692_v15 = vld [vmem:[#allocation8 + $0x20] ss:$8 sps:$4 sm:$0xff]   ;;  %7558 = vmatpush3.bf16.msra.mxu0 %v8688_v9  ;;  %v5809_v47 = vld [vmem:[#allocation10 + $0x5] ss:$0 sm:$0xff] }
 0xbba   :  { %v5347_v12 = vadd.f32 %v7449_v14, %v4462_v24  ;;  %v8690_v14 = vld [vmem:[#allocation8 + $0xa0] ss:$8 sps:$4 sm:$0xff]   ;;  %v8691_v19 = vld [vmem:[#allocation8 + $0x110] ss:$8 sps:$4 sm:$0xff]   ;;  %7559 = vmatprep.subr.bf16.mxu0 %v8954_v4 }
 0xbbb   :  { %7481 = vmatprep.subr.bf16.mxu1 %v8690_v14  ;;  %v8695_v24 = vld [vmem:[#allocation8 + $0x30] ss:$8 sps:$4 sm:$0xff]  }
 0xbbd   :  { %7482 = vmatpush3.bf16.msra.mxu1 %v8692_v15  ;;  %7560 = vmatpush3.bf16.msra.mxu0 %v8691_v19 }
 0xbbe   :  { %7483 = vmatprep.subr.bf16.mxu1 %v8693_v20  ;;  %7561 = vmatprep.subr.bf16.mxu0 %v8954_v4 }
 0xbc1   :  { %7484 = vmatpush3.bf16.msra.mxu1 %v8695_v24 }
 0xbd6   :  { %v7469_v40 = vpop.f32.mrb[24].mxu1 }
 0xbd7   :  { %v7470_v46 = vpop.f32.mrb[25].mxu1 }
 0xbd8   :  { %v7471_v16 = vadd.f32 %v7470_v46, %v7469_v40  ;;  %v7472_v27 = vpop.f32.mrb[26].mxu1  ;;  %v8694_v40 = vld [vmem:[#allocation8 + $0x120] ss:$8 sps:$4 sm:$0xff]  }
 0xbd9   :  { %v7473_v31 = vpop.f32.mrb[27].mxu1  ;;  %v8696_v46 = vld [vmem:[#allocation8 + $0xc0] ss:$8 sps:$4 sm:$0xff]   ;;  %7562 = vmatpush3.bf16.msra.mxu0 %v8694_v40  ;;  %v8699_v27 = vld [vmem:[#allocation8 + $0xd0] ss:$8 sps:$4 sm:$0xff]  }
 0xbda   :  { %v5387_v33 = vadd.f32 %v7471_v16, %v5347_v12  ;;  %v8698_v12 = vld [vmem:[#allocation8 + $0x40] ss:$8 sps:$4 sm:$0xff]   ;;  %7485 = vmatprep.subr.bf16.mxu1 %v8696_v46  ;;  %v8697_v16 = vld [vmem:[#allocation8 + $0x130] ss:$8 sps:$4 sm:$0xff]   ;;  %7563 = vmatprep.subr.bf16.mxu0 %v8954_v4 }
 0xbdb   :  { %7486 = vmatpush3.bf16.msra.mxu1 %v8698_v12  ;;  %v8701_v31 = vld [vmem:[#allocation8 + $0x50] ss:$8 sps:$4 sm:$0xff]  }
 0xbdc   :  { %7487 = vmatprep.subr.bf16.mxu1 %v8699_v27 }
 0xbdd   :  { %7564 = vmatpush3.bf16.msra.mxu0 %v8697_v16 }
 0xbde   :  { %7565 = vmatprep.subr.bf16.mxu0 %v8954_v4 }
 0xbdf   :  { %7488 = vmatpush3.bf16.msra.mxu1 %v8701_v31 }
 0xc0b   :  { %v5426_v28 = vpop.f32.mrb[28].mxu1 }
 0xc0c   :  { %v5427_v10 = vadd.f32 %v5426_v28, %v5387_v33  ;;  %v5428_v29 = vpop.f32.mrb[29].mxu1  ;;  %v8700_v33 = vld [vmem:[#allocation8 + $0x140] ss:$8 sps:$4 sm:$0xff]  }
 0xc0d   :  { %v5429_v37 = vpop.f32.mrb[30].mxu1  ;;  %v8702_v28 = vld [vmem:[#allocation8 + $0xe0] ss:$8 sps:$4 sm:$0xff]   ;;  %7566 = vmatpush3.bf16.msra.mxu0 %v8700_v33 }
 0xc0e   :  { %v5430_v38 = vpop.f32.mrb[31].mxu1  ;;  %v5434_v62 = vmax.f32 %v5427_v10, 0.0  ;;  %7489 = vmatprep.subr.bf16.mxu1 %v8702_v28  ;;  %v8703_v10 = vld [vmem:[#allocation8 + $0x150] ss:$8 sps:$4 sm:$0xff]   ;;  %7567 = vmatprep.subr.bf16.mxu0 %v8954_v4  ;;  %v8704_v29 = vld [vmem:[#allocation8 + $0x60] ss:$8 sps:$4 sm:$0xff]  }
 0xc0f   :  { %7490 = vmatpush3.bf16.msra.mxu1 %v8704_v29 }
 0xc10   :  { %v5437_v51 = vsel %vm5436_vm5, %v5434_v62, 0.0 }
 0xc11   :  { %7568 = vmatpush3.bf16.msra.mxu0 %v8703_v10 }
 0xc12   :  { %7569 = vmatprep.subr.bf16.mxu0 %v8954_v4 }
 0xc2a   :  { %v5305_v45 = vpop.f32.mrb[16].mxu0 }
 0xc2b   :  { %v7647_v63 = vadd.f32 %v5305_v45, %v4454_v26  ;;  %v5307_v34 = vpop.f32.mrb[17].mxu0  ;;  %v8706_v26 = vld [vmem:[#allocation8 + $0x160] ss:$0 sps:$4 sm:$0xff]  }
 0xc2c   :  { %v7648_v35 = vadd.f32 %v5307_v34, %v4458_v43  ;;  %v5309_v61 = vpop.f32.mrb[18].mxu0  ;;  %v8705_v43 = vld [vmem:[#allocation8 + $0xf0] ss:$8 sps:$4 sm:$0xff]  }
 0xc2d   :  { %v5432_v32 = vmax.f32 %v7647_v63, 0.0  ;;  %v5310_v1 = vpop.f32.mrb[19].mxu0  ;;  %v5722_v63 = vsel %vm5720_vm9, %v8706_v26, 0  ;;  %v8707_v34 = vld [vmem:[#allocation8 + $0x70] ss:$8 sps:$4 sm:$0xff]   ;;  %7491 = vmatprep.subr.bf16.mxu1 %v8705_v43 }
 0xc2e   :  { %v5433_v48 = vmax.f32 %v7648_v35, 0.0  ;;  %7570 = vmatpush3.bf16.msra.mxu0 %v5722_v63  ;;  %7492 = vmatpush3.bf16.msra.mxu1 %v8707_v34 }
 0xc2f   :  { %7581 = vmatprep.subr.bf16.mxu0 %v8954_v4  ;;  %7575 = vmatprep.subr.bf16.mxu1 %v8954_v4 }
 0xc30   :  { %v5435_v50 = vadd.f32 %v5433_v48, %v5432_v32 }
 0xc32   :  { %v5438_v11 = vadd.f32 %v5437_v51, %v5435_v50 }
 0xc34   :  { %5439 = vadd.xlane.f32.xlu0 %v5438_v11 }
 0xcc1   :  { %v5440_v39 = vpop.xlane.xlu0 %5439 }
 0xcc2   :  { %v5441_v49 = vrot.slane %v5440_v39, 4 }
 0xcc4   :  { %v5442_v41 = vadd.f32 %v5441_v49, %v5440_v39 }
 0xcc6   :  { %v5443_v13 = vrot.slane %v5442_v41, 2 }
 0xcc8   :  { %v5444_v52 = vadd.f32 %v5443_v13, %v5442_v41 }
 0xcca   :  { %v5445_v42 = vrot.slane %v5444_v52, 1 }
 0xccc   :  { %v5446_v17 = vadd.f32 %v5445_v42, %v5444_v52  ;;  %v5576_v52 = vpop.f32.mrb[20].mxu0 }
 0xccd   :  { %v7555_v42 = vpop.f32.mrb[21].mxu0 }
 0xcce   :  { %7715 = vpush %v5446_v17  ;;  %v5579_v17 = vpop.f32.mrb[22].mxu0 }
 0xcff   :  { %s7716_s8 = spop %7715 }
 0xd00   :  { %s5450_s9 = smul.f32 0.00034722223, %s7716_s8 }
 0xd02   :  { %v5451_v53 = vstv %s5450_s9 }
 0xd03   :  { %v9306_v54 = vsub.f32 %v5432_v32, %v5451_v53  ;;  %v9308_v55 = vsub.f32 %v5433_v48, %v5451_v53  ;;  %v9310_v44 = vsub.f32 %v5434_v62, %v5451_v53  ;;  %v7556_v53 = vpop.f32.mrb[23].mxu0 }
 0xd05   :  { %v5455_v56 = vmul.f32 %v9306_v54, %v9306_v54  ;;  %v5456_v57 = vmul.f32 %v9308_v55, %v9308_v55  ;;  %v5457_v21 = vmul.f32 %v9310_v44, %v9310_v44 }
 0xd07   :  { %v5458_v58 = vadd.f32 %v5456_v57, %v5455_v56  ;;  %v5459_v2 = vsel %vm5436_vm5, %v5457_v21, 0.0 }
 0xd09   :  { %v5460_v36 = vadd.f32 %v5459_v2, %v5458_v58 }
 0xd0b   :  { %5461 = vadd.xlane.f32.xlu1 %v5460_v36 }
 0xd98   :  { %v5462_v37 = vpop.xlane.xlu1 %5461 }
 0xd99   :  { %v5463_v38 = vrot.slane %v5462_v37, 4 }
 0xd9b   :  { %v5464_v45 = vadd.f32 %v5463_v38, %v5462_v37 }
 0xd9d   :  { %v5465_v35 = vrot.slane %v5464_v45, 2 }
 0xd9f   :  { %v5466_v61 = vadd.f32 %v5465_v35, %v5464_v45 }
 0xda1   :  { %v5467_v62 = vrot.slane %v5466_v61, 1 }
 0xda3   :  { %v5468_v32 = vadd.f32 %v5467_v62, %v5466_v61 }
 0xda5   :  { %7717 = vpush %v5468_v32 }
 0xdd6   :  { %s7718_s3 = spop %7717 }
 0xdd7   :  { %s5472_s27 = smul.f32 0.00034722223, %s7718_s3 }
 0xdd9   :  { %s5473_s10 = sadd.f32 1e-05, %s5472_s27 }
 0xddb   :  { %v5474_v1 = vstv %s5473_s10 }
 0xddc   :  { %8770 = vrsqrt.f32 %v5474_v1 }
 0xde6   :  { %v8771_v48 = vpop.eup %8770 }
 0xde7   :  { %7719 = vpush %v8771_v48 }
 0xe18   :  { %s7720_s4 = spop %7719 }
 0xe19   :  { %v5477_v50 = vstv %s7720_s4 }
 0xe1a   :  { %v5478_v51 = vmul.f32 %v5477_v50, %v9306_v54  ;;  %v5479_v11 = vmul.f32 %v5477_v50, %v9308_v55  ;;  %v5480_v39 = vmul.f32 %v5477_v50, %v9310_v44  ;;  %v5808_v54 = vld [vmem:[#allocation8 + $0x180] sm:$0x7] }
 0xe1b   :  { %v5814_v55 = vand.u32 %v5808_v54, %v9323_v22  ;;  %v8708_v22 = vld [vmem:[#allocation8 + $0x190] ss:$8 sps:$4 sm:$0xff]  }
 0xe1c   :  { %v5481_v49 = vpack.c.bf16 %v5478_v51, %v5478_v51  ;;  %v5482_v41 = vpack.c.bf16 %v5479_v11, %v5479_v11  ;;  %v5483_v13 = vpack.c.bf16 %v5480_v39, %v5480_v39  ;;  %v8710_v39 = vld [vmem:[#allocation8 + $0x1b0] ss:$8 sps:$4 sm:$0xff]  }
 0xe1e   :  { %5756 = vmatprep.mubr.bf16.mxu1 %v5482_v41  ;;  %7572 = vmatmul.mubr.msk.bf16.vlgmr.msra.gmra.mrb[24].mxu0 %vm5436_vm5, %v5483_v13  ;;  %v8712_v41 = vld [vmem:[#allocation8 + $0x1d0] ss:$8 sps:$4 sm:$0xff]   ;;  %v8713_v13 = vld [vmem:[#allocation8 + $0x1e0] ss:$8 sps:$4 sm:$0xff]  }
 0xe1f   :  { %5757 = vmatmul.mubr.bf16.vlgmr.msra.gmra.mrb[32].mxu1 %v5481_v49  ;;  %7585 = vmatprep.mubr.msk.bf16.mxu0 %vm8956_vm7, %v8954_v4  ;;  %v8711_v49 = vld [vmem:[#allocation8 + $0x1c0] ss:$8 sps:$4 sm:$0xff]  }
 0xe20   :  { %7577 = vmatprep.mubr.msk.bf16.mxu1 %vm8956_vm7, %v8954_v4  ;;  %7576 = vmatpush3.bf16.msra.mxu1 %v5814_v55 }
 0xe21   :  { %7589 = vmatprep.subr.bf16.mxu1 %v8954_v4  ;;  %7582 = vmatpush3.bf16.msra.mxu0 %v8708_v22 }
 0xe22   :  { %7583 = vmatprep.subr.bf16.mxu0 %v8954_v4 }
 0xe25   :  { %7584 = vmatpush3.bf16.msra.mxu0 %v8709_v8 }
 0xef1   :  { %v5798_v44 = vpop.f32.mrb[24].mxu0 }
 0xef2   :  { %v7493_v56 = vpop.f32.mrb[32].mxu1  ;;  %v7573_v57 = vpop.f32.mrb[25].mxu0 }
 0xef3   :  { %v7494_v21 = vpop.f32.mrb[33].mxu1  ;;  %v5801_v58 = vpop.f32.mrb[26].mxu0 }
 0xef4   :  { %v7495_v2 = vadd.f32 %v7494_v21, %v7493_v56  ;;  %v7496_v36 = vpop.f32.mrb[34].mxu1  ;;  %v7574_v3 = vpop.f32.mrb[27].mxu0 }
 0xef5   :  { %v7497_v5 = vpop.f32.mrb[35].mxu1 }
 0xef6   :  { %v5759_v59 = vadd.f32 %v7495_v2, %v5576_v52  ;;  %v5890_v52 = vld [vmem:[#allocation10 + $0x6] ss:$0 sm:$0xff] }
 0xef8   :  { %v5799_v30 = vadd.f32 %v5798_v44, %v5759_v59 }
 0xefa   :  { %v5805_v6 = vadd.f32 %v5804_v18, %v5799_v30 }
 0xefc   :  { %v5806_v60 = vmax.f32 %v5805_v6, 0.0 }
 0xefe   :  { %v5807_v7 = vpack.c.bf16 %v5806_v60, %v5806_v60 }
 0xf00   :  { %7578 = vmatmul.mubr.msk.bf16.vlgmr.msra.gmra.mrb[36].mxu1 %vm5532_vm8, %v5807_v7 }
 0xf01   :  { %7597 = vmatprep.mubr.msk.bf16.mxu1 %vm8956_vm7, %v8954_v4  ;;  %7590 = vmatpush3.bf16.msra.mxu1 %v8710_v39 }
 0xf02   :  { %7591 = vmatprep.subr.bf16.mxu1 %v8954_v4 }
 0xf05   :  { %7592 = vmatpush3.bf16.msra.mxu1 %v8711_v49 }
 0xf06   :  { %7593 = vmatprep.subr.bf16.mxu1 %v8954_v4 }
 0xf09   :  { %7594 = vmatpush3.bf16.msra.mxu1 %v8712_v41 }
 0xf0a   :  { %7595 = vmatprep.subr.bf16.mxu1 %v8954_v4 }
 0xf0d   :  { %7596 = vmatpush3.bf16.msra.mxu1 %v8713_v13 }
 0xfd3   :  { %v5850_v9 = vpop.f32.mrb[36].mxu1 }
 0xfd4   :  { %v5851_v14 = vadd.f32 %v5850_v9, %v5809_v47  ;;  %v7579_v15 = vpop.f32.mrb[37].mxu1 }
 0xfd5   :  { %v5853_v19 = vpop.f32.mrb[38].mxu1 }
 0xfd6   :  { %v5857_v20 = vmin.f32 %v5851_v14, 0.0  ;;  %v7580_v24 = vpop.f32.mrb[39].mxu1  ;;  %vm5856_vm11 = vcmp.gt.f32.partialorder %v5851_v14, 0.0 }
 0xfd8   :  { %v5858_v40 = vmul.f32 1.442695, %v5857_v20 }
 0xfda   :  { %8772 = vpow2.f32 %v5858_v40 }
 0xfe4   :  { %v8773_v46 = vpop.eup %8772 }
 0xfe5   :  { %v7373_v12 = vadd.f32 -1.0, %v8773_v46 }
 0xfe7   :  { %v5861_v16 = vsel %vm5856_vm11, %v5851_v14, %v7373_v12  ;;  %v8716_v12 = vld [vmem:[#allocation8 + $0x1f4] ss:$8 sps:$4 sm:$0xff]  }
 0xfe8   :  { %v5863_v27 = vsel %vm5862_vm10, %v5861_v16, 0.0  ;;  %6186 = vmatprep.subr.bf16.mxu0 %v8716_v12  ;;  %v8752_v12 = vld [vmem:[#allocation8 + $0x360] ss:$8 sps:$4 sm:$0xff]  }
 0xfe9   :  { %v5864_v31 = vrot.slane %v5863_v27, 4 }
 0xfeb   :  { %v5865_v33 = vadd.f32 %v5864_v31, %v5863_v27  ;;  %v8719_v27 = vld [vmem:[#allocation8 + $0x204] ss:$8 sps:$4 sm:$0xff]   ;;  %v8717_v31 = vld [vmem:[#allocation8 + $0x200] ss:$8 sps:$4 sm:$0xff]  }
 0xfed   :  { %v5866_v28 = vrot.slane %v5865_v33, 2 }
 0xfef   :  { %v5867_v10 = vadd.f32 %v5866_v28, %v5865_v33  ;;  %v8722_v33 = vld [vmem:[#allocation8 + $0x214] ss:$8 sps:$4 sm:$0xff]   ;;  %v8720_v28 = vld [vmem:[#allocation8 + $0x210] ss:$8 sps:$4 sm:$0xff]  }
 0xff1   :  { %v5868_v29 = vrot.slane %v5867_v10, 1 }
 0xff3   :  { %v5869_v37 = vadd.f32 %v5868_v29, %v5867_v10  ;;  %v8725_v10 = vld [vmem:[#allocation8 + $0x224] ss:$8 sps:$4 sm:$0xff]   ;;  %v8723_v29 = vld [vmem:[#allocation8 + $0x220] ss:$8 sps:$4 sm:$0xff]  }
 0xff5   :  { %v5871_v38 = vmul.f32 0.125, %v5869_v37  ;;  %v8728_v37 = vld [vmem:[#allocation8 + $0x234] ss:$8 sps:$4 sm:$0xff]  }
 0xff7   :  { %v5872_v26 = vsub.f32 %v5861_v16, %v5871_v38  ;;  %v8714_v16 = vld [vmem:[#allocation8 + $0x1f0] ss:$8 sps:$4 sm:$0xff]  }
 0xff8   :  { %v8726_v38 = vld [vmem:[#allocation8 + $0x230] ss:$8 sps:$4 sm:$0xff]  }
 0xff9   :  { %v5873_v43 = vmul.f32 %v5872_v26, %v5872_v26 }
 0xffb   :  { %v5874_v45 = vsel %vm5862_vm10, %v5873_v43, 0.0  ;;  %v8729_v43 = vld [vmem:[#allocation8 + $0x240] ss:$8 sps:$4 sm:$0xff]  }
 0xffc   :  { %v5875_v63 = vrot.slane %v5874_v45, 4 }
 0xffe   :  { %v5876_v34 = vadd.f32 %v5875_v63, %v5874_v45  ;;  %v8734_v45 = vld [vmem:[#allocation8 + $0x254] ss:$8 sps:$4 sm:$0xff]   ;;  %v8732_v63 = vld [vmem:[#allocation8 + $0x250] ss:$8 sps:$4 sm:$0xff]  }
0x1000   :  { %v5877_v35 = vrot.slane %v5876_v34, 2 }
0x1002   :  { %v5878_v61 = vadd.f32 %v5877_v35, %v5876_v34  ;;  %v8737_v34 = vld [vmem:[#allocation8 + $0x264] ss:$8 sps:$4 sm:$0xff]   ;;  %v8735_v35 = vld [vmem:[#allocation8 + $0x260] ss:$8 sps:$4 sm:$0xff]  }
0x1004   :  { %v5879_v62 = vrot.slane %v5878_v61, 1 }
0x1006   :  { %v5880_v32 = vadd.f32 %v5879_v62, %v5878_v61  ;;  %v5983_v61 = vld [vmem:[#allocation10 + $0x7] ss:$0 sm:$0xff] }
0x1008   :  { %v5881_v1 = vmul.f32 0.125, %v5880_v32 }
0x100a   :  { %v5882_v48 = vadd.f32 1e-05, %v5881_v1 }
0x100c   :  { %8774 = vrsqrt.f32 %v5882_v48 }
0x1016   :  { %v8775_v50 = vpop.eup %8774 }
0x1017   :  { %v5884_v51 = vmul.f32 %v8775_v50, %v5872_v26  ;;  %v8731_v26 = vld [vmem:[#allocation8 + $0x244] ss:$8 sps:$4 sm:$0xff]  }
0x1019   :  { %v5885_v11 = vpack.c.bf16 %v5884_v51, %v5884_v51 }
0x101b   :  { %7586 = vmatmul.mubr.msk.bf16.vlgmr.msra.gmra.mrb[28].mxu0 %vm5862_vm10, %v5885_v11 }
0x101c   :  { %6218 = vmatprep.mubr.bf16.mxu0 %v8953_v0  ;;  %6187 = vmatpush1.bf16.msra.mxu0 %v8714_v16  ;;  %v8753_v16 = vld [vmem:[#allocation8 + $0x2e0] ss:$8 sps:$4 sm:$0xff]  }
0x101d   :  { %6188 = vmatprep.subr.bf16.mxu0 %v8719_v27  ;;  %v6094_v27 = vld [vmem:[#allocation10 + $0x30] ss:$8 sm:$0x3] }
0x1020   :  { %6189 = vmatpush1.bf16.msra.mxu0 %v8717_v31  ;;  %v6099_v31 = vrot.slane %v6094_v27, %v9084_v23 }
0x1021   :  { %6190 = vmatprep.subr.bf16.mxu0 %v8722_v33  ;;  %v6103_v33 = vrot.slane %v6094_v27, %v9087_v25  ;;  %v8758_v27 = vld [vmem:[#allocation8 + $0x3b0] ss:$8 sps:$4 sm:$0xff]  }
0x1024   :  { %6191 = vmatpush1.bf16.msra.mxu0 %v8720_v28 }
0x1025   :  { %6192 = vmatprep.subr.bf16.mxu0 %v8725_v10 }
0x1028   :  { %6193 = vmatpush1.bf16.msra.mxu0 %v8723_v29 }
0x1029   :  { %6194 = vmatprep.subr.bf16.mxu0 %v8728_v37 }
0x102c   :  { %6195 = vmatpush1.bf16.msra.mxu0 %v8726_v38 }
0x102d   :  { %6196 = vmatprep.subr.bf16.mxu0 %v8731_v26 }
0x1030   :  { %6197 = vmatpush1.bf16.msra.mxu0 %v8729_v43 }
0x1031   :  { %6198 = vmatprep.subr.bf16.mxu0 %v8734_v45 }
0x1034   :  { %6199 = vmatpush1.bf16.msra.mxu0 %v8732_v63 }
0x1035   :  { %6200 = vmatprep.subr.bf16.mxu0 %v8737_v34 }
0x1038   :  { %6201 = vmatpush1.bf16.msra.mxu0 %v8735_v35 }
0x1039   :  { %7601 = vmatprep.subr.bf16.mxu0 %v8954_v4 }
0x10ee   :  { %v5940_v42 = vpop.f32.mrb[28].mxu0 }
0x10ef   :  { %v5941_v17 = vadd.f32 %v5940_v42, %v5890_v52  ;;  %v7587_v53 = vpop.f32.mrb[29].mxu0 }
0x10f0   :  { %v5943_v54 = vpop.f32.mrb[30].mxu0 }
0x10f1   :  { %v5947_v0 = vmin.f32 %v5941_v17, 0.0  ;;  %v7588_v55 = vpop.f32.mrb[31].mxu0  ;;  %vm5946_vm13 = vcmp.gt.f32.partialorder %v5941_v17, 0.0 }
0x10f3   :  { %v5948_v44 = vmul.f32 1.442695, %v5947_v0 }
0x10f5   :  { %8776 = vpow2.f32 %v5948_v44 }
0x10ff   :  { %v8777_v56 = vpop.eup %8776 }
0x1100   :  { %v7377_v57 = vadd.f32 -1.0, %v8777_v56 }
0x1102   :  { %v5951_v21 = vsel %vm5946_vm13, %v5941_v17, %v7377_v57 }
0x1103   :  { %v5953_v58 = vsel %vm5952_vm12, %v5951_v21, 0.0 }
0x1104   :  { %v5954_v2 = vrot.slane %v5953_v58, 4 }
0x1106   :  { %v5955_v36 = vadd.f32 %v5954_v2, %v5953_v58 }
0x1108   :  { %v5956_v3 = vrot.slane %v5955_v36, 2 }
0x110a   :  { %v5957_v5 = vadd.f32 %v5956_v3, %v5955_v36 }
0x110c   :  { %v5958_v59 = vrot.slane %v5957_v5, 1 }
0x110e   :  { %v5959_v18 = vadd.f32 %v5958_v59, %v5957_v5 }
0x1110   :  { %v5960_v30 = vmul.f32 0.125, %v5959_v18 }
0x1112   :  { %v5961_v6 = vsub.f32 %v5951_v21, %v5960_v30 }
0x1114   :  { %v5962_v60 = vmul.f32 %v5961_v6, %v5961_v6 }
0x1116   :  { %v5963_v7 = vsel %vm5952_vm12, %v5962_v60, 0.0  ;;  %v8739_v60 = vld [vmem:[#allocation8 + $0x270] ss:$8 sps:$4 sm:$0xff]  }
0x1117   :  { %v5964_v22 = vrot.slane %v5963_v7, 4 }
0x1119   :  { %v5965_v8 = vadd.f32 %v5964_v22, %v5963_v7  ;;  %v8740_v7 = vld [vmem:[#allocation8 + $0x300] ss:$8 sps:$4 sm:$0xff]  }
0x111a   :  { %v8741_v22 = vld [vmem:[#allocation8 + $0x280] ss:$8 sps:$4 sm:$0xff]  }
0x111b   :  { %v5966_v47 = vrot.slane %v5965_v8, 2 }
0x111d   :  { %v5967_v9 = vadd.f32 %v5966_v47, %v5965_v8  ;;  %v8742_v8 = vld [vmem:[#allocation8 + $0x310] ss:$8 sps:$4 sm:$0xff]  }
0x111e   :  { %v8743_v47 = vld [vmem:[#allocation8 + $0x290] ss:$8 sps:$4 sm:$0xff]  }
0x111f   :  { %v5968_v14 = vrot.slane %v5967_v9, 1 }
0x1121   :  { %v5969_v15 = vadd.f32 %v5968_v14, %v5967_v9  ;;  %v8744_v9 = vld [vmem:[#allocation8 + $0x320] ss:$8 sps:$4 sm:$0xff]  }
0x1122   :  { %v8745_v14 = vld [vmem:[#allocation8 + $0x2a0] ss:$8 sps:$4 sm:$0xff]  }
0x1123   :  { %v5970_v19 = vmul.f32 0.125, %v5969_v15  ;;  %v8746_v15 = vld [vmem:[#allocation8 + $0x330] ss:$8 sps:$4 sm:$0xff]  }
0x1125   :  { %v5971_v20 = vadd.f32 1e-05, %v5970_v19  ;;  %v8747_v19 = vld [vmem:[#allocation8 + $0x2b0] ss:$8 sps:$4 sm:$0xff]  }
0x1127   :  { %8778 = vrsqrt.f32 %v5971_v20  ;;  %v8748_v20 = vld [vmem:[#allocation8 + $0x340] ss:$8 sps:$4 sm:$0xff]  }
0x1131   :  { %v8779_v24 = vpop.eup %8778 }
0x1132   :  { %v5973_v40 = vmul.f32 %v8779_v24, %v5961_v6  ;;  %v8738_v6 = vld [vmem:[#allocation8 + $0x2f0] ss:$8 sps:$4 sm:$0xff]   ;;  %v8749_v24 = vld [vmem:[#allocation8 + $0x2c0] ss:$8 sps:$4 sm:$0xff]  }
0x1133   :  { %7517 = vmatprep.subr.bf16.mxu1 %v8738_v6 }
0x1134   :  { %v5974_v46 = vpack.c.bf16 %v5973_v40, %v5973_v40  ;;  %v8750_v40 = vld [vmem:[#allocation8 + $0x350] ss:$8 sps:$4 sm:$0xff]  }
0x1136   :  { %7598 = vmatmul.mubr.msk.bf16.vlgmr.msra.gmra.mrb[40].mxu1 %vm5952_vm12, %v5974_v46  ;;  %v8751_v46 = vld [vmem:[#allocation8 + $0x2d0] ss:$8 sps:$4 sm:$0xff]  }
0x1137   :  { %7518 = vmatpush3.bf16.msra.mxu1 %v8739_v60 }
0x1138   :  { %7519 = vmatprep.subr.bf16.mxu1 %v8740_v7 }
0x113b   :  { %7520 = vmatpush3.bf16.msra.mxu1 %v8741_v22 }
0x113c   :  { %7521 = vmatprep.subr.bf16.mxu1 %v8742_v8 }
0x113f   :  { %7522 = vmatpush3.bf16.msra.mxu1 %v8743_v47 }
0x1140   :  { %7523 = vmatprep.subr.bf16.mxu1 %v8744_v9 }
0x1143   :  { %7524 = vmatpush3.bf16.msra.mxu1 %v8745_v14 }
0x1144   :  { %7525 = vmatprep.subr.bf16.mxu1 %v8746_v15 }
0x1147   :  { %7526 = vmatpush3.bf16.msra.mxu1 %v8747_v19 }
0x1148   :  { %7527 = vmatprep.subr.bf16.mxu1 %v8748_v20 }
0x114b   :  { %7528 = vmatpush3.bf16.msra.mxu1 %v8749_v24 }
0x114c   :  { %7529 = vmatprep.subr.bf16.mxu1 %v8750_v40  ;;  %v8754_v40 = vld [vmem:[#allocation8 + $0x370] ss:$8 sps:$4 sm:$0xff]  }
0x114f   :  { %7530 = vmatpush3.bf16.msra.mxu1 %v8751_v46  ;;  %v8755_v46 = vld [vmem:[#allocation8 + $0x380] ss:$8 sps:$4 sm:$0xff]  }
0x1150   :  { %7531 = vmatprep.subr.bf16.mxu1 %v8752_v12  ;;  %v8756_v12 = vld [vmem:[#allocation8 + $0x390] ss:$8 sps:$4 sm:$0xff]  }
0x1153   :  { %7532 = vmatpush3.bf16.msra.mxu1 %v8753_v16  ;;  %v8757_v16 = vld [vmem:[#allocation8 + $0x3a0] ss:$8 sps:$4 sm:$0xff]  }
0x1154   :  { %7621 = vmatprep.subr.bf16.mxu1 %v8954_v4 }
0x1209   :  { %v6045_v62 = vpop.f32.mrb[40].mxu1 }
0x120a   :  { %v6046_v32 = vadd.f32 %v6045_v62, %v5983_v61  ;;  %v7599_v1 = vpop.f32.mrb[41].mxu1 }
0x120b   :  { %v6048_v48 = vpop.f32.mrb[42].mxu1 }
0x120c   :  { %v6052_v50 = vmin.f32 %v6046_v32, 0.0  ;;  %v7600_v51 = vpop.f32.mrb[43].mxu1  ;;  %vm6051_vm14 = vcmp.gt.f32.partialorder %v6046_v32, 0.0 }
0x120e   :  { %v6053_v11 = vmul.f32 1.442695, %v6052_v50 }
0x1210   :  { %8780 = vpow2.f32 %v6053_v11 }
0x121a   :  { %v8781_v39 = vpop.eup %8780 }
0x121b   :  { %v7383_v49 = vadd.f32 -1.0, %v8781_v39 }
0x121d   :  { %v6056_v41 = vsel %vm6051_vm14, %v6046_v32, %v7383_v49 }
0x121e   :  { %v6057_v13 = vrot.slane %v6056_v41, 4 }
0x1220   :  { %v6058_v52 = vadd.f32 %v6057_v13, %v6056_v41 }
0x1222   :  { %v6059_v42 = vrot.slane %v6058_v52, 2 }
0x1224   :  { %v6060_v17 = vadd.f32 %v6059_v42, %v6058_v52 }
0x1226   :  { %v6061_v53 = vrot.slane %v6060_v17, 1 }
0x1228   :  { %v6062_v54 = vadd.f32 %v6061_v53, %v6060_v17 }
0x122a   :  { %v6063_v0 = vmul.f32 0.125, %v6062_v54 }
0x122c   :  { %v6064_v55 = vsub.f32 %v6056_v41, %v6063_v0 }
0x122e   :  { %v6065_v44 = vmul.f32 %v6064_v55, %v6064_v55 }
0x1230   :  { %v6066_v56 = vrot.slane %v6065_v44, 4 }
0x1232   :  { %v6067_v57 = vadd.f32 %v6066_v56, %v6065_v44 }
0x1234   :  { %v6068_v21 = vrot.slane %v6067_v57, 2 }
0x1236   :  { %v6069_v58 = vadd.f32 %v6068_v21, %v6067_v57 }
0x1238   :  { %v6070_v2 = vrot.slane %v6069_v58, 1 }
0x123a   :  { %v6071_v36 = vadd.f32 %v6070_v2, %v6069_v58 }
0x123c   :  { %v6072_v3 = vmul.f32 0.125, %v6071_v36 }
0x123e   :  { %v6073_v5 = vadd.f32 1e-05, %v6072_v3 }
0x1240   :  { %8782 = vrsqrt.f32 %v6073_v5 }
0x124a   :  { %v8783_v59 = vpop.eup %8782 }
0x124b   :  { %v6075_v18 = vmul.f32 %v8783_v59, %v6064_v55 }
0x124d   :  { %v6076_v30 = vpack.c.bf16 %v6075_v18, %v6075_v18 }
0x124f   :  { %6219 = vmatmul.mubr.bf16.vlgmr.msra.gmra.mrb[32].mxu0 %v6076_v30 }
0x1250   :  { %7617 = vmatprep.mubr.msk.bf16.mxu0 %vm8956_vm7, %v8954_v4  ;;  %7602 = vmatpush3.bf16.msra.mxu0 %v8754_v40 }
0x1251   :  { %7603 = vmatprep.subr.bf16.mxu0 %v8954_v4 }
0x1254   :  { %7604 = vmatpush3.bf16.msra.mxu0 %v8755_v46 }
0x1255   :  { %7605 = vmatprep.subr.bf16.mxu0 %v8954_v4 }
0x1258   :  { %7606 = vmatpush3.bf16.msra.mxu0 %v8756_v12 }
0x1259   :  { %7607 = vmatprep.subr.bf16.mxu0 %v8954_v4 }
0x125c   :  { %7608 = vmatpush3.bf16.msra.mxu0 %v8757_v16 }
0x125d   :  { %7609 = vmatprep.subr.bf16.mxu0 %v8954_v4 }
0x1260   :  { %7610 = vmatpush3.bf16.msra.mxu0 %v8758_v27 }
0x1261   :  { %7611 = vmatprep.subr.bf16.mxu0 %v8954_v4 }
0x1322   :  { %v6220_v28 = vpop.f32.mrb[32].mxu0 }
0x1323   :  { %v6221_v10 = vadd.f32 %v6220_v28, %v6099_v31  ;;  %v6222_v29 = vpop.f32.mrb[33].mxu0  ;;  %v8759_v31 = vld [vmem:[#allocation8 + $0x3c0] ss:$8 sps:$4 sm:$0xff]  }
0x1324   :  { %v6223_v37 = vadd.f32 %v6222_v29, %v6103_v33  ;;  %v6224_v38 = vpop.f32.mrb[34].mxu0  ;;  %7612 = vmatpush3.bf16.msra.mxu0 %v8759_v31  ;;  %v8760_v33 = vld [vmem:[#allocation8 + $0x3d0] ss:$8 sps:$4 sm:$0xff]   ;;  %v8761_v28 = vld [vmem:[#allocation8 + $0x3e0] ss:$8 sps:$4 sm:$0xff]  }
0x1325   :  { %v6229_v26 = vmin.f32 %v6221_v10, 0.0  ;;  %v6225_v43 = vpop.f32.mrb[35].mxu0  ;;  %vm6227_vm15 = vcmp.gt.f32.partialorder %v6221_v10, 0.0  ;;  %7613 = vmatprep.subr.bf16.mxu0 %v8954_v4  ;;  %v6311_v29 = vld [vmem:[#allocation10 + $0x31] ss:$0 sm:$0xff] }
0x1326   :  { %v6230_v45 = vmin.f32 %v6223_v37, 0.0  ;;  %vm6228_vm0 = vcmp.gt.f32.partialorder %v6223_v37, 0.0 }
0x1327   :  { %v6231_v63 = vmul.f32 1.442695, %v6229_v26 }
0x1328   :  { %v6233_v34 = vmul.f32 1.442695, %v6230_v45  ;;  %7614 = vmatpush3.bf16.msra.mxu0 %v8760_v33 }
0x1329   :  { %8784 = vpow2.f32 %v6231_v63  ;;  %7615 = vmatprep.subr.bf16.mxu0 %v8954_v4 }
0x132a   :  { %8786 = vpow2.f32 %v6233_v34 }
0x132c   :  { %7616 = vmatpush3.bf16.msra.mxu0 %v8761_v28 }
0x1333   :  { %v8785_v35 = vpop.eup %8784 }
0x1334   :  { %v8787_v61 = vpop.eup %8786  ;;  %v7400_v62 = vadd.f32 -1.0, %v8785_v35 }
0x1335   :  { %v7401_v32 = vadd.f32 -1.0, %v8787_v61 }
0x1336   :  { %v6237_v23 = vsel %vm6227_vm15, %v6221_v10, %v7400_v62 }
0x1337   :  { %v6239_v25 = vrot.slane %v6237_v23, 4  ;;  %v6238_v1 = vsel %vm6228_vm0, %v6223_v37, %v7401_v32 }
0x1338   :  { %v6245_v48 = vrot.slane %v6238_v1, 4 }
0x1339   :  { %v6240_v50 = vadd.f32 %v6239_v25, %v6237_v23 }
0x133a   :  { %v6246_v51 = vadd.f32 %v6245_v48, %v6238_v1 }
0x133b   :  { %v6241_v11 = vrot.slane %v6240_v50, 2 }
0x133c   :  { %v6247_v39 = vrot.slane %v6246_v51, 2 }
0x133d   :  { %v6242_v49 = vadd.f32 %v6241_v11, %v6240_v50 }
0x133e   :  { %v6248_v41 = vadd.f32 %v6247_v39, %v6246_v51 }
0x133f   :  { %v6243_v13 = vrot.slane %v6242_v49, 1 }
0x1340   :  { %v6249_v52 = vrot.slane %v6248_v41, 1 }
0x1341   :  { %v6244_v42 = vadd.f32 %v6243_v13, %v6242_v49 }
0x1342   :  { %v6250_v17 = vadd.f32 %v6249_v52, %v6248_v41 }
0x1343   :  { %v6251_v53 = vmul.f32 0.125, %v6244_v42 }
0x1344   :  { %v6252_v54 = vmul.f32 0.125, %v6250_v17 }
0x1345   :  { %v6253_v0 = vsub.f32 %v6237_v23, %v6251_v53 }
0x1346   :  { %v6254_v55 = vsub.f32 %v6238_v1, %v6252_v54 }
0x1347   :  { %v6255_v44 = vmul.f32 %v6253_v0, %v6253_v0 }
0x1348   :  { %v6256_v56 = vmul.f32 %v6254_v55, %v6254_v55 }
0x1349   :  { %v6257_v57 = vrot.slane %v6255_v44, 4 }
0x134a   :  { %v6263_v21 = vrot.slane %v6256_v56, 4 }
0x134b   :  { %v6258_v58 = vadd.f32 %v6257_v57, %v6255_v44  ;;  %v8763_v57 = vld [vmem:[#allocation8 + $0x400] ss:$8 sps:$4 sm:$0xff]  }
0x134c   :  { %v6264_v2 = vadd.f32 %v6263_v21, %v6256_v56  ;;  %v8762_v56 = vld [vmem:[#allocation8 + $0x3f0] ss:$8 sps:$4 sm:$0xff]   ;;  %v6490_v21 = vld [vmem:[#allocation10 + $0x32] ss:$0 sm:$0xff] }
0x134d   :  { %v6259_v36 = vrot.slane %v6258_v58, 2 }
0x134e   :  { %v6265_v3 = vrot.slane %v6264_v2, 2 }
0x134f   :  { %v6260_v5 = vadd.f32 %v6259_v36, %v6258_v58 }
0x1350   :  { %v6266_v59 = vadd.f32 %v6265_v3, %v6264_v2 }
0x1351   :  { %v6261_v18 = vrot.slane %v6260_v5, 1 }
0x1352   :  { %v6267_v30 = vrot.slane %v6266_v59, 1 }
0x1353   :  { %v6262_v6 = vadd.f32 %v6261_v18, %v6260_v5 }
0x1354   :  { %v6268_v60 = vadd.f32 %v6267_v30, %v6266_v59 }
0x1355   :  { %v6269_v7 = vmul.f32 0.125, %v6262_v6 }
0x1356   :  { %v6270_v22 = vmul.f32 0.125, %v6268_v60 }
0x1357   :  { %v6271_v8 = vadd.f32 1e-05, %v6269_v7 }
0x1358   :  { %v6272_v47 = vadd.f32 1e-05, %v6270_v22 }
0x1359   :  { %8788 = vrsqrt.f32 %v6271_v8 }
0x135a   :  { %8790 = vrsqrt.f32 %v6272_v47 }
0x1363   :  { %v8789_v9 = vpop.eup %8788 }
0x1364   :  { %v8791_v14 = vpop.eup %8790  ;;  %v6275_v15 = vmul.f32 %v8789_v9, %v6253_v0 }
0x1365   :  { %v6276_v19 = vmul.f32 %v8791_v14, %v6254_v55 }
0x1366   :  { %v6277_v24 = vpack.c.bf16 %v6275_v15, %v6275_v15 }
0x1367   :  { %v6278_v20 = vpack.c.bf16 %v6276_v19, %v6276_v19 }
0x1369   :  { %6440 = vmatprep.mubr.bf16.mxu1 %v6278_v20 }
0x136a   :  { %6441 = vmatmul.mubr.bf16.vlgmr.msra.gmra.mrb[44].mxu1 %v6277_v24 }
0x136b   :  { %7625 = vmatprep.mubr.msk.bf16.mxu1 %vm8956_vm7, %v8954_v4  ;;  %7622 = vmatpush3.bf16.msra.mxu1 %v8762_v56 }
0x136c   :  { %7623 = vmatprep.subr.bf16.mxu1 %v8954_v4 }
0x136f   :  { %7624 = vmatpush3.bf16.msra.mxu1 %v8763_v57 }
0x143d   :  { %v7533_v10 = vpop.f32.mrb[44].mxu1 }
0x143e   :  { %v7534_v37 = vpop.f32.mrb[45].mxu1 }
0x143f   :  { %v7535_v38 = vadd.f32 %v7534_v37, %v7533_v10  ;;  %v7536_v26 = vpop.f32.mrb[46].mxu1 }
0x1440   :  { %v7537_v43 = vpop.f32.mrb[47].mxu1 }
0x1441   :  { %v6443_v45 = vadd.f32 %v7535_v38, %v6311_v29  ;;  %v6611_v38 = vld [vmem:[#allocation10 + $0x33] ss:$0 sm:$0xff] }
0x1443   :  { %v6449_v63 = vmin.f32 %v6443_v45, 0.0  ;;  %vm6448_vm1 = vcmp.gt.f32.partialorder %v6443_v45, 0.0 }
0x1445   :  { %v6450_v34 = vmul.f32 1.442695, %v6449_v63 }
0x1447   :  { %8792 = vpow2.f32 %v6450_v34 }
0x1451   :  { %v8793_v35 = vpop.eup %8792 }
0x1452   :  { %v7418_v61 = vadd.f32 -1.0, %v8793_v35 }
0x1454   :  { %v6453_v62 = vsel %vm6448_vm1, %v6443_v45, %v7418_v61 }
0x1455   :  { %v6454_v32 = vrot.slane %v6453_v62, 4 }
0x1457   :  { %v6455_v23 = vadd.f32 %v6454_v32, %v6453_v62 }
0x1459   :  { %v6456_v25 = vrot.slane %v6455_v23, 2 }
0x145b   :  { %v6457_v1 = vadd.f32 %v6456_v25, %v6455_v23 }
0x145d   :  { %v6458_v48 = vrot.slane %v6457_v1, 1 }
0x145f   :  { %v6459_v50 = vadd.f32 %v6458_v48, %v6457_v1 }
0x1461   :  { %v6460_v51 = vmul.f32 0.125, %v6459_v50 }
0x1463   :  { %v6461_v11 = vsub.f32 %v6453_v62, %v6460_v51 }
0x1465   :  { %v6462_v39 = vmul.f32 %v6461_v11, %v6461_v11 }
0x1467   :  { %v6463_v49 = vrot.slane %v6462_v39, 4 }
0x1469   :  { %v6464_v41 = vadd.f32 %v6463_v49, %v6462_v39 }
0x146b   :  { %v6465_v13 = vrot.slane %v6464_v41, 2 }
0x146d   :  { %v6466_v52 = vadd.f32 %v6465_v13, %v6464_v41 }
0x146f   :  { %v6467_v42 = vrot.slane %v6466_v52, 1 }
0x1471   :  { %v6468_v17 = vadd.f32 %v6467_v42, %v6466_v52 }
0x1473   :  { %v6469_v53 = vmul.f32 0.125, %v6468_v17 }
0x1475   :  { %v6470_v54 = vadd.f32 1e-05, %v6469_v53 }
0x1477   :  { %8794 = vrsqrt.f32 %v6470_v54 }
0x1481   :  { %v8795_v0 = vpop.eup %8794 }
0x1482   :  { %v6472_v55 = vmul.f32 %v8795_v0, %v6461_v11 }
0x1484   :  { %v6473_v44 = vpack.c.bf16 %v6472_v55, %v6472_v55 }
0x1486   :  { %7618 = vmatmul.mubr.bf16.vlgmr.msra.gmra.mrb[36].mxu0 %v6473_v44 }
0x1559   :  { %v6573_v58 = vpop.f32.mrb[36].mxu0 }
0x155a   :  { %v6574_v2 = vadd.f32 %v6573_v58, %v6490_v21  ;;  %v7619_v36 = vpop.f32.mrb[37].mxu0 }
0x155b   :  { %v6576_v3 = vpop.f32.mrb[38].mxu0 }
0x155c   :  { %v6580_v5 = vmin.f32 %v6574_v2, 0.0  ;;  %v7620_v59 = vpop.f32.mrb[39].mxu0  ;;  %vm6579_vm2 = vcmp.gt.f32.partialorder %v6574_v2, 0.0 }
0x155e   :  { %v6581_v18 = vmul.f32 1.442695, %v6580_v5 }
0x1560   :  { %8796 = vpow2.f32 %v6581_v18 }
0x156a   :  { %v8797_v30 = vpop.eup %8796 }
0x156b   :  { %v7427_v6 = vadd.f32 -1.0, %v8797_v30 }
0x156d   :  { %v6584_v60 = vsel %vm6579_vm2, %v6574_v2, %v7427_v6 }
0x156e   :  { %v6585_v7 = vsel %vm5862_vm10, %v6584_v60, 0.0 }
0x156f   :  { %v6586_v22 = vrot.slane %v6585_v7, 4 }
0x1571   :  { %v6587_v8 = vadd.f32 %v6586_v22, %v6585_v7 }
0x1573   :  { %v6588_v4 = vrot.slane %v6587_v8, 2 }
0x1575   :  { %v6589_v47 = vadd.f32 %v6588_v4, %v6587_v8 }
0x1577   :  { %v6590_v9 = vrot.slane %v6589_v47, 1 }
0x1579   :  { %v6591_v14 = vadd.f32 %v6590_v9, %v6589_v47 }
0x157b   :  { %v6592_v15 = vmul.f32 0.125, %v6591_v14 }
0x157d   :  { %v6593_v19 = vsub.f32 %v6584_v60, %v6592_v15 }
0x157f   :  { %v6594_v20 = vmul.f32 %v6593_v19, %v6593_v19 }
0x1581   :  { %v6595_v24 = vsel %vm5862_vm10, %v6594_v20, 0.0 }
0x1582   :  { %v6596_v40 = vrot.slane %v6595_v24, 4 }
0x1584   :  { %v6597_v46 = vadd.f32 %v6596_v40, %v6595_v24 }
0x1586   :  { %v6598_v12 = vrot.slane %v6597_v46, 2 }
0x1588   :  { %v6599_v16 = vadd.f32 %v6598_v12, %v6597_v46 }
0x158a   :  { %v6600_v27 = vrot.slane %v6599_v16, 1 }
0x158c   :  { %v6601_v31 = vadd.f32 %v6600_v27, %v6599_v16 }
0x158e   :  { %v6602_v33 = vmul.f32 0.125, %v6601_v31 }
0x1590   :  { %v6603_v28 = vadd.f32 1e-05, %v6602_v33 }
0x1592   :  { %8798 = vrsqrt.f32 %v6603_v28 }
0x159c   :  { %v8799_v10 = vpop.eup %8798 }
0x159d   :  { %v6605_v29 = vmul.f32 %v8799_v10, %v6593_v19 }
0x159f   :  { %v6606_v37 = vpack.c.bf16 %v6605_v29, %v6605_v29 }
0x15a1   :  { %7626 = vmatmul.mubr.msk.bf16.vlgmr.msra.gmra.mrb[48].mxu1 %vm5862_vm10, %v6606_v37 }
0x1674   :  { %v6661_v26 = vpop.f32.mrb[48].mxu1 }
0x1675   :  { %v6662_v43 = vadd.f32 %v6661_v26, %v6611_v38  ;;  %v7627_v45 = vpop.f32.mrb[49].mxu1 }
0x1676   :  { %v6664_v63 = vpop.f32.mrb[50].mxu1 }
0x1677   :  { %6667 = vst [vmem:[#allocation11] sm:$0xff] %v6662_v43  ;;  %v7628_v34 = vpop.f32.mrb[51].mxu1 }
0x1678   :  { %8921 = shalt.err (!%p8918_p2)
}
0x1679   :  { %s8922_s15 = scalar_lea.hbm %s9399_s6, 128 }
0x167a   :  { %p8923_p3 = scmp.ne.s32.totalorder %s9399_s6, %s8922_s15  ;;  %p8926_p4 = scmp.lt.u32.totalorder %s8922_s15, %s9399_s6 }
0x167c   :  { %p8928_p5 = pnand %p8926_p4, %p8923_p3 }
0x167e   :  { %8931 = shalt.err (!%p8928_p5)
}
0x167f   :  { %6677 = dma.vmem_to_hbm [thread:$0]  %s6675_s12, 128, %s9399_s6, [#allocation4]  }
0x1680   :  { %8938 = dma.done.wait [#allocation4], 128  }
0x1681   :  { %8939 = vsyncadd [#allocation4], 4294967168 }
0x1682   :  { %6681 = vsyncpa [#allocation3], 1 }
0x1683   :  { %6682 = vsyncpa [#allocation6], 1 }
0x1684   :  { %6683 = vsyncpa [#allocation9], 1 }
0x1685   :  { %6684 = vsyncpa [#allocation4], 1 }

</bundles_post_ra>
